<compile_context>
chip_gen: v7x
topology: tpu7x:2x2x1
jax: 0.10.0
libtpu: 0.0.40
codegen_flags: <defaults>
</compile_context>

<pallas_src>
import functools

import jax
import jax.numpy as jnp
from jax.experimental import pallas as pl
from jax.experimental.pallas import tpu as pltpu

LANE = 128

_VMEM = pl.BlockSpec(memory_space=pltpu.MemorySpace.VMEM)
_SMEM = pl.BlockSpec(memory_space=pltpu.MemorySpace.SMEM)


def _ceil_to(x, m):
    return (x + m - 1) // m * m


# ---------------------------------------------------------------------------
# Fused step kernel
# ---------------------------------------------------------------------------

def _make_kernel(*, B, P, FP, T_pad):
    f32 = jnp.float32
    bf16 = jnp.bfloat16
    G3 = 3 * FP  # one cell's fused (r,z,n) gate width

    def kernel(hlen_ref, U_ref, qsel_ref, qmask_ref, q0_ref, r0_ref, e0_ref,
               gprev_ref, ghist_ref, attnw_ref,
               W_g_ref, b_g_ref, W_s1_ref, b_s1_ref, W_ph_ref, b_ph_ref,
               W_s2_ref, b_s2_ref, W_e_ref, b_e_ref,
               g_out, q_out, r_out, e_out, alpha_out):

        hlen = hlen_ref[0]                       # true history length (SMEM scalar)

        U = U_ref[...]                           # (B, FP)        f32
        qsel = qsel_ref[...]                     # (P*B, 1)       one-hot argmax(qmask)
        qmask = qmask_ref[...]                   # (P*B, 1)       raw mask (blend)
        q0 = q0_ref[...]                         # (P*B, FP)      party-major
        r0 = r0_ref[...]                         # (P*B, FP)
        e0 = e0_ref[...]                         # (B, FP)
        g_prev = gprev_ref[...]                  # (B, FP)

        def select(x):                           # (P*B, C) -> (B, C)   VPU mask + row-sum
            xm = x * qsel
            acc = xm[0:B]
            for p in range(1, P):
                acc = acc + xm[p * B:(p + 1) * B]
            return acc

        def expand(x):                           # (B, C) -> (P*B, C)   sublane replication
            return jnp.concatenate([x] * P, axis=0) if P > 1 else x

        def mm(x, w_ref, b_ref):                 # bf16 MXU matmul, f32 accumulate + bias
            y = jnp.dot(x.astype(bf16), w_ref[...], preferred_element_type=f32)
            return y + b_ref[...]

        def gru_gates(gi, gh, h):                # PyTorch GRUCell, gates fused on lanes
            r = jax.nn.sigmoid(gi[:, 0:FP] + gh[:, 0:FP])
            z = jax.nn.sigmoid(gi[:, FP:2 * FP] + gh[:, FP:2 * FP])
            n = jnp.tanh(gi[:, 2 * FP:3 * FP] + r * gh[:, 2 * FP:3 * FP])
            return (1.0 - z) * n + z * h

        # --- global context GRU: one fused [gi | gh] matmul ------------------
        x_g = jnp.concatenate([select(q0), select(r0), U, g_prev], axis=1)   # (B, 4FP)
        gg = mm(x_g, W_g_ref, b_g_ref)                                       # (B, 6FP)
        g_ = gru_gates(gg[:, :G3], gg[:, G3:], g_prev)                       # (B, FP)

        # --- SimpleAttention over history (length-masked, lane-dense) --------
        Gh = ghist_ref[...]                                                  # (B, T_pad, FP)
        w_att = attnw_ref[...].reshape(1, 1, FP)
        scores = jnp.sum(Gh * w_att, axis=-1)                                # (B, T_pad)
        t_idx = jax.lax.broadcasted_iota(jnp.int32, (B, T_pad), 1)
        scores = jnp.where(t_idx < hlen, scores, -1e30)
        m = jnp.max(scores, axis=-1, keepdims=True)
        ex = jnp.exp(scores - m)
        alpha = ex / jnp.sum(ex, axis=-1, keepdims=True)                     # (B, T_pad)
        c_ = jnp.einsum('bqt,btd->bqd', alpha.reshape(B, 1, T_pad), Gh,
                        preferred_element_type=f32).reshape(B, FP)           # (B, FP)
        alpha_out[...] = alpha

        # --- party-level GRUs: all four hidden projections in ONE matmul -----
        gh_party = mm(jnp.concatenate([r0, q0], axis=1), W_ph_ref, b_ph_ref)  # (P*B, 12FP)

        # stage 1 (r_cell / p_cell): inputs are batch-level -> one wide dot, then replicate
        gi_s1 = expand(mm(jnp.concatenate([c_, U, g_], axis=1), W_s1_ref, b_s1_ref))
        rs = gru_gates(gi_s1[:, 0:G3], gh_party[:, 0:G3], r0)
        qs = gru_gates(gi_s1[:, G3:2 * G3], gh_party[:, G3:2 * G3], q0)

        # stage 2 (rl_cell / pl_cell)
        gi_s2 = expand(mm(jnp.concatenate([select(rs), U, select(qs)], axis=1),
                          W_s2_ref, b_s2_ref))
        rl = gru_gates(gi_s2[:, 0:G3], gh_party[:, 2 * G3:3 * G3], r0)
        ql = gru_gates(gi_s2[:, G3:2 * G3], gh_party[:, 3 * G3:4 * G3], q0)

        # masked blend (same orientation as the reference module)
        q_ = ql * qmask + qs * (1.0 - qmask)
        r_ = rs * qmask + rl * (1.0 - qmask)

        # --- emotion GRU: one fused [gi | gh] matmul --------------------------
        x_e = jnp.concatenate([U, select(q_), g_, e0], axis=1)               # (B, 4FP)
        ge = mm(x_e, W_e_ref, b_e_ref)                                       # (B, 6FP)
        e_ = gru_gates(ge[:, :G3], ge[:, G3:], e0)

        g_out[...] = g_
        q_out[...] = q_
        r_out[...] = r_
        e_out[...] = e_

    return kernel


# ---------------------------------------------------------------------------
# One-time parameter preparation: fused, padded, pre-transposed bf16 weights
# ---------------------------------------------------------------------------

def _place_ih(big, w_ih, H, block_dims, slots, col_off, FP):
    """Place a torch GRUCell w_ih (3H, Din) into `big` (gate-fused, padded)."""
    w3 = w_ih.reshape(3, H, -1)
    for g in range(3):
        off = 0
        for d, s in zip(block_dims, slots):
            big = big.at[s * FP:s * FP + d,
                         col_off + g * FP:col_off + g * FP + H].set(w3[g, :, off:off + d].T)
            off += d
    return big


def _place_hh(big, w_hh, H, row_off, col_off, FP):
    w3 = w_hh.reshape(3, H, H)
    for g in range(3):
        big = big.at[row_off:row_off + H,
                     col_off + g * FP:col_off + g * FP + H].set(w3[g].T)
    return big


def _place_b(big, b, H, col_off, FP):
    b3 = b.reshape(3, H)
    for g in range(3):
        big = big.at[0, col_off + g * FP:col_off + g * FP + H].set(b3[g])
    return big


def prepare_params(raw):
    f32, bf16 = jnp.float32, jnp.bfloat16

    g_wih, g_whh, g_bih, g_bhh = [jnp.asarray(a, f32) for a in raw["g_cell"]]
    p_wih, p_whh, p_bih, p_bhh = [jnp.asarray(a, f32) for a in raw["p_cell"]]
    pl_wih, pl_whh, pl_bih, pl_bhh = [jnp.asarray(a, f32) for a in raw["pl_cell"]]
    r_wih, r_whh, r_bih, r_bhh = [jnp.asarray(a, f32) for a in raw["r_cell"]]
    rl_wih, rl_whh, rl_bih, rl_bhh = [jnp.asarray(a, f32) for a in raw["rl_cell"]]
    e_wih, e_whh, e_bih, e_bhh = [jnp.asarray(a, f32) for a in raw["e_cell"]]

    D_g = g_whh.shape[1]
    D_q = p_whh.shape[1]
    D_r = r_whh.shape[1]
    D_e = e_whh.shape[1]
    D_m = g_wih.shape[1] - D_q - D_r
    FP = _ceil_to(max(D_m, D_q, D_g, D_r, D_e), LANE)
    G3 = 3 * FP

    # g_cell: x = [q0_sel | r0_sel | U | g_prev] -> cols [gi(r,z,n) | gh(r,z,n)]
    W_g = jnp.zeros((4 * FP, 6 * FP), f32)
    W_g = _place_ih(W_g, g_wih, D_g, [D_q, D_r, D_m], [0, 1, 2], 0, FP)
    W_g = _place_hh(W_g, g_whh, D_g, 3 * FP, G3, FP)
    b_g = _place_b(_place_b(jnp.zeros((1, 6 * FP), f32), g_bih, D_g, 0, FP), g_bhh, D_g, G3, FP)

    # e_cell: x = [U | q_sel | g_ | e0]
    W_e = jnp.zeros((4 * FP, 6 * FP), f32)
    W_e = _place_ih(W_e, e_wih, D_e, [D_m, D_q, D_g], [0, 1, 2], 0, FP)
    W_e = _place_hh(W_e, e_whh, D_e, 3 * FP, G3, FP)
    b_e = _place_b(_place_b(jnp.zeros((1, 6 * FP), f32), e_bih, D_e, 0, FP), e_bhh, D_e, G3, FP)

    # stage-1 input weights, x = [c_ | U | g_]; cols = [r_cell gi | p_cell gi]
    W_s1 = jnp.zeros((3 * FP, 6 * FP), f32)
    W_s1 = _place_ih(W_s1, r_wih, D_r, [D_g, D_m], [0, 1], 0, FP)
    W_s1 = _place_ih(W_s1, p_wih, D_q, [D_m, D_g], [1, 2], G3, FP)
    b_s1 = _place_b(_place_b(jnp.zeros((1, 6 * FP), f32), r_bih, D_r, 0, FP), p_bih, D_q, G3, FP)

    # stage-2 input weights, x = [rss_sel | U | ss_sel]; cols = [rl_cell gi | pl_cell gi]
    W_s2 = jnp.zeros((3 * FP, 6 * FP), f32)
    W_s2 = _place_ih(W_s2, rl_wih, D_r, [D_r, D_m], [0, 1], 0, FP)
    W_s2 = _place_ih(W_s2, pl_wih, D_q, [D_m, D_q], [1, 2], G3, FP)
    b_s2 = _place_b(_place_b(jnp.zeros((1, 6 * FP), f32), rl_bih, D_r, 0, FP), pl_bih, D_q, G3, FP)

    # hidden weights for all four party cells, h = [r0 | q0]; cols = [r | p | rl | pl] gh
    W_ph = jnp.zeros((2 * FP, 12 * FP), f32)
    W_ph = _place_hh(W_ph, r_whh, D_r, 0, 0 * G3, FP)
    W_ph = _place_hh(W_ph, p_whh, D_q, FP, 1 * G3, FP)
    W_ph = _place_hh(W_ph, rl_whh, D_r, 0, 2 * G3, FP)
    W_ph = _place_hh(W_ph, pl_whh, D_q, FP, 3 * G3, FP)
    b_ph = jnp.zeros((1, 12 * FP), f32)
    b_ph = _place_b(b_ph, r_bhh, D_r, 0 * G3, FP)
    b_ph = _place_b(b_ph, p_bhh, D_q, 1 * G3, FP)
    b_ph = _place_b(b_ph, rl_bhh, D_r, 2 * G3, FP)
    b_ph = _place_b(b_ph, pl_bhh, D_q, 3 * G3, FP)

    attn_w = jnp.zeros((1, FP), f32).at[0, :D_g].set(jnp.asarray(raw["attn_w"], f32).reshape(-1))

    params = dict(
        W_g=W_g.astype(bf16), b_g=b_g,
        W_s1=W_s1.astype(bf16), b_s1=b_s1,
        W_s2=W_s2.astype(bf16), b_s2=b_s2,
        W_ph=W_ph.astype(bf16), b_ph=b_ph,
        W_e=W_e.astype(bf16), b_e=b_e,
        attn_w=attn_w,
    )
    dims = dict(D_m=D_m, D_q=D_q, D_g=D_g, D_r=D_r, D_e=D_e, FP=FP)
    return params, dims


# ---------------------------------------------------------------------------
# Forward wrapper (all compute lives in the single fused kernel)
# ---------------------------------------------------------------------------

def emotion_gru_cell_forward(params, U, qmask, g_hist, q0, r0, e0, *, dims, t_max=128):
    f32 = jnp.float32
    D_q, D_g, D_r, D_e, FP = dims["D_q"], dims["D_g"], dims["D_r"], dims["D_e"], dims["FP"]
    B, P = qmask.shape
    T = g_hist.shape[0]
    T_pad = max(t_max, _ceil_to(max(T, 1), LANE))
    dtype = U.dtype

    def padf(x):
        pad = FP - x.shape[-1]
        x = x.astype(f32)
        return jnp.pad(x, [(0, 0)] * (x.ndim - 1) + [(0, pad)]) if pad else x

    # party-major (P*B, FP) layout: row p*B + b  (pure layout plumbing)
    Up = padf(U)
    q0_pm = padf(jnp.transpose(q0, (1, 0, 2)).reshape(P * B, -1))
    r0_pm = padf(jnp.transpose(r0, (1, 0, 2)).reshape(P * B, -1))
    e0_in = e0.astype(f32) if e0.shape[0] != 0 else jnp.zeros((B, D_e), f32)
    e0p = padf(e0_in)

    qm_idx = jnp.argmax(qmask, axis=1)
    qsel_pm = jnp.transpose(jax.nn.one_hot(qm_idx, P, dtype=f32)).reshape(P * B, 1)
    qmask_pm = jnp.transpose(qmask.astype(f32)).reshape(P * B, 1)

    # history: batch-major (B, T_pad, FP) zero-padded + last element + true length
    if T > 0:
        gh_bt = jnp.transpose(g_hist.astype(f32), (1, 0, 2))
        gh_bt = jnp.pad(gh_bt, ((0, 0), (0, T_pad - T), (0, FP - D_g)))
        g_prev = padf(g_hist[-1])
    else:
        gh_bt = jnp.zeros((B, T_pad, FP), f32)
        g_prev = jnp.zeros((B, FP), f32)
    hlen = jnp.full((1,), T, jnp.int32)

    kernel = _make_kernel(B=B, P=P, FP=FP, T_pad=T_pad)

    inputs = (hlen, Up, qsel_pm, qmask_pm, q0_pm, r0_pm, e0p, g_prev, gh_bt,
              params["attn_w"],
              params["W_g"], params["b_g"], params["W_s1"], params["b_s1"],
              params["W_ph"], params["b_ph"], params["W_s2"], params["b_s2"],
              params["W_e"], params["b_e"])

    out_shape = (jax.ShapeDtypeStruct((B, FP), f32),            # g_
                 jax.ShapeDtypeStruct((P * B, FP), f32),         # q_ (party-major)
                 jax.ShapeDtypeStruct((P * B, FP), f32),         # r_ (party-major)
                 jax.ShapeDtypeStruct((B, FP), f32),              # e_
                 jax.ShapeDtypeStruct((B, T_pad), f32))           # alpha (length-masked)

    g_, q_pm, r_pm, e_, alpha_bt = pl.pallas_call(
        kernel,
        out_shape=out_shape,
        in_specs=[_SMEM] + [_VMEM] * (len(inputs) - 1),
        out_specs=tuple([_VMEM] * len(out_shape)),
    )(*inputs)

    g_ = g_[:, :D_g].astype(dtype)
    q_ = jnp.transpose(q_pm[:, :D_q].reshape(P, B, D_q), (1, 0, 2)).astype(dtype)
    r_ = jnp.transpose(r_pm[:, :D_r].reshape(P, B, D_r), (1, 0, 2)).astype(dtype)
    e_ = e_[:, :D_e].astype(dtype)
    alpha = alpha_bt[:, :T][:, None, :].astype(dtype) if T > 0 else None
    return g_, q_, r_, e_, alpha


# ---------------------------------------------------------------------------
# Deterministic parameter init (PyTorch GRUCell shapes / uniform init)
# ---------------------------------------------------------------------------

def init_gru(key, d_in, d_h):
    k = jax.random.split(key, 4)
    s = 1.0 / jnp.sqrt(jnp.float32(d_h))
    return (jax.random.uniform(k[0], (3 * d_h, d_in), jnp.float32, -s, s),
            jax.random.uniform(k[1], (3 * d_h, d_h), jnp.float32, -s, s),
            jax.random.uniform(k[2], (3 * d_h,), jnp.float32, -s, s),
            jax.random.uniform(k[3], (3 * d_h,), jnp.float32, -s, s))


if __name__ == "__main__":
    key = jax.random.PRNGKey(0)
    B, P, T = 2, 2, 8
    D_m = D_q = D_g = D_r = D_e = 32

    keys = jax.random.split(key, 8)
    raw = {
        "g_cell": init_gru(keys[0], D_q + D_r + D_m, D_g),
        "p_cell": init_gru(keys[1], D_g + D_m, D_q),
        "pl_cell": init_gru(keys[2], D_g + D_m, D_q),
        "r_cell": init_gru(keys[3], D_g + D_m, D_r),
        "rl_cell": init_gru(keys[4], D_g + D_m, D_r),
        "e_cell": init_gru(keys[5], D_m + D_q + D_g, D_e),
        "attn_w": jax.random.uniform(keys[6], (1, D_g), jnp.float32,
                                     -1.0 / jnp.sqrt(jnp.float32(D_g)),
                                     1.0 / jnp.sqrt(jnp.float32(D_g))),
    }
    params, dims = prepare_params(raw)   # one-time fused/padded/bf16 layout conversion

    ikeys = jax.random.split(keys[7], 6)
    U = jax.random.normal(ikeys[0], (B, D_m), jnp.float32)
    speaker = jax.random.randint(ikeys[1], (B,), 0, P)
    qmask = jax.nn.one_hot(speaker, P, dtype=jnp.float32)          # (B, P)
    g_hist = jax.random.normal(ikeys[2], (T, B, D_g), jnp.float32)
    q0 = jax.random.normal(ikeys[3], (B, P, D_q), jnp.float32)
    r0 = jax.random.normal(ikeys[4], (B, P, D_r), jnp.float32)
    e0 = jax.random.normal(ikeys[5], (B, D_e), jnp.float32)

    fwd = jax.jit(functools.partial(emotion_gru_cell_forward, dims=dims))
    g_, q_, r_, e_, alpha = fwd(params, U, qmask, g_hist, q0, r0, e0)
    jax.block_until_ready((g_, q_, r_, e_, alpha))

    # empty-history branch: same length-masked kernel with hist_len = 0
    ge_, qe_, re_, ee_, alpha_e = emotion_gru_cell_forward(
        params, U, qmask, jnp.zeros((0, B, D_g), jnp.float32), q0, r0, e0, dims=dims)
    jax.block_until_ready((ge_, qe_, re_, ee_))

    assert g_.shape == (B, D_g)
    assert q_.shape == (B, P, D_q)
    assert r_.shape == (B, P, D_r)
    assert e_.shape == (B, D_e)
    assert alpha.shape == (B, 1, T)
    assert alpha_e is None
    assert all(bool(jnp.all(jnp.isfinite(x)))
               for x in (g_, q_, r_, e_, alpha, ge_, qe_, re_, ee_))
    print("KERNEL_OK")
</pallas_src>

<mosaic_0001>
module attributes {stable_mosaic.version = 11 : i64} {
  func.func @kernel(%arg0: memref<1xi32, #tpu.memory_space<smem>>, %arg1: memref<2x128xf32, #tpu.memory_space<vmem>>, %arg2: memref<4x1xf32, #tpu.memory_space<vmem>>, %arg3: memref<4x1xf32, #tpu.memory_space<vmem>>, %arg4: memref<4x128xf32, #tpu.memory_space<vmem>>, %arg5: memref<4x128xf32, #tpu.memory_space<vmem>>, %arg6: memref<2x128xf32, #tpu.memory_space<vmem>>, %arg7: memref<2x128xf32, #tpu.memory_space<vmem>>, %arg8: memref<2x128x128xf32, #tpu.memory_space<vmem>>, %arg9: memref<1x128xf32, #tpu.memory_space<vmem>>, %arg10: memref<512x768xbf16, #tpu.memory_space<vmem>>, %arg11: memref<1x768xf32, #tpu.memory_space<vmem>>, %arg12: memref<384x768xbf16, #tpu.memory_space<vmem>>, %arg13: memref<1x768xf32, #tpu.memory_space<vmem>>, %arg14: memref<256x1536xbf16, #tpu.memory_space<vmem>>, %arg15: memref<1x1536xf32, #tpu.memory_space<vmem>>, %arg16: memref<384x768xbf16, #tpu.memory_space<vmem>>, %arg17: memref<1x768xf32, #tpu.memory_space<vmem>>, %arg18: memref<512x768xbf16, #tpu.memory_space<vmem>>, %arg19: memref<1x768xf32, #tpu.memory_space<vmem>>, %arg20: memref<2x128xf32, #tpu.memory_space<vmem>>, %arg21: memref<4x128xf32, #tpu.memory_space<vmem>>, %arg22: memref<4x128xf32, #tpu.memory_space<vmem>>, %arg23: memref<2x128xf32, #tpu.memory_space<vmem>>, %arg24: memref<2x128xf32, #tpu.memory_space<vmem>>) attributes {dimension_semantics = [], scalar_prefetch = 0 : i64, scratch_operands = 0 : i64, tpu.core_type = #tpu.core_type<tc>} {
    %c0 = arith.constant 0 : index
    %0 = memref.load %arg0[%c0] : memref<1xi32, #tpu.memory_space<smem>>
    %c0_0 = arith.constant 0 : index
    %c0_1 = arith.constant 0 : index
    %1 = vector.load %arg1[%c0_0, %c0_1] : memref<2x128xf32, #tpu.memory_space<vmem>>, vector<2x128xf32>
    %c0_2 = arith.constant 0 : index
    %c0_3 = arith.constant 0 : index
    %2 = vector.load %arg2[%c0_2, %c0_3] : memref<4x1xf32, #tpu.memory_space<vmem>>, vector<4x1xf32>
    %c0_4 = arith.constant 0 : index
    %c0_5 = arith.constant 0 : index
    %3 = vector.load %arg3[%c0_4, %c0_5] : memref<4x1xf32, #tpu.memory_space<vmem>>, vector<4x1xf32>
    %c0_6 = arith.constant 0 : index
    %c0_7 = arith.constant 0 : index
    %4 = vector.load %arg4[%c0_6, %c0_7] : memref<4x128xf32, #tpu.memory_space<vmem>>, vector<4x128xf32>
    %c0_8 = arith.constant 0 : index
    %c0_9 = arith.constant 0 : index
    %5 = vector.load %arg5[%c0_8, %c0_9] : memref<4x128xf32, #tpu.memory_space<vmem>>, vector<4x128xf32>
    %c0_10 = arith.constant 0 : index
    %c0_11 = arith.constant 0 : index
    %6 = vector.load %arg6[%c0_10, %c0_11] : memref<2x128xf32, #tpu.memory_space<vmem>>, vector<2x128xf32>
    %c0_12 = arith.constant 0 : index
    %c0_13 = arith.constant 0 : index
    %7 = vector.load %arg7[%c0_12, %c0_13] : memref<2x128xf32, #tpu.memory_space<vmem>>, vector<2x128xf32>
    %8 = vector.broadcast %2 : vector<4x1xf32> to vector<4x128xf32>
    %9 = arith.mulf %4, %8 : vector<4x128xf32>
    %10 = vector.extract_strided_slice %9 {offsets = [0, 0], sizes = [2, 128], strides = [1, 1]} : vector<4x128xf32> to vector<2x128xf32>
    %11 = vector.extract_strided_slice %9 {offsets = [2, 0], sizes = [2, 128], strides = [1, 1]} : vector<4x128xf32> to vector<2x128xf32>
    %12 = arith.addf %10, %11 : vector<2x128xf32>
    %13 = vector.broadcast %2 : vector<4x1xf32> to vector<4x128xf32>
    %14 = arith.mulf %5, %13 : vector<4x128xf32>
    %15 = vector.extract_strided_slice %14 {offsets = [0, 0], sizes = [2, 128], strides = [1, 1]} : vector<4x128xf32> to vector<2x128xf32>
    %16 = vector.extract_strided_slice %14 {offsets = [2, 0], sizes = [2, 128], strides = [1, 1]} : vector<4x128xf32> to vector<2x128xf32>
    %17 = arith.addf %15, %16 : vector<2x128xf32>
    %18 = tpu.concatenate %12, %17, %1, %7 in 1 : vector<2x128xf32>, vector<2x128xf32>, vector<2x128xf32>, vector<2x128xf32> -> vector<2x512xf32>
    %19 = arith.truncf %18 : vector<2x512xf32> to vector<2x512xbf16>
    %c0_14 = arith.constant 0 : index
    %c0_15 = arith.constant 0 : index
    %20 = vector.load %arg10[%c0_14, %c0_15] : memref<512x768xbf16, #tpu.memory_space<vmem>>, vector<512x768xbf16>
    %cst = arith.constant dense<0.000000e+00> : vector<2x768xf32>
    %21 = tpu.matmul %19, %20, %cst {dimension_numbers = #tpu.dot_dimension_numbers<[1], [0], [0], [1], [0, 0, 1, 1], [], []>} : vector<2x512xbf16>, vector<512x768xbf16>, vector<2x768xf32> -> vector<2x768xf32>
    %c0_16 = arith.constant 0 : index
    %c0_17 = arith.constant 0 : index
    %22 = vector.load %arg11[%c0_16, %c0_17] : memref<1x768xf32, #tpu.memory_space<vmem>>, vector<1x768xf32>
    %23 = vector.broadcast %22 : vector<1x768xf32> to vector<2x768xf32>
    %24 = arith.addf %21, %23 : vector<2x768xf32>
    %25 = vector.extract_strided_slice %24 {offsets = [0, 0], sizes = [2, 384], strides = [1, 1]} : vector<2x768xf32> to vector<2x384xf32>
    %26 = vector.extract_strided_slice %24 {offsets = [0, 384], sizes = [2, 384], strides = [1, 1]} : vector<2x768xf32> to vector<2x384xf32>
    %27 = vector.extract_strided_slice %25 {offsets = [0, 0], sizes = [2, 128], strides = [1, 1]} : vector<2x384xf32> to vector<2x128xf32>
    %28 = vector.extract_strided_slice %26 {offsets = [0, 0], sizes = [2, 128], strides = [1, 1]} : vector<2x384xf32> to vector<2x128xf32>
    %29 = arith.addf %27, %28 : vector<2x128xf32>
    %30 = arith.negf %29 : vector<2x128xf32>
    %31 = math.exp %30 : vector<2x128xf32>
    %cst_18 = arith.constant 1.000000e+00 : f32
    %32 = vector.broadcast %cst_18 : f32 to vector<2x128xf32>
    %33 = arith.addf %32, %31 : vector<2x128xf32>
    %34 = arith.divf %32, %33 : vector<2x128xf32>
    %35 = vector.extract_strided_slice %25 {offsets = [0, 128], sizes = [2, 128], strides = [1, 1]} : vector<2x384xf32> to vector<2x128xf32>
    %36 = vector.extract_strided_slice %26 {offsets = [0, 128], sizes = [2, 128], strides = [1, 1]} : vector<2x384xf32> to vector<2x128xf32>
    %37 = arith.addf %35, %36 : vector<2x128xf32>
    %38 = arith.negf %37 : vector<2x128xf32>
    %39 = math.exp %38 : vector<2x128xf32>
    %cst_19 = arith.constant 1.000000e+00 : f32
    %40 = vector.broadcast %cst_19 : f32 to vector<2x128xf32>
    %41 = arith.addf %40, %39 : vector<2x128xf32>
    %42 = arith.divf %40, %41 : vector<2x128xf32>
    %43 = vector.extract_strided_slice %25 {offsets = [0, 256], sizes = [2, 128], strides = [1, 1]} : vector<2x384xf32> to vector<2x128xf32>
    %44 = vector.extract_strided_slice %26 {offsets = [0, 256], sizes = [2, 128], strides = [1, 1]} : vector<2x384xf32> to vector<2x128xf32>
    %45 = arith.mulf %34, %44 : vector<2x128xf32>
    %46 = arith.addf %43, %45 : vector<2x128xf32>
    %47 = math.tanh %46 : vector<2x128xf32>
    %cst_20 = arith.constant 1.000000e+00 : f32
    %48 = vector.broadcast %cst_20 : f32 to vector<2x128xf32>
    %49 = arith.subf %48, %42 : vector<2x128xf32>
    %50 = arith.mulf %49, %47 : vector<2x128xf32>
    %51 = arith.mulf %42, %7 : vector<2x128xf32>
    %52 = arith.addf %50, %51 : vector<2x128xf32>
    %c0_21 = arith.constant 0 : index
    %c0_22 = arith.constant 0 : index
    %c0_23 = arith.constant 0 : index
    %53 = vector.load %arg8[%c0_21, %c0_22, %c0_23] : memref<2x128x128xf32, #tpu.memory_space<vmem>>, vector<2x128x128xf32>
    %c0_24 = arith.constant 0 : index
    %c0_25 = arith.constant 0 : index
    %54 = vector.load %arg9[%c0_24, %c0_25] : memref<1x128xf32, #tpu.memory_space<vmem>>, vector<1x128xf32>
    %55 = vector.shape_cast %54 : vector<1x128xf32> to vector<1x1x128xf32>
    %56 = vector.broadcast %55 : vector<1x1x128xf32> to vector<2x128x128xf32>
    %57 = arith.mulf %53, %56 : vector<2x128x128xf32>
    %cst_26 = arith.constant dense<0.000000e+00> : vector<2x128xf32>
    %58 = vector.multi_reduction <add>, %57, %cst_26 [2] : vector<2x128x128xf32> to vector<2x128xf32>
    %59 = tpu.iota {dimensions = array<i32: 1>} : vector<2x128xi32>
    %60 = vector.broadcast %0 : i32 to vector<2x128xi32>
    %61 = arith.cmpi slt, %59, %60 : vector<2x128xi32>
    %cst_27 = arith.constant -1.000000e+30 : f32
    %62 = vector.broadcast %cst_27 : f32 to vector<2x128xf32>
    %63 = arith.select %61, %58, %62 : vector<2x128xi1>, vector<2x128xf32>
    %cst_28 = arith.constant dense<0xFF800000> : vector<2xf32>
    %64 = vector.multi_reduction <maximumf>, %63, %cst_28 [1] : vector<2x128xf32> to vector<2xf32>
    %65 = vector.shape_cast %64 : vector<2xf32> to vector<2x1xf32>
    %66 = vector.broadcast %65 : vector<2x1xf32> to vector<2x128xf32>
    %67 = arith.subf %63, %66 : vector<2x128xf32>
    %68 = math.exp %67 : vector<2x128xf32>
    %cst_29 = arith.constant dense<0.000000e+00> : vector<2xf32>
    %69 = vector.multi_reduction <add>, %68, %cst_29 [1] : vector<2x128xf32> to vector<2xf32>
    %70 = vector.shape_cast %69 : vector<2xf32> to vector<2x1xf32>
    %71 = vector.broadcast %70 : vector<2x1xf32> to vector<2x128xf32>
    %72 = arith.divf %68, %71 : vector<2x128xf32>
    %73 = vector.shape_cast %72 : vector<2x128xf32> to vector<2x1x128xf32>
    "tpu.trace_start"() <{level = 10 : i32, message = "bqt,btd->bqd"}> : () -> ()
    %cst_30 = arith.constant dense<0.000000e+00> : vector<2x1x128xf32>
    %74 = tpu.matmul %73, %53, %cst_30 {dimension_numbers = #tpu.dot_dimension_numbers<[2], [1], [1], [2], [0, 0, 0, 1, 1, 2], [0], [0]>} : vector<2x1x128xf32>, vector<2x128x128xf32>, vector<2x1x128xf32> -> vector<2x1x128xf32>
    "tpu.trace_stop"() : () -> ()
    %75 = vector.shape_cast %74 : vector<2x1x128xf32> to vector<2x128xf32>
    %c0_31 = arith.constant 0 : index
    %c0_32 = arith.constant 0 : index
    %76 = vector.load %arg24[%c0_31, %c0_32] : memref<2x128xf32, #tpu.memory_space<vmem>>, vector<2x128xf32>
    tpu.vector_store %arg24[%c0_31, %c0_32], %72 {strides = array<i32>} : memref<2x128xf32, #tpu.memory_space<vmem>>, vector<2x128xf32>,
    %77 = tpu.concatenate %5, %4 in 1 : vector<4x128xf32>, vector<4x128xf32> -> vector<4x256xf32>
    %78 = arith.truncf %77 : vector<4x256xf32> to vector<4x256xbf16>
    %c0_33 = arith.constant 0 : index
    %c0_34 = arith.constant 0 : index
    %79 = vector.load %arg14[%c0_33, %c0_34] : memref<256x1536xbf16, #tpu.memory_space<vmem>>, vector<256x1536xbf16>
    %cst_35 = arith.constant dense<0.000000e+00> : vector<4x1536xf32>
    %80 = tpu.matmul %78, %79, %cst_35 {dimension_numbers = #tpu.dot_dimension_numbers<[1], [0], [0], [1], [0, 0, 1, 1], [], []>} : vector<4x256xbf16>, vector<256x1536xbf16>, vector<4x1536xf32> -> vector<4x1536xf32>
    %c0_36 = arith.constant 0 : index
    %c0_37 = arith.constant 0 : index
    %81 = vector.load %arg15[%c0_36, %c0_37] : memref<1x1536xf32, #tpu.memory_space<vmem>>, vector<1x1536xf32>
    %82 = vector.broadcast %81 : vector<1x1536xf32> to vector<4x1536xf32>
    %83 = arith.addf %80, %82 : vector<4x1536xf32>
    %84 = tpu.concatenate %75, %1, %52 in 1 : vector<2x128xf32>, vector<2x128xf32>, vector<2x128xf32> -> vector<2x384xf32>
    %85 = arith.truncf %84 : vector<2x384xf32> to vector<2x384xbf16>
    %c0_38 = arith.constant 0 : index
    %c0_39 = arith.constant 0 : index
    %86 = vector.load %arg12[%c0_38, %c0_39] : memref<384x768xbf16, #tpu.memory_space<vmem>>, vector<384x768xbf16>
    %cst_40 = arith.constant dense<0.000000e+00> : vector<2x768xf32>
    %87 = tpu.matmul %85, %86, %cst_40 {dimension_numbers = #tpu.dot_dimension_numbers<[1], [0], [0], [1], [0, 0, 1, 1], [], []>} : vector<2x384xbf16>, vector<384x768xbf16>, vector<2x768xf32> -> vector<2x768xf32>
    %c0_41 = arith.constant 0 : index
    %c0_42 = arith.constant 0 : index
    %88 = vector.load %arg13[%c0_41, %c0_42] : memref<1x768xf32, #tpu.memory_space<vmem>>, vector<1x768xf32>
    %89 = vector.broadcast %88 : vector<1x768xf32> to vector<2x768xf32>
    %90 = arith.addf %87, %89 : vector<2x768xf32>
    %91 = tpu.concatenate %90, %90 in 0 : vector<2x768xf32>, vector<2x768xf32> -> vector<4x768xf32>
    %92 = vector.extract_strided_slice %91 {offsets = [0, 0], sizes = [4, 384], strides = [1, 1]} : vector<4x768xf32> to vector<4x384xf32>
    %93 = vector.extract_strided_slice %83 {offsets = [0, 0], sizes = [4, 384], strides = [1, 1]} : vector<4x1536xf32> to vector<4x384xf32>
    %94 = vector.extract_strided_slice %92 {offsets = [0, 0], sizes = [4, 128], strides = [1, 1]} : vector<4x384xf32> to vector<4x128xf32>
    %95 = vector.extract_strided_slice %93 {offsets = [0, 0], sizes = [4, 128], strides = [1, 1]} : vector<4x384xf32> to vector<4x128xf32>
    %96 = arith.addf %94, %95 : vector<4x128xf32>
    %97 = arith.negf %96 : vector<4x128xf32>
    %98 = math.exp %97 : vector<4x128xf32>
    %cst_43 = arith.constant 1.000000e+00 : f32
    %99 = vector.broadcast %cst_43 : f32 to vector<4x128xf32>
    %100 = arith.addf %99, %98 : vector<4x128xf32>
    %101 = arith.divf %99, %100 : vector<4x128xf32>
    %102 = vector.extract_strided_slice %92 {offsets = [0, 128], sizes = [4, 128], strides = [1, 1]} : vector<4x384xf32> to vector<4x128xf32>
    %103 = vector.extract_strided_slice %93 {offsets = [0, 128], sizes = [4, 128], strides = [1, 1]} : vector<4x384xf32> to vector<4x128xf32>
    %104 = arith.addf %102, %103 : vector<4x128xf32>
    %105 = arith.negf %104 : vector<4x128xf32>
    %106 = math.exp %105 : vector<4x128xf32>
    %cst_44 = arith.constant 1.000000e+00 : f32
    %107 = vector.broadcast %cst_44 : f32 to vector<4x128xf32>
    %108 = arith.addf %107, %106 : vector<4x128xf32>
    %109 = arith.divf %107, %108 : vector<4x128xf32>
    %110 = vector.extract_strided_slice %92 {offsets = [0, 256], sizes = [4, 128], strides = [1, 1]} : vector<4x384xf32> to vector<4x128xf32>
    %111 = vector.extract_strided_slice %93 {offsets = [0, 256], sizes = [4, 128], strides = [1, 1]} : vector<4x384xf32> to vector<4x128xf32>
    %112 = arith.mulf %101, %111 : vector<4x128xf32>
    %113 = arith.addf %110, %112 : vector<4x128xf32>
    %114 = math.tanh %113 : vector<4x128xf32>
    %cst_45 = arith.constant 1.000000e+00 : f32
    %115 = vector.broadcast %cst_45 : f32 to vector<4x128xf32>
    %116 = arith.subf %115, %109 : vector<4x128xf32>
    %117 = arith.mulf %116, %114 : vector<4x128xf32>
    %118 = arith.mulf %109, %5 : vector<4x128xf32>
    %119 = arith.addf %117, %118 : vector<4x128xf32>
    %120 = vector.extract_strided_slice %91 {offsets = [0, 384], sizes = [4, 384], strides = [1, 1]} : vector<4x768xf32> to vector<4x384xf32>
    %121 = vector.extract_strided_slice %83 {offsets = [0, 384], sizes = [4, 384], strides = [1, 1]} : vector<4x1536xf32> to vector<4x384xf32>
    %122 = vector.extract_strided_slice %120 {offsets = [0, 0], sizes = [4, 128], strides = [1, 1]} : vector<4x384xf32> to vector<4x128xf32>
    %123 = vector.extract_strided_slice %121 {offsets = [0, 0], sizes = [4, 128], strides = [1, 1]} : vector<4x384xf32> to vector<4x128xf32>
    %124 = arith.addf %122, %123 : vector<4x128xf32>
    %125 = arith.negf %124 : vector<4x128xf32>
    %126 = math.exp %125 : vector<4x128xf32>
    %cst_46 = arith.constant 1.000000e+00 : f32
    %127 = vector.broadcast %cst_46 : f32 to vector<4x128xf32>
    %128 = arith.addf %127, %126 : vector<4x128xf32>
    %129 = arith.divf %127, %128 : vector<4x128xf32>
    %130 = vector.extract_strided_slice %120 {offsets = [0, 128], sizes = [4, 128], strides = [1, 1]} : vector<4x384xf32> to vector<4x128xf32>
    %131 = vector.extract_strided_slice %121 {offsets = [0, 128], sizes = [4, 128], strides = [1, 1]} : vector<4x384xf32> to vector<4x128xf32>
    %132 = arith.addf %130, %131 : vector<4x128xf32>
    %133 = arith.negf %132 : vector<4x128xf32>
    %134 = math.exp %133 : vector<4x128xf32>
    %cst_47 = arith.constant 1.000000e+00 : f32
    %135 = vector.broadcast %cst_47 : f32 to vector<4x128xf32>
    %136 = arith.addf %135, %134 : vector<4x128xf32>
    %137 = arith.divf %135, %136 : vector<4x128xf32>
    %138 = vector.extract_strided_slice %120 {offsets = [0, 256], sizes = [4, 128], strides = [1, 1]} : vector<4x384xf32> to vector<4x128xf32>
    %139 = vector.extract_strided_slice %121 {offsets = [0, 256], sizes = [4, 128], strides = [1, 1]} : vector<4x384xf32> to vector<4x128xf32>
    %140 = arith.mulf %129, %139 : vector<4x128xf32>
    %141 = arith.addf %138, %140 : vector<4x128xf32>
    %142 = math.tanh %141 : vector<4x128xf32>
    %cst_48 = arith.constant 1.000000e+00 : f32
    %143 = vector.broadcast %cst_48 : f32 to vector<4x128xf32>
    %144 = arith.subf %143, %137 : vector<4x128xf32>
    %145 = arith.mulf %144, %142 : vector<4x128xf32>
    %146 = arith.mulf %137, %4 : vector<4x128xf32>
    %147 = arith.addf %145, %146 : vector<4x128xf32>
    %148 = vector.broadcast %2 : vector<4x1xf32> to vector<4x128xf32>
    %149 = arith.mulf %119, %148 : vector<4x128xf32>
    %150 = vector.extract_strided_slice %149 {offsets = [0, 0], sizes = [2, 128], strides = [1, 1]} : vector<4x128xf32> to vector<2x128xf32>
    %151 = vector.extract_strided_slice %149 {offsets = [2, 0], sizes = [2, 128], strides = [1, 1]} : vector<4x128xf32> to vector<2x128xf32>
    %152 = arith.addf %150, %151 : vector<2x128xf32>
    %153 = vector.broadcast %2 : vector<4x1xf32> to vector<4x128xf32>
    %154 = arith.mulf %147, %153 : vector<4x128xf32>
    %155 = vector.extract_strided_slice %154 {offsets = [0, 0], sizes = [2, 128], strides = [1, 1]} : vector<4x128xf32> to vector<2x128xf32>
    %156 = vector.extract_strided_slice %154 {offsets = [2, 0], sizes = [2, 128], strides = [1, 1]} : vector<4x128xf32> to vector<2x128xf32>
    %157 = arith.addf %155, %156 : vector<2x128xf32>
    %158 = tpu.concatenate %152, %1, %157 in 1 : vector<2x128xf32>, vector<2x128xf32>, vector<2x128xf32> -> vector<2x384xf32>
    %159 = arith.truncf %158 : vector<2x384xf32> to vector<2x384xbf16>
    %c0_49 = arith.constant 0 : index
    %c0_50 = arith.constant 0 : index
    %160 = vector.load %arg16[%c0_49, %c0_50] : memref<384x768xbf16, #tpu.memory_space<vmem>>, vector<384x768xbf16>
    %cst_51 = arith.constant dense<0.000000e+00> : vector<2x768xf32>
    %161 = tpu.matmul %159, %160, %cst_51 {dimension_numbers = #tpu.dot_dimension_numbers<[1], [0], [0], [1], [0, 0, 1, 1], [], []>} : vector<2x384xbf16>, vector<384x768xbf16>, vector<2x768xf32> -> vector<2x768xf32>
    %c0_52 = arith.constant 0 : index
    %c0_53 = arith.constant 0 : index
    %162 = vector.load %arg17[%c0_52, %c0_53] : memref<1x768xf32, #tpu.memory_space<vmem>>, vector<1x768xf32>
    %163 = vector.broadcast %162 : vector<1x768xf32> to vector<2x768xf32>
    %164 = arith.addf %161, %163 : vector<2x768xf32>
    %165 = tpu.concatenate %164, %164 in 0 : vector<2x768xf32>, vector<2x768xf32> -> vector<4x768xf32>
    %166 = vector.extract_strided_slice %165 {offsets = [0, 0], sizes = [4, 384], strides = [1, 1]} : vector<4x768xf32> to vector<4x384xf32>
    %167 = vector.extract_strided_slice %83 {offsets = [0, 768], sizes = [4, 384], strides = [1, 1]} : vector<4x1536xf32> to vector<4x384xf32>
    %168 = vector.extract_strided_slice %166 {offsets = [0, 0], sizes = [4, 128], strides = [1, 1]} : vector<4x384xf32> to vector<4x128xf32>
    %169 = vector.extract_strided_slice %167 {offsets = [0, 0], sizes = [4, 128], strides = [1, 1]} : vector<4x384xf32> to vector<4x128xf32>
    %170 = arith.addf %168, %169 : vector<4x128xf32>
    %171 = arith.negf %170 : vector<4x128xf32>
    %172 = math.exp %171 : vector<4x128xf32>
    %cst_54 = arith.constant 1.000000e+00 : f32
    %173 = vector.broadcast %cst_54 : f32 to vector<4x128xf32>
    %174 = arith.addf %173, %172 : vector<4x128xf32>
    %175 = arith.divf %173, %174 : vector<4x128xf32>
    %176 = vector.extract_strided_slice %166 {offsets = [0, 128], sizes = [4, 128], strides = [1, 1]} : vector<4x384xf32> to vector<4x128xf32>
    %177 = vector.extract_strided_slice %167 {offsets = [0, 128], sizes = [4, 128], strides = [1, 1]} : vector<4x384xf32> to vector<4x128xf32>
    %178 = arith.addf %176, %177 : vector<4x128xf32>
    %179 = arith.negf %178 : vector<4x128xf32>
    %180 = math.exp %179 : vector<4x128xf32>
    %cst_55 = arith.constant 1.000000e+00 : f32
    %181 = vector.broadcast %cst_55 : f32 to vector<4x128xf32>
    %182 = arith.addf %181, %180 : vector<4x128xf32>
    %183 = arith.divf %181, %182 : vector<4x128xf32>
    %184 = vector.extract_strided_slice %166 {offsets = [0, 256], sizes = [4, 128], strides = [1, 1]} : vector<4x384xf32> to vector<4x128xf32>
    %185 = vector.extract_strided_slice %167 {offsets = [0, 256], sizes = [4, 128], strides = [1, 1]} : vector<4x384xf32> to vector<4x128xf32>
    %186 = arith.mulf %175, %185 : vector<4x128xf32>
    %187 = arith.addf %184, %186 : vector<4x128xf32>
    %188 = math.tanh %187 : vector<4x128xf32>
    %cst_56 = arith.constant 1.000000e+00 : f32
    %189 = vector.broadcast %cst_56 : f32 to vector<4x128xf32>
    %190 = arith.subf %189, %183 : vector<4x128xf32>
    %191 = arith.mulf %190, %188 : vector<4x128xf32>
    %192 = arith.mulf %183, %5 : vector<4x128xf32>
    %193 = arith.addf %191, %192 : vector<4x128xf32>
    %194 = vector.extract_strided_slice %165 {offsets = [0, 384], sizes = [4, 384], strides = [1, 1]} : vector<4x768xf32> to vector<4x384xf32>
    %195 = vector.extract_strided_slice %83 {offsets = [0, 1152], sizes = [4, 384], strides = [1, 1]} : vector<4x1536xf32> to vector<4x384xf32>
    %196 = vector.extract_strided_slice %194 {offsets = [0, 0], sizes = [4, 128], strides = [1, 1]} : vector<4x384xf32> to vector<4x128xf32>
    %197 = vector.extract_strided_slice %195 {offsets = [0, 0], sizes = [4, 128], strides = [1, 1]} : vector<4x384xf32> to vector<4x128xf32>
    %198 = arith.addf %196, %197 : vector<4x128xf32>
    %199 = arith.negf %198 : vector<4x128xf32>
    %200 = math.exp %199 : vector<4x128xf32>
    %cst_57 = arith.constant 1.000000e+00 : f32
    %201 = vector.broadcast %cst_57 : f32 to vector<4x128xf32>
    %202 = arith.addf %201, %200 : vector<4x128xf32>
    %203 = arith.divf %201, %202 : vector<4x128xf32>
    %204 = vector.extract_strided_slice %194 {offsets = [0, 128], sizes = [4, 128], strides = [1, 1]} : vector<4x384xf32> to vector<4x128xf32>
    %205 = vector.extract_strided_slice %195 {offsets = [0, 128], sizes = [4, 128], strides = [1, 1]} : vector<4x384xf32> to vector<4x128xf32>
    %206 = arith.addf %204, %205 : vector<4x128xf32>
    %207 = arith.negf %206 : vector<4x128xf32>
    %208 = math.exp %207 : vector<4x128xf32>
    %cst_58 = arith.constant 1.000000e+00 : f32
    %209 = vector.broadcast %cst_58 : f32 to vector<4x128xf32>
    %210 = arith.addf %209, %208 : vector<4x128xf32>
    %211 = arith.divf %209, %210 : vector<4x128xf32>
    %212 = vector.extract_strided_slice %194 {offsets = [0, 256], sizes = [4, 128], strides = [1, 1]} : vector<4x384xf32> to vector<4x128xf32>
    %213 = vector.extract_strided_slice %195 {offsets = [0, 256], sizes = [4, 128], strides = [1, 1]} : vector<4x384xf32> to vector<4x128xf32>
    %214 = arith.mulf %203, %213 : vector<4x128xf32>
    %215 = arith.addf %212, %214 : vector<4x128xf32>
    %216 = math.tanh %215 : vector<4x128xf32>
    %cst_59 = arith.constant 1.000000e+00 : f32
    %217 = vector.broadcast %cst_59 : f32 to vector<4x128xf32>
    %218 = arith.subf %217, %211 : vector<4x128xf32>
    %219 = arith.mulf %218, %216 : vector<4x128xf32>
    %220 = arith.mulf %211, %4 : vector<4x128xf32>
    %221 = arith.addf %219, %220 : vector<4x128xf32>
    %222 = vector.broadcast %3 : vector<4x1xf32> to vector<4x128xf32>
    %223 = arith.mulf %221, %222 : vector<4x128xf32>
    %cst_60 = arith.constant 1.000000e+00 : f32
    %224 = vector.broadcast %cst_60 : f32 to vector<4x1xf32>
    %225 = arith.subf %224, %3 : vector<4x1xf32>
    %226 = vector.broadcast %225 : vector<4x1xf32> to vector<4x128xf32>
    %227 = arith.mulf %147, %226 : vector<4x128xf32>
    %228 = arith.addf %223, %227 : vector<4x128xf32>
    %229 = vector.broadcast %3 : vector<4x1xf32> to vector<4x128xf32>
    %230 = arith.mulf %119, %229 : vector<4x128xf32>
    %cst_61 = arith.constant 1.000000e+00 : f32
    %231 = vector.broadcast %cst_61 : f32 to vector<4x1xf32>
    %232 = arith.subf %231, %3 : vector<4x1xf32>
    %233 = vector.broadcast %232 : vector<4x1xf32> to vector<4x128xf32>
    %234 = arith.mulf %193, %233 : vector<4x128xf32>
    %235 = arith.addf %230, %234 : vector<4x128xf32>
    %236 = vector.broadcast %2 : vector<4x1xf32> to vector<4x128xf32>
    %237 = arith.mulf %228, %236 : vector<4x128xf32>
    %238 = vector.extract_strided_slice %237 {offsets = [0, 0], sizes = [2, 128], strides = [1, 1]} : vector<4x128xf32> to vector<2x128xf32>
    %239 = vector.extract_strided_slice %237 {offsets = [2, 0], sizes = [2, 128], strides = [1, 1]} : vector<4x128xf32> to vector<2x128xf32>
    %240 = arith.addf %238, %239 : vector<2x128xf32>
    %241 = tpu.concatenate %1, %240, %52, %6 in 1 : vector<2x128xf32>, vector<2x128xf32>, vector<2x128xf32>, vector<2x128xf32> -> vector<2x512xf32>
    %242 = arith.truncf %241 : vector<2x512xf32> to vector<2x512xbf16>
    %c0_62 = arith.constant 0 : index
    %c0_63 = arith.constant 0 : index
    %243 = vector.load %arg18[%c0_62, %c0_63] : memref<512x768xbf16, #tpu.memory_space<vmem>>, vector<512x768xbf16>
    %cst_64 = arith.constant dense<0.000000e+00> : vector<2x768xf32>
    %244 = tpu.matmul %242, %243, %cst_64 {dimension_numbers = #tpu.dot_dimension_numbers<[1], [0], [0], [1], [0, 0, 1, 1], [], []>} : vector<2x512xbf16>, vector<512x768xbf16>, vector<2x768xf32> -> vector<2x768xf32>
    %c0_65 = arith.constant 0 : index
    %c0_66 = arith.constant 0 : index
    %245 = vector.load %arg19[%c0_65, %c0_66] : memref<1x768xf32, #tpu.memory_space<vmem>>, vector<1x768xf32>
    %246 = vector.broadcast %245 : vector<1x768xf32> to vector<2x768xf32>
    %247 = arith.addf %244, %246 : vector<2x768xf32>
    %248 = vector.extract_strided_slice %247 {offsets = [0, 0], sizes = [2, 384], strides = [1, 1]} : vector<2x768xf32> to vector<2x384xf32>
    %249 = vector.extract_strided_slice %247 {offsets = [0, 384], sizes = [2, 384], strides = [1, 1]} : vector<2x768xf32> to vector<2x384xf32>
    %250 = vector.extract_strided_slice %248 {offsets = [0, 0], sizes = [2, 128], strides = [1, 1]} : vector<2x384xf32> to vector<2x128xf32>
    %251 = vector.extract_strided_slice %249 {offsets = [0, 0], sizes = [2, 128], strides = [1, 1]} : vector<2x384xf32> to vector<2x128xf32>
    %252 = arith.addf %250, %251 : vector<2x128xf32>
    %253 = arith.negf %252 : vector<2x128xf32>
    %254 = math.exp %253 : vector<2x128xf32>
    %cst_67 = arith.constant 1.000000e+00 : f32
    %255 = vector.broadcast %cst_67 : f32 to vector<2x128xf32>
    %256 = arith.addf %255, %254 : vector<2x128xf32>
    %257 = arith.divf %255, %256 : vector<2x128xf32>
    %258 = vector.extract_strided_slice %248 {offsets = [0, 128], sizes = [2, 128], strides = [1, 1]} : vector<2x384xf32> to vector<2x128xf32>
    %259 = vector.extract_strided_slice %249 {offsets = [0, 128], sizes = [2, 128], strides = [1, 1]} : vector<2x384xf32> to vector<2x128xf32>
    %260 = arith.addf %258, %259 : vector<2x128xf32>
    %261 = arith.negf %260 : vector<2x128xf32>
    %262 = math.exp %261 : vector<2x128xf32>
    %cst_68 = arith.constant 1.000000e+00 : f32
    %263 = vector.broadcast %cst_68 : f32 to vector<2x128xf32>
    %264 = arith.addf %263, %262 : vector<2x128xf32>
    %265 = arith.divf %263, %264 : vector<2x128xf32>
    %266 = vector.extract_strided_slice %248 {offsets = [0, 256], sizes = [2, 128], strides = [1, 1]} : vector<2x384xf32> to vector<2x128xf32>
    %267 = vector.extract_strided_slice %249 {offsets = [0, 256], sizes = [2, 128], strides = [1, 1]} : vector<2x384xf32> to vector<2x128xf32>
    %268 = arith.mulf %257, %267 : vector<2x128xf32>
    %269 = arith.addf %266, %268 : vector<2x128xf32>
    %270 = math.tanh %269 : vector<2x128xf32>
    %cst_69 = arith.constant 1.000000e+00 : f32
    %271 = vector.broadcast %cst_69 : f32 to vector<2x128xf32>
    %272 = arith.subf %271, %265 : vector<2x128xf32>
    %273 = arith.mulf %272, %270 : vector<2x128xf32>
    %274 = arith.mulf %265, %6 : vector<2x128xf32>
    %275 = arith.addf %273, %274 : vector<2x128xf32>
    %c0_70 = arith.constant 0 : index
    %c0_71 = arith.constant 0 : index
    %276 = vector.load %arg20[%c0_70, %c0_71] : memref<2x128xf32, #tpu.memory_space<vmem>>, vector<2x128xf32>
    tpu.vector_store %arg20[%c0_70, %c0_71], %52 {strides = array<i32>} : memref<2x128xf32, #tpu.memory_space<vmem>>, vector<2x128xf32>,
    %c0_72 = arith.constant 0 : index
    %c0_73 = arith.constant 0 : index
    %277 = vector.load %arg21[%c0_72, %c0_73] : memref<4x128xf32, #tpu.memory_space<vmem>>, vector<4x128xf32>
    tpu.vector_store %arg21[%c0_72, %c0_73], %228 {strides = array<i32>} : memref<4x128xf32, #tpu.memory_space<vmem>>, vector<4x128xf32>,
    %c0_74 = arith.constant 0 : index
    %c0_75 = arith.constant 0 : index
    %278 = vector.load %arg22[%c0_74, %c0_75] : memref<4x128xf32, #tpu.memory_space<vmem>>, vector<4x128xf32>
    tpu.vector_store %arg22[%c0_74, %c0_75], %235 {strides = array<i32>} : memref<4x128xf32, #tpu.memory_space<vmem>>, vector<4x128xf32>,
    %c0_76 = arith.constant 0 : index
    %c0_77 = arith.constant 0 : index
    %279 = vector.load %arg23[%c0_76, %c0_77] : memref<2x128xf32, #tpu.memory_space<vmem>>, vector<2x128xf32>
    tpu.vector_store %arg23[%c0_76, %c0_77], %275 {strides = array<i32>} : memref<2x128xf32, #tpu.memory_space<vmem>>, vector<2x128xf32>,
    return
  }
}

</mosaic_0001>

<bundles_post_ra>
// kernel: emotion_gru_cell_forward.1
= control target key start
LH: loop header
LB: loop body
LE: loop exit
PB: predicated region body
PF: predicated region fallthrough
CT: control target
= control target key end

     0   :  { %s11367_s0 = inlined_call_operand.<no memory space> [shape: s32[1], index: 0, kind: input, shape index: {}]   ;;  %s11368_s1 = inlined_call_operand.vmem [shape: f32[2,128], index: 1, kind: input, shape index: {}]   ;;  %s11369_s2 = inlined_call_operand.vmem [shape: f32[4,1], index: 2, kind: input, shape index: {}]   ;;  %s11370_s3 = inlined_call_operand.vmem [shape: f32[4,1], index: 3, kind: input, shape index: {}]   ;;  %s11371_s4 = inlined_call_operand.vmem [shape: f32[4,128], index: 4, kind: input, shape index: {}]   ;;  %s11372_s5 = inlined_call_operand.vmem [shape: f32[4,128], index: 5, kind: input, shape index: {}]   ;;  %s11373_s6 = inlined_call_operand.vmem [shape: f32[2,128], index: 6, kind: input, shape index: {}]   ;;  %s11374_s7 = inlined_call_operand.vmem [shape: f32[2,128], index: 7, kind: input, shape index: {}]   ;;  %s11375_s8 = inlined_call_operand.vmem [shape: f32[2,128,128], index: 8, kind: input, shape index: {}]   ;;  %s11376_s9 = inlined_call_operand.vmem [shape: f32[1,128], index: 9, kind: input, shape index: {}]   ;;  %s11377_s10 = inlined_call_operand.hbm [shape: bf16[512,768], index: 10, kind: input, shape index: {}]   ;;  %s11378_s11 = inlined_call_operand.vmem [shape: f32[1,768], index: 11, kind: input, shape index: {}]   ;;  %s11379_s12 = inlined_call_operand.hbm [shape: bf16[384,768], index: 12, kind: input, shape index: {}]   ;;  %s11380_s13 = inlined_call_operand.vmem [shape: f32[1,768], index: 13, kind: input, shape index: {}]   ;;  %s11381_s14 = inlined_call_operand.hbm [shape: bf16[256,1536], index: 14, kind: input, shape index: {}]   ;;  %s11382_s15 = inlined_call_operand.vmem [shape: f32[1,1536], index: 15, kind: input, shape index: {}]   ;;  %s11383_s16 = inlined_call_operand.hbm [shape: bf16[384,768], index: 16, kind: input, shape index: {}]   ;;  %s11384_s17 = inlined_call_operand.vmem [shape: f32[1,768], index: 17, kind: input, shape index: {}]   ;;  %s11385_s18 = inlined_call_operand.hbm [shape: bf16[512,768], index: 18, kind: input, shape index: {}]   ;;  %s11386_s19 = inlined_call_operand.vmem [shape: f32[1,768], index: 19, kind: input, shape index: {}]   ;;  %s11387_s20 = inlined_call_operand.hbm [shape: f32[2,128], index: 20, kind: output, shape index: {0}]   ;;  %s11388_s21 = inlined_call_operand.vmem [shape: f32[4,128], index: 21, kind: output, shape index: {1}]   ;;  %s11389_s22 = inlined_call_operand.vmem [shape: f32[4,128], index: 22, kind: output, shape index: {2}]   ;;  %s11390_s23 = inlined_call_operand.hbm [shape: f32[2,128], index: 23, kind: output, shape index: {3}]   ;;  %s11391_s24 = inlined_call_operand.hbm [shape: f32[2,128], index: 24, kind: output, shape index: {4}]  }
   0x1   :  { %11416 = sst [smem:[#allocation39_spill]] %s11367_s0 }
   0x2   :  { %11417 = sst [smem:[#allocation40_spill]] %s11368_s1 }
   0x3   :  { %11418 = sst [smem:[#allocation41_spill]] %s11369_s2 }
   0x4   :  { %11419 = sst [smem:[#allocation42_spill]] %s11370_s3 }
   0x5   :  { %11420 = sst [smem:[#allocation43_spill]] %s11371_s4 }
   0x6   :  { %11421 = sst [smem:[#allocation44_spill]] %s11372_s5 }
   0x7   :  { %11422 = sst [smem:[#allocation45_spill]] %s11373_s6 }
   0x8   :  { %11423 = sst [smem:[#allocation46_spill]] %s11374_s7 }
   0x9   :  { %11424 = sst [smem:[#allocation47_spill]] %s11375_s8 }
   0xa   :  { %31 = vsyncpa [#allocation4], 0 }
   0xb   :  { %32 = vsyncpa [#allocation7], 0 }
   0xc   :  { %33 = vsyncpa [#allocation10], 0 }
   0xd   :  { %34 = vsyncpa [#allocation5], 0 }
   0xe   :  { %35 = vsyncpa [#allocation14], 0  ;;  %s10251_s5 = smov [#allocation6]   ;;  %s10252_s27 = smov [#allocation9]  }
   0xf   :  { %s75_s26 = sshll.u32 %s10251_s5, 4  ;;  %s103_s28 = sshll.u32 %s10252_s27, 4  ;;  %s76_s26 = int_to_ptr.vmem [resolvable:$true] %s75_s26  ;;  %s10393_s28 = int_to_ptr.vmem [resolvable:$true] %s103_s28 }
  0x10   :  { %s10065_s29 = scalar_lea.hbm %s11379_s12, 18432 }
  0x11   :  { %p10066_p0 = scmp.ne.s32.totalorder %s11379_s12, %s10065_s29  ;;  %p10069_p1 = scmp.lt.u32.totalorder %s10065_s29, %s11379_s12 }
  0x13   :  { %p10071_p2 = pnand %p10069_p1, %p10066_p0 }
  0x15   :  { %10074 = shalt.err (!%p10071_p2)
}
  0x16   :  { %s10075_s25 = scalar_lea.vmem %s76_s26, 18432  ;;  %p10080_p4 = scmp.lt.s32.totalorder %s76_s26, %s76_s26 }
  0x17   :  { %p10076_p3 = scmp.ne.s32.totalorder %s76_s26, %s10075_s25  ;;  %p10081_p5 = scmp.lt.s32.totalorder %s10075_s25, %s10075_s25 }
  0x19   :  { %p10082_p6 = por %p10081_p5, %p10080_p4 }
  0x1b   :  { %p10083_p7 = pnand %p10082_p6, %p10076_p3 }
  0x1d   :  { %10086 = shalt.err (!%p10083_p7)
}
  0x1e   :  { %s10253_s8 = smov 384   ;;  %s10254_s4 = smov 24  }
  0x1f   :  { %81 = dma.hbm_to_vmem [thread:$0]  %s11379_s12, 18432, %s76_s26, [#allocation7], %s10253_s8, %s10253_s8, %s10254_s4  }
  0x20   :  { %s10087_s2 = scalar_lea.hbm %s11383_s16, 18432 }
  0x21   :  { %p10088_p8 = scmp.ne.s32.totalorder %s11383_s16, %s10087_s2  ;;  %p10091_p9 = scmp.lt.u32.totalorder %s10087_s2, %s11383_s16 }
  0x23   :  { %p10093_p10 = pnand %p10091_p9, %p10088_p8 }
  0x25   :  { %10096 = shalt.err (!%p10093_p10)
}
  0x26   :  { %s10097_s3 = scalar_lea.vmem %s10393_s28, 18432  ;;  %p10102_p12 = scmp.lt.s32.totalorder %s10393_s28, %s10393_s28 }
  0x27   :  { %p10098_p11 = scmp.ne.s32.totalorder %s10393_s28, %s10097_s3  ;;  %p10103_p13 = scmp.lt.s32.totalorder %s10097_s3, %s10097_s3 }
  0x29   :  { %p10104_p0 = por %p10103_p13, %p10102_p12 }
  0x2b   :  { %p10105_p1 = pnand %p10104_p0, %p10098_p11 }
  0x2d   :  { %10108 = shalt.err (!%p10105_p1)
}
  0x2e   :  { %109 = dma.hbm_to_vmem [thread:$0]  %s11383_s16, 18432, %s10393_s28, [#allocation10], %s10253_s8, %s10253_s8, %s10254_s4  }
  0x2f   :  { %s10255_s25 = smov [#allocation3]   ;;  %s10256_s5 = smov [#allocation8]  }
  0x30   :  { %s61_s1 = sshll.u32 %s10255_s25, 4  ;;  %s89_s27 = sshll.u32 %s10256_s5, 4  ;;  %s62_s1 = int_to_ptr.vmem [resolvable:$true] %s61_s1  ;;  %s10430_s27 = int_to_ptr.vmem [resolvable:$true] %s89_s27 }
  0x31   :  { %s10109_s29 = scalar_lea.hbm %s11377_s10, 24576 }
  0x32   :  { %p10110_p2 = scmp.ne.s32.totalorder %s11377_s10, %s10109_s29  ;;  %p10113_p3 = scmp.lt.u32.totalorder %s10109_s29, %s11377_s10 }
  0x34   :  { %p10115_p4 = pnand %p10113_p3, %p10110_p2 }
  0x36   :  { %10118 = shalt.err (!%p10115_p4)
}
  0x37   :  { %s10119_s16 = scalar_lea.vmem %s62_s1, 24576  ;;  %p10124_p6 = scmp.lt.s32.totalorder %s62_s1, %s62_s1 }
  0x38   :  { %p10120_p5 = scmp.ne.s32.totalorder %s62_s1, %s10119_s16  ;;  %p10125_p7 = scmp.lt.s32.totalorder %s10119_s16, %s10119_s16 }
  0x3a   :  { %p10126_p8 = por %p10125_p7, %p10124_p6 }
  0x3c   :  { %p10127_p9 = pnand %p10126_p8, %p10120_p5 }
  0x3e   :  { %10130 = shalt.err (!%p10127_p9)
}
  0x3f   :  { %67 = dma.hbm_to_vmem [thread:$0]  %s11377_s10, 24576, %s62_s1, [#allocation4], %s10253_s8, %s10253_s8, %s10254_s4  }
  0x40   :  { %s10131_s5 = scalar_lea.hbm %s11381_s14, 24576 }
  0x41   :  { %p10132_p10 = scmp.ne.s32.totalorder %s11381_s14, %s10131_s5  ;;  %p10135_p11 = scmp.lt.u32.totalorder %s10131_s5, %s11381_s14 }
  0x43   :  { %p10137_p12 = pnand %p10135_p11, %p10132_p10 }
  0x45   :  { %10140 = shalt.err (!%p10137_p12)
}
  0x46   :  { %s10141_s7 = scalar_lea.vmem %s10430_s27, 24576  ;;  %p10146_p0 = scmp.lt.s32.totalorder %s10430_s27, %s10430_s27 }
  0x47   :  { %p10142_p13 = scmp.ne.s32.totalorder %s10430_s27, %s10141_s7  ;;  %p10147_p1 = scmp.lt.s32.totalorder %s10141_s7, %s10141_s7 }
  0x49   :  { %p10148_p2 = por %p10147_p1, %p10146_p0 }
  0x4b   :  { %p10149_p3 = pnand %p10148_p2, %p10142_p13 }
  0x4d   :  { %10152 = shalt.err (!%p10149_p3)
}
  0x4e   :  { %s10257_s10 = smov 768   ;;  %s10258_s1 = smov 48  }
  0x4f   :  { %95 = dma.hbm_to_vmem [thread:$0]  %s11381_s14, 24576, %s10430_s27, [#allocation7], %s10257_s10, %s10257_s10, %s10258_s1  }
  0x50   :  { %s10259_s16 = smov [#allocation11]   ;;  %s10153_s25 = scalar_lea.hbm %s11385_s18, 24576 }
  0x51   :  { %s117_s28 = sshll.u32 %s10259_s16, 4  ;;  %p10154_p4 = scmp.ne.s32.totalorder %s11385_s18, %s10153_s25  ;;  %s118_s28 = int_to_ptr.vmem [resolvable:$true] %s117_s28 }
  0x52   :  { %p10157_p5 = scmp.lt.u32.totalorder %s10153_s25, %s11385_s18 }
  0x54   :  { %p10159_p6 = pnand %p10157_p5, %p10154_p4 }
  0x56   :  { %10162 = shalt.err (!%p10159_p6)
}
  0x57   :  { %s10163_s0 = scalar_lea.vmem %s118_s28, 24576  ;;  %p10168_p8 = scmp.lt.s32.totalorder %s118_s28, %s118_s28 }
  0x58   :  { %p10164_p7 = scmp.ne.s32.totalorder %s118_s28, %s10163_s0  ;;  %p10169_p9 = scmp.lt.s32.totalorder %s10163_s0, %s10163_s0 }
  0x5a   :  { %p10170_p10 = por %p10169_p9, %p10168_p8 }
  0x5c   :  { %p10171_p11 = pnand %p10170_p10, %p10164_p7 }
  0x5e   :  { %10174 = shalt.err (!%p10171_p11)
}
  0x5f   :  { %123 = dma.hbm_to_vmem [thread:$0]  %s11385_s18, 24576, %s118_s28, [#allocation10], %s10253_s8, %s10253_s8, %s10254_s4  }
  0x60   :  { %10241 = dma.done.wait [#allocation4], 24576  }
  0x61   :  { %10242 = vsyncadd [#allocation4], 4294942720 }
  0x62   :  { %10243 = dma.done.wait [#allocation7], 43008  }
  0x63   :  { %10244 = vsyncadd [#allocation7], 4294924288 }
  0x64   :  { %10245 = dma.done.wait [#allocation10], 43008  }
  0x65   :  { %10246 = vsyncadd [#allocation10], 4294924288  ;;  %v11396_v0 = vmov 0   ;;  %s11425_s1 = sld [smem:[#allocation47_spill]]  ;;  %v10494_v3 = vld [vmem:[%s11376_s9] ss:$0 sm:$0xff]  ;;  %v363_v57 = vlaneseq }
  0x66   :  { %8697 = vset.pattern.permute.xlu0 %v11396_v0  ;;  %8698 = vset.pattern.permute.xlu1 %v11396_v0  ;;  %s11444_s16 = sld [smem:[#allocation41_spill]]  ;;  %vm1800_vm0 = vcmask 130112   ;;  %vm1807_vm1 = vcmask 195712   ;;  %vm1814_vm2 = vcmask 261312   ;;  %vm1821_vm3 = vcmask 326912   ;;  %s11445_s9 = sld [smem:[#allocation39_spill]] }
  0x67   :  { %v10779_v47 = vand.u32 127, %v363_v57  ;;  %v10783_v33 = vshrl.u32 %v363_v57, 7  ;;  %vm1828_vm4 = vcmask 392512   ;;  %vm1835_vm5 = vcmask 458112   ;;  %s11446_s5 = sld [smem:[#allocation43_spill]]  ;;  %s11447_s29 = sld [smem:[#allocation44_spill]] }
  0x68   :  { %vm1842_vm6 = vcmask 523712   ;;  %vm1849_vm7 = vcmask 589312   ;;  %vm1856_vm8 = vcmask 654912   ;;  %vm1863_vm9 = vcmask 720512   ;;  %s11448_s27 = sld [smem:[#allocation46_spill]]  ;;  %s11449_s30 = sld [smem:[#allocation40_spill]] }
  0x69   :  { %v1795_v24 = vadd.s32 4294967288, %v10779_v47  ;;  %v1802_v19 = vadd.s32 4294967280, %v10779_v47  ;;  %v1809_v9 = vadd.s32 4294967272, %v10779_v47  ;;  %v1816_v52 = vadd.s32 4294967264, %v10779_v47  ;;  %s11485_s26 = sld [smem:[#allocation42_spill]]  ;;  %s11486_s4 = sld [smem:[#allocation45_spill]] }
  0x6a   :  { %v1793_v38 = vsub.s32 %v10779_v47, %v10783_v33  ;;  %v1823_v28 = vadd.s32 4294967256, %v10779_v47  ;;  %v1830_v14 = vadd.s32 4294967248, %v10779_v47  ;;  %vm1870_vm10 = vcmask 786112  }
  0x6b   :  { %v10484_v1 = vld [vmem:[%s11425_s1 + $0x80] sm:$0xff]  ;;  %v10489_v2 = vld [vmem:[%s11425_s1 + $0x88] sm:$0xff]  ;;  %v10517_v10 = vld [vmem:[%s11425_s1 + $0x90] sm:$0xff]  ;;  %v1798_v57 = vsub.s32 %v1795_v24, %v10783_v33  ;;  %v1805_v23 = vsub.s32 %v1802_v19, %v10783_v33  ;;  %v1812_v5 = vsub.s32 %v1809_v9, %v10783_v33  ;;  %v1858_v24 = vadd.s32 4294967216, %v10779_v47 }
  0x6c   :  { %v1675_v4 = vmul.f32 %v10494_v3, %v10484_v1  ;;  %v10503_v6 = vld [vmem:[%s11425_s1] sm:$0xff]  ;;  %v10508_v7 = vld [vmem:[%s11425_s1 + $0x8] sm:$0xff]  ;;  %v10522_v11 = vld [vmem:[%s11425_s1 + $0x10] sm:$0xff]  ;;  %v1676_v13 = vmul.f32 %v10494_v3, %v10489_v2  ;;  %v1677_v32 = vmul.f32 %v10494_v3, %v10517_v10  ;;  %v1826_v19 = vsub.s32 %v1823_v28, %v10783_v33 }
  0x6d   :  { %11426 = vst [vmem:[#allocation21_spill] sm:$0xff] %v10503_v6  ;;  %11427 = vst [vmem:[#allocation22_spill] sm:$0xff] %v10508_v7  ;;  %v1659_v8 = vmul.f32 %v10494_v3, %v10503_v6  ;;  %v10527_v12 = vld [vmem:[%s11425_s1 + $0x98] sm:$0xff]  ;;  %v10541_v16 = vld [vmem:[%s11425_s1 + $0xa0] sm:$0xff]  ;;  %v1660_v18 = vmul.f32 %v10494_v3, %v10508_v7  ;;  %v1661_v37 = vmul.f32 %v10494_v3, %v10522_v11  ;;  %v1865_v9 = vadd.s32 4294967208, %v10779_v47 }
  0x6e   :  { %11428 = vst [vmem:[#allocation23_spill] sm:$0xff] %v10522_v11  ;;  %1723 = vadd.xlane.f32.xlu1 %v1675_v4  ;;  %v10536_v15 = vld [vmem:[%s11425_s1 + $0x18] sm:$0xff]  ;;  %v10546_v17 = vld [vmem:[%s11425_s1 + $0x20] sm:$0xff]  ;;  %v10555_v20 = vld [vmem:[%s11425_s1 + $0xa8] sm:$0xff]  ;;  %v1678_v51 = vmul.f32 %v10494_v3, %v10527_v12  ;;  %v1679_v58 = vmul.f32 %v10494_v3, %v10541_v16  ;;  %v1886_v28 = vadd.s32 4294967184, %v10779_v47  ;;  %vm1877_vm11 = vcmask 851712  }
  0x6f   :  { %11429 = vst [vmem:[#allocation24_spill] sm:$0xff] %v10536_v15  ;;  %11430 = vst [vmem:[#allocation25_spill] sm:$0xff] %v10546_v17  ;;  %1691 = vadd.xlane.f32.xlu0 %v1659_v8  ;;  %v10560_v21 = vld [vmem:[%s11425_s1 + $0x28] sm:$0xff]  ;;  %v10565_v22 = vld [vmem:[%s11425_s1 + $0xb0] sm:$0xff]  ;;  %v1662_v55 = vmul.f32 %v10494_v3, %v10536_v15  ;;  %v1663_v59 = vmul.f32 %v10494_v3, %v10546_v17  ;;  %v1680_v60 = vmul.f32 %v10494_v3, %v10555_v20  ;;  %vm1884_vm12 = vcmask 917312  }
  0x70   :  { %11431 = vst [vmem:[#allocation26_spill] sm:$0xff] %v10560_v21  ;;  %v10574_v25 = vld [vmem:[%s11425_s1 + $0x30] sm:$0xff]  ;;  %v10579_v26 = vld [vmem:[%s11425_s1 + $0xb8] sm:$0xff]  ;;  %v10591_v29 = vld [vmem:[%s11425_s1 + $0xc0] sm:$0xff]  ;;  %v1664_v61 = vmul.f32 %v10494_v3, %v10560_v21  ;;  %v1681_v62 = vmul.f32 %v10494_v3, %v10565_v22  ;;  %v10834_v7 = vsub.s32 %v1865_v9, %v10783_v33  ;;  %vm1891_vm13 = vcmask 982912  }
  0x71   :  { %11432 = vst [vmem:[#allocation27_spill] sm:$0xff] %v10574_v25  ;;  %v10584_v27 = vld [vmem:[%s11425_s1 + $0x38] sm:$0xff]  ;;  %v10596_v30 = vld [vmem:[%s11425_s1 + $0x40] sm:$0xff]  ;;  %v10601_v31 = vld [vmem:[%s11425_s1 + $0xc8] sm:$0xff]  ;;  %v1665_v63 = vmul.f32 %v10494_v3, %v10574_v25  ;;  %v1682_v4 = vmul.f32 %v10494_v3, %v10579_v26  ;;  %v1879_v25 = vadd.s32 4294967192, %v10779_v47  ;;  %vm1898_vm14 = vcmask 1048512  }
  0x72   :  { %11433 = vst [vmem:[#allocation28_spill] sm:$0xff] %v10584_v27  ;;  %11434 = vst [vmem:[#allocation29_spill] sm:$0xff] %v10596_v30  ;;  %1725 = vadd.xlane.f32.xlu1 %v1676_v13  ;;  %v10610_v34 = vld [vmem:[%s11425_s1 + $0x48] sm:$0xff]  ;;  %v10615_v35 = vld [vmem:[%s11425_s1 + $0xd0] sm:$0xff]  ;;  %v1666_v8 = vmul.f32 %v10494_v3, %v10584_v27  ;;  %vm1979_vm15 = vcmask 1041409  }
  0x73   :  { %11435 = vst [vmem:[#allocation30_spill] sm:$0xff] %v10610_v34  ;;  %v10620_v36 = vld [vmem:[%s11425_s1 + $0x50] sm:$0xff]  ;;  %1693 = vadd.xlane.f32.xlu0 %v1660_v18  ;;  %v10631_v40 = vld [vmem:[%s11425_s1 + $0xd8] sm:$0xff]  ;;  %v10641_v42 = vld [vmem:[%s11425_s1 + $0xe0] sm:$0xff] }
  0x74   :  { %11436 = vst [vmem:[#allocation31_spill] sm:$0xff] %v10620_v36  ;;  %v10636_v41 = vld [vmem:[%s11425_s1 + $0x58] sm:$0xff]  ;;  %v10648_v44 = vld [vmem:[%s11425_s1 + $0x60] sm:$0xff]  ;;  %v10653_v45 = vld [vmem:[%s11425_s1 + $0xe8] sm:$0xff] }
  0x75   :  { %11437 = vst [vmem:[#allocation32_spill] sm:$0xff] %v10636_v41  ;;  %11438 = vst [vmem:[#allocation33_spill] sm:$0xff] %v10648_v44  ;;  %v10658_v46 = vld [vmem:[%s11425_s1 + $0x68] sm:$0xff]  ;;  %v10665_v48 = vld [vmem:[%s11425_s1 + $0xf0] sm:$0xff] }
  0x76   :  { %11439 = vst [vmem:[#allocation34_spill] sm:$0xff] %v10658_v46  ;;  %11440 = vst [vmem:[#allocation35_spill] sm:$0xff] %v10665_v48  ;;  %v10670_v49 = vld [vmem:[%s11425_s1 + $0x70] sm:$0xff]  ;;  %v10675_v50 = vld [vmem:[%s11425_s1 + $0xf8] sm:$0xff]  ;;  %1727 = vadd.xlane.f32.xlu1 %v1677_v32  ;;  %v1683_v32 = vmul.f32 %v10494_v3, %v10591_v29 }
  0x77   :  { %11441 = vst [vmem:[#allocation36_spill] sm:$0xff] %v10670_v49  ;;  %11442 = vst [vmem:[#allocation37_spill] sm:$0xff] %v10675_v50  ;;  %v10686_v54 = vld [vmem:[%s11425_s1 + $0x78] sm:$0xff]  ;;  %1695 = vadd.xlane.f32.xlu0 %v1661_v37  ;;  %v1667_v37 = vmul.f32 %v10494_v3, %v10596_v30  ;;  %v1872_v30 = vadd.s32 4294967200, %v10779_v47 }
  0x78   :  { %11443 = vst [vmem:[#allocation38_spill] sm:$0xff] %v10686_v54  ;;  %v8699_v13 = vld [vmem:[#allocation3 + $0x4] ss:$24 sps:$4 sm:$0xff]   ;;  %v8701_v18 = vld [vmem:[#allocation3] ss:$24 sps:$4 sm:$0xff]  }
  0x79   :  { %1353 = vmatprep.subr.bf16.mxu0 %v8699_v13  ;;  %v1686_v13 = vmul.f32 %v10494_v3, %v10631_v40 }
  0x7a   :  { %1729 = vadd.xlane.f32.xlu1 %v1678_v51  ;;  %1354 = vmatpush1.bf16.msra.mxu0 %v8701_v18  ;;  %v8702_v51 = vld [vmem:[#allocation3 + $0x34] ss:$24 sps:$4 sm:$0xff]   ;;  %v1670_v18 = vmul.f32 %v10494_v3, %v10636_v41 }
  0x7b   :  { %1697 = vadd.xlane.f32.xlu0 %v1662_v55  ;;  %v8704_v55 = vld [vmem:[#allocation3 + $0x30] ss:$24 sps:$4 sm:$0xff]   ;;  %1355 = vmatprep.subr.bf16.mxu0 %v8702_v51  ;;  %v1687_v51 = vmul.f32 %v10494_v3, %v10641_v42 }
  0x7e   :  { %1731 = vadd.xlane.f32.xlu1 %v1679_v58  ;;  %v1684_v58 = vmul.f32 %v10494_v3, %v10601_v31  ;;  %1356 = vmatpush1.bf16.msra.mxu0 %v8704_v55  ;;  %v1671_v55 = vmul.f32 %v10494_v3, %v10648_v44 }
  0x7f   :  { %1699 = vadd.xlane.f32.xlu0 %v1663_v59  ;;  %v1668_v59 = vmul.f32 %v10494_v3, %v10610_v34  ;;  %v1833_v34 = vsub.s32 %v1830_v14, %v10783_v33  ;;  %v10826_v14 = vsub.s32 %v1858_v24, %v10783_v33 }
  0x82   :  { %1733 = vadd.xlane.f32.xlu1 %v1680_v60  ;;  %v8705_v60 = vld [vmem:[#allocation3 + $0x64] ss:$24 sps:$4 sm:$0xff]  }
  0x83   :  { %1701 = vadd.xlane.f32.xlu0 %v1664_v61  ;;  %v8707_v61 = vld [vmem:[#allocation3 + $0x60] ss:$24 sps:$4 sm:$0xff]   ;;  %1357 = vmatprep.subr.bf16.mxu0 %v8705_v60  ;;  %v1688_v60 = vmul.f32 %v10494_v3, %v10653_v45 }
  0x84   :  { %1358 = vmatpush1.bf16.msra.mxu0 %v8707_v61  ;;  %v1672_v61 = vmul.f32 %v10494_v3, %v10658_v46  ;;  %v1819_v46 = vsub.s32 %v1816_v52, %v10783_v33 }
  0x86   :  { %1735 = vadd.xlane.f32.xlu1 %v1681_v62  ;;  %v1685_v62 = vmul.f32 %v10494_v3, %v10615_v35 }
  0x87   :  { %1703 = vadd.xlane.f32.xlu0 %v1665_v63  ;;  %v1669_v63 = vmul.f32 %v10494_v3, %v10620_v36  ;;  %v1851_v36 = vadd.s32 4294967224, %v10779_v47 }
  0x89   :  { %v10823_v11 = vsub.s32 %v1851_v36, %v10783_v33 }
  0x8a   :  { %1737 = vadd.xlane.f32.xlu1 %v1682_v4  ;;  %v8708_v4 = vld [vmem:[#allocation3 + $0x94] ss:$24 sps:$4 sm:$0xff]  }
  0x8b   :  { %1705 = vadd.xlane.f32.xlu0 %v1666_v8  ;;  %v8710_v8 = vld [vmem:[#allocation3 + $0x90] ss:$24 sps:$4 sm:$0xff]   ;;  %1359 = vmatprep.subr.bf16.mxu0 %v8708_v4  ;;  %v1689_v4 = vmul.f32 %v10494_v3, %v10665_v48 }
  0x8c   :  { %1360 = vmatpush1.bf16.msra.mxu0 %v8710_v8  ;;  %v1673_v8 = vmul.f32 %v10494_v3, %v10670_v49  ;;  %v1837_v49 = vadd.s32 4294967240, %v10779_v47 }
  0x8e   :  { %1739 = vadd.xlane.f32.xlu1 %v1683_v32  ;;  %v8711_v32 = vld [vmem:[#allocation3 + $0xc4] ss:$24 sps:$4 sm:$0xff]   ;;  %v1840_v52 = vsub.s32 %v1837_v49, %v10783_v33  ;;  %v1893_v49 = vadd.s32 4294967176, %v10779_v47 }
  0x8f   :  { %1707 = vadd.xlane.f32.xlu0 %v1667_v37  ;;  %v8713_v37 = vld [vmem:[#allocation3 + $0xc0] ss:$24 sps:$4 sm:$0xff]   ;;  %1361 = vmatprep.subr.bf16.mxu0 %v8711_v32  ;;  %v1690_v32 = vmul.f32 %v10494_v3, %v10675_v50  ;;  %v10843_v50 = vsub.s32 %v1879_v25, %v10783_v33 }
  0x90   :  { %1362 = vmatpush1.bf16.msra.mxu0 %v8713_v37  ;;  %v1674_v37 = vmul.f32 %v10494_v3, %v10686_v54  ;;  %v8737_v3 = vld [vmem:[#allocation3 + $0x240] ss:$24 sps:$4 sm:$0xff]   ;;  %v1844_v54 = vadd.s32 4294967232, %v10779_v47 }
  0x92   :  { %1741 = vadd.xlane.f32.xlu1 %v1684_v58  ;;  %v8714_v58 = vld [vmem:[#allocation3 + $0xf4] ss:$24 sps:$4 sm:$0xff]   ;;  %v10816_v27 = vsub.s32 %v1844_v54, %v10783_v33 }
  0x93   :  { %1709 = vadd.xlane.f32.xlu0 %v1668_v59  ;;  %v8716_v59 = vld [vmem:[#allocation3 + $0xf0] ss:$24 sps:$4 sm:$0xff]   ;;  %1363 = vmatprep.subr.bf16.mxu0 %v8714_v58  ;;  %v8726_v58 = vld [vmem:[#allocation3 + $0x1b4] ss:$24 sps:$4 sm:$0xff]  }
  0x94   :  { %1364 = vmatpush1.bf16.msra.mxu0 %v8716_v59  ;;  %v8728_v59 = vld [vmem:[#allocation3 + $0x1b0] ss:$24 sps:$4 sm:$0xff]  }
  0x96   :  { %1743 = vadd.xlane.f32.xlu1 %v1685_v62  ;;  %v8717_v62 = vld [vmem:[#allocation3 + $0x124] ss:$24 sps:$4 sm:$0xff]  }
  0x97   :  { %1711 = vadd.xlane.f32.xlu0 %v1669_v63  ;;  %v8719_v63 = vld [vmem:[#allocation3 + $0x120] ss:$24 sps:$4 sm:$0xff]   ;;  %1365 = vmatprep.subr.bf16.mxu0 %v8717_v62  ;;  %v8732_v62 = vld [vmem:[#allocation3 + $0x214] ss:$24 sps:$4 sm:$0xff]  }
  0x98   :  { %1366 = vmatpush1.bf16.msra.mxu0 %v8719_v63  ;;  %v8734_v63 = vld [vmem:[#allocation3 + $0x210] ss:$24 sps:$4 sm:$0xff]  }
  0x9a   :  { %1745 = vadd.xlane.f32.xlu1 %v1686_v13  ;;  %v8720_v13 = vld [vmem:[#allocation3 + $0x154] ss:$24 sps:$4 sm:$0xff]  }
  0x9b   :  { %1713 = vadd.xlane.f32.xlu0 %v1670_v18  ;;  %v8722_v18 = vld [vmem:[#allocation3 + $0x150] ss:$24 sps:$4 sm:$0xff]   ;;  %1367 = vmatprep.subr.bf16.mxu0 %v8720_v13 }
  0x9c   :  { %1368 = vmatpush1.bf16.msra.mxu0 %v8722_v18  ;;  %v8740_v13 = vld [vmem:[#allocation3 + $0x270] ss:$24 sps:$4 sm:$0xff]   ;;  %v144_v18 = vld [vmem:[%s11444_s16] sm:$0xf] }
  0x9e   :  { %1747 = vadd.xlane.f32.xlu1 %v1687_v51  ;;  %v8723_v51 = vld [vmem:[#allocation3 + $0x184] ss:$24 sps:$4 sm:$0xff]  }
  0x9f   :  { %1715 = vadd.xlane.f32.xlu0 %v1671_v55  ;;  %v8725_v55 = vld [vmem:[#allocation3 + $0x180] ss:$24 sps:$4 sm:$0xff]   ;;  %1369 = vmatprep.subr.bf16.mxu0 %v8723_v51  ;;  %v8744_v51 = vld [vmem:[#allocation3 + $0xc] ss:$24 sps:$4 sm:$0xff]  }
  0xa0   :  { %1370 = vmatpush1.bf16.msra.mxu0 %v8725_v55  ;;  %v8746_v55 = vld [vmem:[#allocation3 + $0x2d4] ss:$24 sps:$4 sm:$0xff]   ;;  %1435 = vmatprep.subr.bf16.mxu1 %v8744_v51 }
  0xa1   :  { %1371 = vmatprep.subr.bf16.mxu0 %v8726_v58  ;;  %v8748_v58 = vld [vmem:[#allocation3 + $0x8] ss:$24 sps:$4 sm:$0xff]   ;;  %v8780_v51 = vld [vmem:[#allocation3 + $0x12c] ss:$24 sps:$4 sm:$0xff]  }
  0xa2   :  { %1749 = vadd.xlane.f32.xlu1 %v1688_v60  ;;  %v8729_v60 = vld [vmem:[#allocation3 + $0x1e4] ss:$24 sps:$4 sm:$0xff]   ;;  %1436 = vmatpush1.bf16.msra.mxu1 %v8748_v58 }
  0xa3   :  { %1717 = vadd.xlane.f32.xlu0 %v1672_v61  ;;  %v8731_v61 = vld [vmem:[#allocation3 + $0x1e0] ss:$24 sps:$4 sm:$0xff]   ;;  %v8786_v58 = vld [vmem:[#allocation3 + $0x15c] ss:$24 sps:$4 sm:$0xff]  }
  0xa4   :  { %1372 = vmatpush1.bf16.msra.mxu0 %v8728_v59  ;;  %v8749_v59 = vld [vmem:[#allocation3 + $0x2d0] ss:$24 sps:$4 sm:$0xff]  }
  0xa5   :  { %1373 = vmatprep.subr.bf16.mxu0 %v8729_v60  ;;  %v8750_v60 = vld [vmem:[#allocation3 + $0x3c] ss:$24 sps:$4 sm:$0xff]  }
  0xa6   :  { %1751 = vadd.xlane.f32.xlu1 %v1689_v4  ;;  %v8735_v4 = vld [vmem:[#allocation3 + $0x244] ss:$24 sps:$4 sm:$0xff]   ;;  %1437 = vmatprep.subr.bf16.mxu1 %v8750_v60 }
  0xa7   :  { %1719 = vadd.xlane.f32.xlu0 %v1673_v8  ;;  %v8738_v8 = vld [vmem:[#allocation3 + $0x274] ss:$24 sps:$4 sm:$0xff]  }
  0xa8   :  { %1374 = vmatpush1.bf16.msra.mxu0 %v8731_v61  ;;  %v8754_v61 = vld [vmem:[#allocation3 + $0x304] ss:$24 sps:$4 sm:$0xff]  }
  0xa9   :  { %1375 = vmatprep.subr.bf16.mxu0 %v8732_v62  ;;  %v8755_v62 = vld [vmem:[#allocation3 + $0x38] ss:$24 sps:$4 sm:$0xff]   ;;  %v8792_v60 = vld [vmem:[#allocation3 + $0x18c] ss:$24 sps:$4 sm:$0xff]  }
  0xaa   :  { %1753 = vadd.xlane.f32.xlu1 %v1690_v32  ;;  %v8741_v32 = vld [vmem:[#allocation3 + $0x2a4] ss:$24 sps:$4 sm:$0xff]   ;;  %1438 = vmatpush1.bf16.msra.mxu1 %v8755_v62 }
  0xab   :  { %1721 = vadd.xlane.f32.xlu0 %v1674_v37  ;;  %v8743_v37 = vld [vmem:[#allocation3 + $0x2a0] ss:$24 sps:$4 sm:$0xff]   ;;  %v8798_v62 = vld [vmem:[#allocation3 + $0x1bc] ss:$24 sps:$4 sm:$0xff]  }
  0xac   :  { %1376 = vmatpush1.bf16.msra.mxu0 %v8734_v63  ;;  %v8756_v63 = vld [vmem:[#allocation3 + $0x6c] ss:$24 sps:$4 sm:$0xff]  }
  0xad   :  { %1377 = vmatprep.subr.bf16.mxu0 %v8735_v4  ;;  %v8761_v4 = vld [vmem:[#allocation3 + $0x68] ss:$24 sps:$4 sm:$0xff]   ;;  %1439 = vmatprep.subr.bf16.mxu1 %v8756_v63  ;;  %v8803_v63 = vld [vmem:[#allocation3 + $0x1b8] ss:$24 sps:$4 sm:$0xff]  }
  0xae   :  { %1440 = vmatpush1.bf16.msra.mxu1 %v8761_v4  ;;  %v8804_v4 = vld [vmem:[#allocation3 + $0x1ec] ss:$24 sps:$4 sm:$0xff]  }
  0xb0   :  { %1378 = vmatpush1.bf16.msra.mxu0 %v8737_v3  ;;  %v8762_v3 = vld [vmem:[#allocation3 + $0x9c] ss:$24 sps:$4 sm:$0xff]  }
  0xb1   :  { %1379 = vmatprep.subr.bf16.mxu0 %v8738_v8  ;;  %v8767_v8 = vld [vmem:[#allocation3 + $0x98] ss:$24 sps:$4 sm:$0xff]   ;;  %1441 = vmatprep.subr.bf16.mxu1 %v8762_v3  ;;  %v8809_v3 = vld [vmem:[#allocation3 + $0x1e8] ss:$24 sps:$4 sm:$0xff]  }
  0xb2   :  { %1442 = vmatpush1.bf16.msra.mxu1 %v8767_v8  ;;  %v8810_v8 = vld [vmem:[#allocation3 + $0x21c] ss:$24 sps:$4 sm:$0xff]  }
  0xb4   :  { %1380 = vmatpush1.bf16.msra.mxu0 %v8740_v13  ;;  %v8768_v13 = vld [vmem:[#allocation3 + $0xcc] ss:$24 sps:$4 sm:$0xff]  }
  0xb5   :  { %1381 = vmatprep.subr.bf16.mxu0 %v8741_v32  ;;  %1443 = vmatprep.subr.bf16.mxu1 %v8768_v13  ;;  %v8774_v32 = vld [vmem:[#allocation3 + $0xfc] ss:$24 sps:$4 sm:$0xff]   ;;  %v8815_v13 = vld [vmem:[#allocation3 + $0x218] ss:$24 sps:$4 sm:$0xff]  }
  0xb8   :  { %1382 = vmatpush1.bf16.msra.mxu0 %v8743_v37  ;;  %v8779_v37 = vld [vmem:[#allocation3 + $0xf8] ss:$24 sps:$4 sm:$0xff]  }
  0xb9   :  { %1383 = vmatprep.subr.bf16.mxu0 %v8746_v55  ;;  %v8785_v55 = vld [vmem:[#allocation3 + $0x128] ss:$24 sps:$4 sm:$0xff]  }
  0xbc   :  { %1384 = vmatpush1.bf16.msra.mxu0 %v8749_v59  ;;  %v8791_v59 = vld [vmem:[#allocation3 + $0x158] ss:$24 sps:$4 sm:$0xff]  }
  0xbd   :  { %1394 = vmatprep.subr.bf16.mxu0 %v8754_v61  ;;  %v8797_v61 = vld [vmem:[#allocation3 + $0x188] ss:$24 sps:$4 sm:$0xff]  }
  0xc1   :  { %152 = vperm.xlu0 %8697, %v144_v18   ;;  %v8773_v18 = vld [vmem:[#allocation3 + $0xc8] ss:$24 sps:$4 sm:$0xff]  }
  0xc2   :  { %1444 = vmatpush1.bf16.msra.mxu1 %v8773_v18  ;;  %v8816_v18 = vld [vmem:[#allocation3 + $0x24c] ss:$24 sps:$4 sm:$0xff]  }
  0xc3   :  { %1445 = vmatprep.subr.bf16.mxu1 %v8774_v32  ;;  %v8821_v32 = vld [vmem:[#allocation3 + $0x248] ss:$24 sps:$4 sm:$0xff]  }
  0xc6   :  { %1446 = vmatpush1.bf16.msra.mxu1 %v8779_v37  ;;  %v8822_v37 = vld [vmem:[#allocation3 + $0x27c] ss:$24 sps:$4 sm:$0xff]  }
  0xc7   :  { %1447 = vmatprep.subr.bf16.mxu1 %v8780_v51  ;;  %v8827_v51 = vld [vmem:[#allocation3 + $0x278] ss:$24 sps:$4 sm:$0xff]  }
  0xca   :  { %1448 = vmatpush1.bf16.msra.mxu1 %v8785_v55 }
  0xcb   :  { %1449 = vmatprep.subr.bf16.mxu1 %v8786_v58  ;;  %v8828_v58 = vld [vmem:[#allocation3 + $0x2ac] ss:$24 sps:$4 sm:$0xff]  }
  0xce   :  { %1450 = vmatpush1.bf16.msra.mxu1 %v8791_v59 }
  0xcf   :  { %1451 = vmatprep.subr.bf16.mxu1 %v8792_v60  ;;  %v8833_v60 = vld [vmem:[#allocation3 + $0x2a8] ss:$24 sps:$4 sm:$0xff]  }
  0xd2   :  { %1452 = vmatpush1.bf16.msra.mxu1 %v8797_v61 }
  0xd3   :  { %1453 = vmatprep.subr.bf16.mxu1 %v8798_v62  ;;  %v8834_v62 = vld [vmem:[#allocation3 + $0x2dc] ss:$24 sps:$4 sm:$0xff]  }
  0xd6   :  { %1454 = vmatpush1.bf16.msra.mxu1 %v8803_v63 }
  0xd7   :  { %1455 = vmatprep.subr.bf16.mxu1 %v8804_v4  ;;  %v8839_v4 = vld [vmem:[#allocation3 + $0x2d8] ss:$24 sps:$4 sm:$0xff]  }
  0xda   :  { %1456 = vmatpush1.bf16.msra.mxu1 %v8809_v3 }
  0xdb   :  { %1457 = vmatprep.subr.bf16.mxu1 %v8810_v8  ;;  %v8842_v8 = vld [vmem:[#allocation3 + $0x30c] ss:$24 sps:$4 sm:$0xff]  }
  0xde   :  { %1458 = vmatpush1.bf16.msra.mxu1 %v8815_v13 }
  0xdf   :  { %1459 = vmatprep.subr.bf16.mxu1 %v8816_v18 }
  0xe2   :  { %1460 = vmatpush1.bf16.msra.mxu1 %v8821_v32 }
  0xe3   :  { %1461 = vmatprep.subr.bf16.mxu1 %v8822_v37 }
  0xe6   :  { %1462 = vmatpush1.bf16.msra.mxu1 %v8827_v51 }
  0xe7   :  { %1463 = vmatprep.subr.bf16.mxu1 %v8828_v58 }
  0xea   :  { %1464 = vmatpush1.bf16.msra.mxu1 %v8833_v60 }
  0xeb   :  { %1465 = vmatprep.subr.bf16.mxu1 %v8834_v62 }
  0xee   :  { %1466 = vmatpush1.bf16.msra.mxu1 %v8839_v4 }
  0xef   :  { %1476 = vmatprep.subr.bf16.mxu1 %v8842_v8 }
  0xfb   :  { %v10745_v55 = vpop.xlane.xlu1 %1723 }
  0xfc   :  { %v10747_v59 = vpop.xlane.xlu0 %1691  ;;  %v1903_v36 = vrot.slane %v10745_v55, %v1793_v38 }
  0xff   :  { %v10749_v61 = vpop.xlane.xlu1 %1725 }
 0x100   :  { %v10751_v63 = vpop.xlane.xlu0 %1693  ;;  %v1907_v21 = vrot.slane %v10749_v61, %v1798_v57  ;;  %v10837_v61 = vsub.s32 %v1872_v30, %v10783_v33  ;;  %v10849_v30 = vsub.s32 %v1886_v28, %v10783_v33 }
 0x101   :  { %v1799_v54 = vrot.slane %v10751_v63, %v1798_v57  ;;  %v1794_v63 = vrot.slane %v10747_v59, %v1793_v38 }
 0x102   :  { %v1908_v55 = vsel %vm1800_vm0, %v1907_v21, %v1903_v36 }
 0x103   :  { %v10753_v3 = vpop.xlane.xlu1 %1727 }
 0x104   :  { %v10755_v13 = vpop.xlane.xlu0 %1695  ;;  %v1912_v6 = vrot.slane %v10753_v3, %v1805_v23 }
 0x105   :  { %v1806_v24 = vrot.slane %v10755_v13, %v1805_v23 }
 0x106   :  { %v1913_v38 = vsel %vm1807_vm1, %v1912_v6, %v1908_v55 }
 0x107   :  { %v10757_v18 = vpop.xlane.xlu1 %1729 }
 0x108   :  { %v10759_v32 = vpop.xlane.xlu0 %1697  ;;  %v1917_v48 = vrot.slane %v10757_v18, %v1812_v5  ;;  %v10855_v18 = vsub.s32 %v1893_v49, %v10783_v33 }
 0x109   :  { %v1813_v3 = vrot.slane %v10759_v32, %v1812_v5  ;;  %v1801_v5 = vsel %vm1800_vm0, %v1799_v54, %v1794_v63 }
 0x10a   :  { %v1808_v21 = vsel %vm1807_vm1, %v1806_v24, %v1801_v5  ;;  %vm1983_vm1 = vcmask 1041408  }
 0x10b   :  { %v10761_v37 = vpop.xlane.xlu1 %1731 }
 0x10c   :  { %v10763_v51 = vpop.xlane.xlu0 %1699  ;;  %v1922_v57 = vrot.slane %v10761_v37, %v1819_v46 }
 0x10d   :  { %v1820_v23 = vrot.slane %v10763_v51, %v1819_v46  ;;  %v1918_v46 = vsel %vm1814_vm2, %v1917_v48, %v1913_v38  ;;  %v1757_v38 = vstv %s11445_s9 }
 0x10e   :  { %v1923_v28 = vsel %vm1821_vm3, %v1922_v57, %v1918_v46  ;;  %vm1758_vm0 = vcmp.lt.s32.totalorder %v10779_v47, %v1757_v38  ;;  %v8790_v38 = vld [vmem:[#allocation3 + $0x424] ss:$24 sps:$4 sm:$0xff]  }
 0x10f   :  { %v10765_v58 = vpop.xlane.xlu1 %1733 }
 0x110   :  { %v10767_v60 = vpop.xlane.xlu0 %1701  ;;  %v1927_v13 = vrot.slane %v10765_v58, %v1826_v19  ;;  %v1815_v58 = vsel %vm1814_vm2, %v1813_v3, %v1808_v21  ;;  %vm10262_vm2 = vmmov 0  }
 0x111   :  { %v1827_v59 = vrot.slane %v10767_v60, %v1826_v19 }
 0x112   :  { %v1928_v19 = vsel %vm1828_vm4, %v1927_v13, %v1923_v28 }
 0x113   :  { %v10769_v62 = vpop.xlane.xlu1 %1735 }
 0x114   :  { %v10771_v4 = vpop.xlane.xlu0 %1703  ;;  %v1932_v32 = vrot.slane %v10769_v62, %v1833_v34  ;;  %v1822_v62 = vsel %vm1821_vm3, %v1820_v23, %v1815_v58 }
 0x115   :  { %v1834_v37 = vrot.slane %v10771_v4, %v1833_v34  ;;  %v1829_v4 = vsel %vm1828_vm4, %v1827_v59, %v1822_v62 }
 0x116   :  { %v1933_v54 = vsel %vm1835_vm5, %v1932_v32, %v1928_v19 }
 0x117   :  { %v10773_v0 = vpop.xlane.xlu1 %1737 }
 0x118   :  { %v10775_v8 = vpop.xlane.xlu0 %1705  ;;  %v1937_v51 = vrot.slane %v10773_v0, %v1840_v52 }
 0x119   :  { %v1841_v49 = vrot.slane %v10775_v8, %v1840_v52  ;;  %v1836_v52 = vsel %vm1835_vm5, %v1834_v37, %v1829_v4  ;;  %v149_v4 = vld [vmem:[%s11448_s27] sm:$0x3] }
 0x11a   :  { %v1938_v36 = vsel %vm1842_vm6, %v1937_v51, %v1933_v54 }
 0x11b   :  { %v10777_v53 = vpop.xlane.xlu1 %1739 }
 0x11c   :  { %v10781_v39 = vpop.xlane.xlu0 %1707  ;;  %v1942_v6 = vrot.slane %v10777_v53, %v10816_v27 }
 0x11d   :  { %v1848_v48 = vrot.slane %v10781_v39, %v10816_v27 }
 0x11e   :  { %v1943_v24 = vsel %vm1849_vm7, %v1942_v6, %v1938_v36  ;;  %v146_v6 = vld [vmem:[%s11446_s5] sm:$0xf]  ;;  %v8760_v36 = vld [vmem:[#allocation3 + $0x334] ss:$24 sps:$4 sm:$0xff]  }
 0x11f   :  { %v10788_v56 = vpop.xlane.xlu1 %1741 }
 0x120   :  { %v10791_v43 = vpop.xlane.xlu0 %1709  ;;  %v1947_v0 = vrot.slane %v10788_v56, %v10823_v11  ;;  %v1843_v56 = vsel %vm1842_vm6, %v1841_v49, %v1836_v52  ;;  %v8840_v52 = vld [vmem:[#allocation3 + $0x308] ss:$24 sps:$4 sm:$0xff]  }
 0x121   :  { %v1855_v8 = vrot.slane %v10791_v43, %v10823_v11  ;;  %v1850_v63 = vsel %vm1849_vm7, %v1848_v48, %v1843_v56  ;;  %v8848_v56 = vld [vmem:[#allocation3 + $0x33c] ss:$24 sps:$4 sm:$0xff]  }
 0x122   :  { %v1948_v3 = vsel %vm1856_vm8, %v1947_v0, %v1943_v24  ;;  %v8758_v24 = vld [vmem:[#allocation3 + $0x330] ss:$24 sps:$4 sm:$0xff]  }
 0x123   :  { %v10802_v44 = vpop.xlane.xlu1 %1743 }
 0x124   :  { %v10807_v41 = vpop.xlane.xlu0 %1711  ;;  %v1952_v53 = vrot.slane %v10802_v44, %v10826_v14 }
 0x125   :  { %v1862_v27 = vrot.slane %v10807_v41, %v10826_v14 }
 0x126   :  { %v1953_v55 = vsel %vm1863_vm9, %v1952_v53, %v1948_v3  ;;  %v8764_v3 = vld [vmem:[#allocation3 + $0x360] ss:$24 sps:$4 sm:$0xff]  }
 0x127   :  { %v10818_v17 = vpop.xlane.xlu1 %1745 }
 0x128   :  { %v10828_v15 = vpop.xlane.xlu0 %1713  ;;  %v1957_v39 = vrot.slane %v10818_v17, %v10834_v7  ;;  %v1857_v17 = vsel %vm1856_vm8, %v1855_v8, %v1850_v63  ;;  %v8752_v8 = vld [vmem:[#allocation3 + $0x300] ss:$24 sps:$4 sm:$0xff]   ;;  %v8854_v63 = vld [vmem:[#allocation3 + $0x36c] ss:$24 sps:$4 sm:$0xff]  }
 0x129   :  { %v1869_v11 = vrot.slane %v10828_v15, %v10834_v7  ;;  %v1864_v15 = vsel %vm1863_vm9, %v1862_v27, %v1857_v17  ;;  %v8770_v17 = vld [vmem:[#allocation3 + $0x390] ss:$24 sps:$4 sm:$0xff]  }
 0x12b   :  { %v1748_v9 = vpop.xlane.xlu1 %1747 }
 0x12c   :  { %v1716_v25 = vpop.xlane.xlu0 %1715  ;;  %v1962_v43 = vrot.slane %v1748_v9, %v10837_v61  ;;  %v1958_v9 = vsel %vm1870_vm10, %v1957_v39, %v1953_v55  ;;  %v8778_v55 = vld [vmem:[#allocation3 + $0x3c4] ss:$24 sps:$4 sm:$0xff]  }
 0x12d   :  { %v1876_v57 = vrot.slane %v1716_v25, %v10837_v61  ;;  %v1871_v61 = vsel %vm1870_vm10, %v1869_v11, %v1864_v15  ;;  %v8846_v11 = vld [vmem:[#allocation3 + $0x338] ss:$24 sps:$4 sm:$0xff]  }
 0x12e   :  { %v1963_v25 = vsel %vm1877_vm11, %v1962_v43, %v1958_v9  ;;  %v10939_v43 = vpack.c.bf16 %v149_v4, %v149_v4  ;;  %v8776_v15 = vld [vmem:[#allocation3 + $0x3c0] ss:$24 sps:$4 sm:$0xff]   ;;  %v8784_v9 = vld [vmem:[#allocation3 + $0x3f4] ss:$24 sps:$4 sm:$0xff]  }
 0x12f   :  { %v1750_v60 = vpop.xlane.xlu1 %1749  ;;  %v8820_v4 = vld [vmem:[#allocation3 + $0x514] ss:$24 sps:$4 sm:$0xff]  }
 0x130   :  { %v1718_v34 = vpop.xlane.xlu0 %1717  ;;  %v1967_v41 = vrot.slane %v1750_v60, %v10843_v50  ;;  %v147_v60 = vld [vmem:[%s11447_s29] sm:$0xf] }
 0x131   :  { %v1883_v23 = vrot.slane %v1718_v34, %v10843_v50  ;;  %v1878_v50 = vsel %vm1877_vm11, %v1876_v57, %v1871_v61  ;;  %v8852_v57 = vld [vmem:[#allocation3 + $0x368] ss:$24 sps:$4 sm:$0xff]   ;;  %v8872_v61 = vld [vmem:[#allocation3 + $0x3fc] ss:$24 sps:$4 sm:$0xff]  }
 0x132   :  { %v1968_v59 = vsel %vm1884_vm12, %v1967_v41, %v1963_v25  ;;  %v8772_v41 = vld [vmem:[#allocation3 + $0x394] ss:$24 sps:$4 sm:$0xff]   ;;  %v8782_v25 = vld [vmem:[#allocation3 + $0x3f0] ss:$24 sps:$4 sm:$0xff]  }
 0x133   :  { %v1752_v44 = vpop.xlane.xlu1 %1751  ;;  %v1885_v46 = vsel %vm1884_vm12, %v1883_v23, %v1878_v50  ;;  %v8858_v23 = vld [vmem:[#allocation3 + $0x398] ss:$24 sps:$4 sm:$0xff]   ;;  %v8878_v50 = vld [vmem:[#allocation3 + $0x42c] ss:$24 sps:$4 sm:$0xff]  }
 0x134   :  { %v1720_v14 = vpop.xlane.xlu0 %1719  ;;  %v1972_v7 = vrot.slane %v1752_v44, %v10849_v30  ;;  %v8766_v44 = vld [vmem:[#allocation3 + $0x364] ss:$24 sps:$4 sm:$0xff]  }
 0x135   :  { %v1890_v13 = vrot.slane %v1720_v14, %v10849_v30  ;;  %v8860_v14 = vld [vmem:[#allocation3 + $0x39c] ss:$24 sps:$4 sm:$0xff]  }
 0x136   :  { %v1973_v30 = vsel %vm1891_vm13, %v1972_v7, %v1968_v59  ;;  %v8866_v7 = vld [vmem:[#allocation3 + $0x3cc] ss:$24 sps:$4 sm:$0xff]   ;;  %v8788_v59 = vld [vmem:[#allocation3 + $0x420] ss:$24 sps:$4 sm:$0xff]  }
 0x137   :  { %v1754_v5 = vpop.xlane.xlu1 %1753  ;;  %v1892_v51 = vsel %vm1891_vm13, %v1890_v13, %v1885_v46  ;;  %v8864_v13 = vld [vmem:[#allocation3 + $0x3c8] ss:$24 sps:$4 sm:$0xff]   ;;  %v8884_v46 = vld [vmem:[#allocation3 + $0x45c] ss:$24 sps:$4 sm:$0xff]  }
 0x138   :  { %v1977_v32 = vrot.slane %v1754_v5, %v10855_v18  ;;  %v1722_v21 = vpop.xlane.xlu0 %1721  ;;  %v8870_v5 = vld [vmem:[#allocation3 + $0x3f8] ss:$24 sps:$4 sm:$0xff]  }
 0x139   :  { %v1897_v37 = vrot.slane %v1722_v21, %v10855_v18  ;;  %v8876_v21 = vld [vmem:[#allocation3 + $0x428] ss:$24 sps:$4 sm:$0xff]  }
 0x13a   :  { %v1978_v58 = vsel %vm1898_vm14, %v1977_v32, %v1973_v30  ;;  %v8796_v32 = vld [vmem:[#allocation3 + $0x454] ss:$24 sps:$4 sm:$0xff]   ;;  %v8794_v30 = vld [vmem:[#allocation3 + $0x450] ss:$24 sps:$4 sm:$0xff]  }
 0x13b   :  { %v1899_v28 = vsel %vm1898_vm14, %v1897_v37, %v1892_v51  ;;  %v8802_v37 = vld [vmem:[#allocation3 + $0x484] ss:$24 sps:$4 sm:$0xff]   ;;  %v8882_v51 = vld [vmem:[#allocation3 + $0x458] ss:$24 sps:$4 sm:$0xff]  }
 0x13c   :  { %v1980_v49 = vsel %vm1979_vm15, %v1978_v58, %v1899_v28  ;;  %v8890_v58 = vld [vmem:[#allocation3 + $0x48c] ss:$24 sps:$4 sm:$0xff]   ;;  %v8800_v28 = vld [vmem:[#allocation3 + $0x480] ss:$24 sps:$4 sm:$0xff]  }
 0x13d   :  { %v10922_v62 = vsel %vm1758_vm0, %v1980_v49, -1e+30  ;;  %v8808_v49 = vld [vmem:[#allocation3 + $0x4b4] ss:$24 sps:$4 sm:$0xff]  }
 0x13e   :  { %v1984_v18 = vsel %vm1983_vm1, %v10922_v62, -inf }
 0x13f   :  { %1985 = vmax.xlane.f32.xlu1 %v1984_v18  ;;  %v8806_v18 = vld [vmem:[#allocation3 + $0x4b0] ss:$24 sps:$4 sm:$0xff]  }
 0x140   :  { %v10926_v47 = vpop.permute.xlu0 %152 }
 0x141   :  { %v155_v19 = vmul.f32 %v10926_v47, %v146_v6  ;;  %v160_v48 = vmul.f32 %v10926_v47, %v147_v60  ;;  %v8888_v6 = vld [vmem:[#allocation3 + $0x488] ss:$24 sps:$4 sm:$0xff]   ;;  %v8896_v60 = vld [vmem:[#allocation3 + $0x4bc] ss:$24 sps:$4 sm:$0xff]  }
 0x143   :  { %v162_v0 = vrot.slane %v160_v48, 2  ;;  %v157_v34 = vrot.slane %v155_v19, 2 }
 0x145   :  { %v164_v54 = vadd.f32 %v162_v0, %v160_v48  ;;  %v159_v53 = vadd.f32 %v157_v34, %v155_v19  ;;  %v8814_v19 = vld [vmem:[#allocation3 + $0x4e4] ss:$24 sps:$4 sm:$0xff]   ;;  %v8894_v48 = vld [vmem:[#allocation3 + $0x4b8] ss:$24 sps:$4 sm:$0xff]  }
 0x146   :  { %v8902_v0 = vld [vmem:[#allocation3 + $0x4ec] ss:$24 sps:$4 sm:$0xff]   ;;  %v8812_v34 = vld [vmem:[#allocation3 + $0x4e0] ss:$24 sps:$4 sm:$0xff]  }
 0x147   :  { %v10933_v27 = vpack.c.bf16 %v164_v54, %v164_v54  ;;  %v10935_v39 = vpack.c.bf16 %v159_v53, %v159_v53  ;;  %v8900_v54 = vld [vmem:[#allocation3 + $0x4e8] ss:$24 sps:$4 sm:$0xff]  }
 0x148   :  { %v8818_v53 = vld [vmem:[#allocation3 + $0x510] ss:$24 sps:$4 sm:$0xff]  }
 0x149   :  { %1385 = vmatprep.mubr.bf16.mxu0 %v10933_v27  ;;  %1467 = vmatprep.mubr.bf16.mxu1 %v10933_v27 }
 0x14a   :  { %1386 = vmatmul.mubr.bf16.vlgmr.msra.gmra.mrb[0].mxu0 %v10935_v39  ;;  %1468 = vmatmul.mubr.bf16.vlgmr.msra.gmra.mrb[0].mxu1 %v10935_v39 }
 0x14b   :  { %1395 = vmatpush1.bf16.msra.mxu0 %v8752_v8  ;;  %1477 = vmatpush1.bf16.msra.mxu1 %v8840_v52  ;;  %v8908_v8 = vld [vmem:[#allocation3 + $0x51c] ss:$24 sps:$4 sm:$0xff]  }
 0x14c   :  { %1396 = vmatprep.subr.bf16.mxu0 %v8760_v36  ;;  %1478 = vmatprep.subr.bf16.mxu1 %v8848_v56  ;;  %v8826_v52 = vld [vmem:[#allocation3 + $0x544] ss:$24 sps:$4 sm:$0xff]   ;;  %v8906_v36 = vld [vmem:[#allocation3 + $0x518] ss:$24 sps:$4 sm:$0xff]  }
 0x14d   :  { %1426 = vmatprep.mubr.bf16.mxu0 %v10939_v43  ;;  %1508 = vmatprep.mubr.bf16.mxu1 %v10939_v43  ;;  %v8914_v56 = vld [vmem:[#allocation3 + $0x54c] ss:$24 sps:$4 sm:$0xff]  }
 0x14f   :  { %1397 = vmatpush1.bf16.msra.mxu0 %v8758_v24  ;;  %1479 = vmatpush1.bf16.msra.mxu1 %v8846_v11  ;;  %v8824_v24 = vld [vmem:[#allocation3 + $0x540] ss:$24 sps:$4 sm:$0xff]   ;;  %v8832_v11 = vld [vmem:[#allocation3 + $0x574] ss:$24 sps:$4 sm:$0xff]  }
 0x150   :  { %1398 = vmatprep.subr.bf16.mxu0 %v8766_v44  ;;  %1480 = vmatprep.subr.bf16.mxu1 %v8854_v63  ;;  %v8912_v44 = vld [vmem:[#allocation3 + $0x548] ss:$24 sps:$4 sm:$0xff]   ;;  %v8920_v63 = vld [vmem:[#allocation3 + $0x57c] ss:$24 sps:$4 sm:$0xff]  }
 0x153   :  { %1399 = vmatpush1.bf16.msra.mxu0 %v8764_v3  ;;  %1481 = vmatpush1.bf16.msra.mxu1 %v8852_v57  ;;  %v8830_v3 = vld [vmem:[#allocation3 + $0x570] ss:$24 sps:$4 sm:$0xff]   ;;  %v8838_v57 = vld [vmem:[#allocation3 + $0x5a4] ss:$24 sps:$4 sm:$0xff]  }
 0x154   :  { %1400 = vmatprep.subr.bf16.mxu0 %v8772_v41  ;;  %1482 = vmatprep.subr.bf16.mxu1 %v8860_v14  ;;  %v8918_v41 = vld [vmem:[#allocation3 + $0x578] ss:$24 sps:$4 sm:$0xff]   ;;  %v8926_v14 = vld [vmem:[#allocation3 + $0x5ac] ss:$24 sps:$4 sm:$0xff]  }
 0x157   :  { %1401 = vmatpush1.bf16.msra.mxu0 %v8770_v17  ;;  %1483 = vmatpush1.bf16.msra.mxu1 %v8858_v23  ;;  %v8836_v17 = vld [vmem:[#allocation3 + $0x5a0] ss:$24 sps:$4 sm:$0xff]  }
 0x158   :  { %1402 = vmatprep.subr.bf16.mxu0 %v8778_v55  ;;  %1484 = vmatprep.subr.bf16.mxu1 %v8866_v7  ;;  %v8845_v55 = vld [vmem:[#allocation3 + $0x5d4] ss:$24 sps:$4 sm:$0xff]   ;;  %v8924_v23 = vld [vmem:[#allocation3 + $0x5a8] ss:$24 sps:$4 sm:$0xff]  }
 0x159   :  { %v8932_v7 = vld [vmem:[#allocation3 + $0x5dc] ss:$24 sps:$4 sm:$0xff]  }
 0x15b   :  { %1403 = vmatpush1.bf16.msra.mxu0 %v8776_v15  ;;  %1485 = vmatpush1.bf16.msra.mxu1 %v8864_v13  ;;  %v8843_v15 = vld [vmem:[#allocation3 + $0x5d0] ss:$24 sps:$4 sm:$0xff]   ;;  %v143_v13 = vld [vmem:[%s11449_s30] sm:$0x3] }
 0x15c   :  { %1404 = vmatprep.subr.bf16.mxu0 %v8784_v9  ;;  %1486 = vmatprep.subr.bf16.mxu1 %v8872_v61  ;;  %v8851_v9 = vld [vmem:[#allocation3 + $0x14] ss:$24 sps:$4 sm:$0xff]   ;;  %v8930_v61 = vld [vmem:[#allocation3 + $0x5d8] ss:$24 sps:$4 sm:$0xff]  }
 0x15f   :  { %1405 = vmatpush1.bf16.msra.mxu0 %v8782_v25  ;;  %1487 = vmatpush1.bf16.msra.mxu1 %v8870_v5  ;;  %v8849_v25 = vld [vmem:[#allocation3 + $0x10] ss:$24 sps:$4 sm:$0xff]   ;;  %v10948_v5 = vpack.c.bf16 %v143_v13, %v143_v13  ;;  %v8959_v13 = vld [vmem:[#allocation3 + $0x434] ss:$24 sps:$4 sm:$0xff]  }
 0x160   :  { %1406 = vmatprep.subr.bf16.mxu0 %v8790_v38  ;;  %1488 = vmatprep.subr.bf16.mxu1 %v8878_v50  ;;  %v8857_v38 = vld [vmem:[#allocation3 + $0x44] ss:$24 sps:$4 sm:$0xff]   ;;  %v8855_v50 = vld [vmem:[#allocation3 + $0x40] ss:$24 sps:$4 sm:$0xff]  }
 0x163   :  { %1407 = vmatpush1.bf16.msra.mxu0 %v8788_v59  ;;  %1489 = vmatpush1.bf16.msra.mxu1 %v8876_v21  ;;  %v8863_v59 = vld [vmem:[#allocation3 + $0x74] ss:$24 sps:$4 sm:$0xff]   ;;  %v8861_v21 = vld [vmem:[#allocation3 + $0x70] ss:$24 sps:$4 sm:$0xff]  }
 0x164   :  { %1408 = vmatprep.subr.bf16.mxu0 %v8796_v32  ;;  %1490 = vmatprep.subr.bf16.mxu1 %v8884_v46  ;;  %v10261_v32 = vmov 0.0|0.0   ;;  %v11450_v46 = vpack.c.bf16 %v10489_v2, %v10484_v1  ;;  %v11452_v1 = vpack.c.bf16 %v10555_v20, %v10541_v16  ;;  %v8881_v2 = vld [vmem:[#allocation3 + $0x104] ss:$24 sps:$4 sm:$0xff]   ;;  %v11454_v16 = vpack.c.bf16 %v10601_v31, %v10591_v29 }
 0x165   :  { %v8893_v20 = vld [vmem:[#allocation3 + $0x164] ss:$24 sps:$4 sm:$0xff]   ;;  %v11456_v29 = vpack.c.bf16 %v10653_v45, %v10641_v42  ;;  %v8923_v42 = vld [vmem:[#allocation3 + $0x254] ss:$24 sps:$4 sm:$0xff]   ;;  %v8921_v45 = vld [vmem:[#allocation3 + $0x250] ss:$24 sps:$4 sm:$0xff]  }
 0x166   :  { %v8905_v31 = vld [vmem:[#allocation3 + $0x1c4] ss:$24 sps:$4 sm:$0xff]  }
 0x167   :  { %1409 = vmatpush1.bf16.msra.mxu0 %v8794_v30  ;;  %1491 = vmatpush1.bf16.msra.mxu1 %v8882_v51  ;;  %v8869_v30 = vld [vmem:[#allocation3 + $0xa4] ss:$24 sps:$4 sm:$0xff]   ;;  %v11451_v51 = vpack.c.bf16 %v10527_v12, %v10517_v10  ;;  %v11453_v10 = vpack.c.bf16 %v10579_v26, %v10565_v22  ;;  %v8887_v12 = vld [vmem:[#allocation3 + $0x134] ss:$24 sps:$4 sm:$0xff]   ;;  %v11455_v22 = vpack.c.bf16 %v10631_v40, %v10615_v35 }
 0x168   :  { %1410 = vmatprep.subr.bf16.mxu0 %v8802_v37  ;;  %1492 = vmatprep.subr.bf16.mxu1 %v8890_v58  ;;  %v8867_v37 = vld [vmem:[#allocation3 + $0xa0] ss:$24 sps:$4 sm:$0xff]   ;;  %v8873_v58 = vld [vmem:[#allocation3 + $0xd0] ss:$24 sps:$4 sm:$0xff]   ;;  %v8899_v26 = vld [vmem:[#allocation3 + $0x194] ss:$24 sps:$4 sm:$0xff]  }
 0x169   :  { %v8911_v40 = vld [vmem:[#allocation3 + $0x1f4] ss:$24 sps:$4 sm:$0xff]  }
 0x16b   :  { %1411 = vmatpush1.bf16.msra.mxu0 %v8800_v28  ;;  %1493 = vmatpush1.bf16.msra.mxu1 %v8888_v6  ;;  %v8879_v28 = vld [vmem:[#allocation3 + $0x100] ss:$24 sps:$4 sm:$0xff]  }
 0x16c   :  { %1412 = vmatprep.subr.bf16.mxu0 %v8808_v49  ;;  %1494 = vmatprep.subr.bf16.mxu1 %v8896_v60  ;;  %v8885_v49 = vld [vmem:[#allocation3 + $0x130] ss:$24 sps:$4 sm:$0xff]   ;;  %v8891_v6 = vld [vmem:[#allocation3 + $0x160] ss:$24 sps:$4 sm:$0xff]  }
 0x16d   :  { %v8897_v60 = vld [vmem:[#allocation3 + $0x190] ss:$24 sps:$4 sm:$0xff]  }
 0x16f   :  { %1413 = vmatpush1.bf16.msra.mxu0 %v8806_v18  ;;  %1495 = vmatpush1.bf16.msra.mxu1 %v8894_v48  ;;  %v8903_v18 = vld [vmem:[#allocation3 + $0x1c0] ss:$24 sps:$4 sm:$0xff]  }
 0x170   :  { %1414 = vmatprep.subr.bf16.mxu0 %v8814_v19  ;;  %1496 = vmatprep.subr.bf16.mxu1 %v8902_v0  ;;  %v11457_v19 = vld [vmem:[#allocation37_spill] sm:$0xff]  ;;  %v11458_v48 = vld [vmem:[#allocation35_spill] sm:$0xff] }
 0x171   :  { %v11459_v35 = vpack.c.bf16 %v11457_v19, %v11458_v48  ;;  %v8909_v0 = vld [vmem:[#allocation3 + $0x1f0] ss:$24 sps:$4 sm:$0xff]  }
 0x172   :  { %v11466_v19 = vld [vmem:[#allocation26_spill] sm:$0xff]  ;;  %v11467_v48 = vld [vmem:[#allocation25_spill] sm:$0xff] }
 0x173   :  { %1415 = vmatpush1.bf16.msra.mxu0 %v8812_v34  ;;  %1497 = vmatpush1.bf16.msra.mxu1 %v8900_v54  ;;  %v8917_v34 = vld [vmem:[#allocation3 + $0x224] ss:$24 sps:$4 sm:$0xff]  }
 0x174   :  { %1416 = vmatprep.subr.bf16.mxu0 %v8820_v4  ;;  %1498 = vmatprep.subr.bf16.mxu1 %v8908_v8  ;;  %v8915_v4 = vld [vmem:[#allocation3 + $0x220] ss:$24 sps:$4 sm:$0xff]   ;;  %v8929_v54 = vld [vmem:[#allocation3 + $0x284] ss:$24 sps:$4 sm:$0xff]  }
 0x175   :  { %v8927_v8 = vld [vmem:[#allocation3 + $0x280] ss:$24 sps:$4 sm:$0xff]  }
 0x177   :  { %1417 = vmatpush1.bf16.msra.mxu0 %v8818_v53  ;;  %1499 = vmatpush1.bf16.msra.mxu1 %v8906_v36  ;;  %v8935_v53 = vld [vmem:[#allocation3 + $0x2b4] ss:$24 sps:$4 sm:$0xff]   ;;  %v8938_v36 = vld [vmem:[#allocation3 + $0x2e4] ss:$24 sps:$4 sm:$0xff]  }
 0x178   :  { %1418 = vmatprep.subr.bf16.mxu0 %v8826_v52  ;;  %1500 = vmatprep.subr.bf16.mxu1 %v8914_v56  ;;  %v8933_v52 = vld [vmem:[#allocation3 + $0x2b0] ss:$24 sps:$4 sm:$0xff]   ;;  %v8936_v56 = vld [vmem:[#allocation3 + $0x2e0] ss:$24 sps:$4 sm:$0xff]  }
 0x17b   :  { %1419 = vmatpush1.bf16.msra.mxu0 %v8824_v24  ;;  %1501 = vmatpush1.bf16.msra.mxu1 %v8912_v44  ;;  %v8941_v24 = vld [vmem:[#allocation3 + $0x314] ss:$24 sps:$4 sm:$0xff]   ;;  %v8944_v44 = vld [vmem:[#allocation3 + $0x344] ss:$24 sps:$4 sm:$0xff]  }
 0x17c   :  { %1420 = vmatprep.subr.bf16.mxu0 %v8832_v11  ;;  %1502 = vmatprep.subr.bf16.mxu1 %v8920_v63  ;;  %v8939_v11 = vld [vmem:[#allocation3 + $0x310] ss:$24 sps:$4 sm:$0xff]   ;;  %v8942_v63 = vld [vmem:[#allocation3 + $0x340] ss:$24 sps:$4 sm:$0xff]  }
 0x17f   :  { %1421 = vmatpush1.bf16.msra.mxu0 %v8830_v3  ;;  %1503 = vmatpush1.bf16.msra.mxu1 %v8918_v41  ;;  %v8947_v3 = vld [vmem:[#allocation3 + $0x374] ss:$24 sps:$4 sm:$0xff]  }
 0x180   :  { %1422 = vmatprep.subr.bf16.mxu0 %v8838_v57  ;;  %1504 = vmatprep.subr.bf16.mxu1 %v8926_v14  ;;  %v8945_v14 = vld [vmem:[#allocation3 + $0x370] ss:$24 sps:$4 sm:$0xff]  }
 0x183   :  { %1423 = vmatpush1.bf16.msra.mxu0 %v8836_v17  ;;  %1505 = vmatpush1.bf16.msra.mxu1 %v8924_v23  ;;  %v8950_v17 = vld [vmem:[#allocation3 + $0x3a4] ss:$24 sps:$4 sm:$0xff]   ;;  %v8948_v23 = vld [vmem:[#allocation3 + $0x3a0] ss:$24 sps:$4 sm:$0xff]  }
 0x184   :  { %1424 = vmatprep.subr.bf16.mxu0 %v8845_v55  ;;  %1506 = vmatprep.subr.bf16.mxu1 %v8932_v7  ;;  %v8953_v7 = vld [vmem:[#allocation3 + $0x3d4] ss:$24 sps:$4 sm:$0xff]  }
 0x187   :  { %1425 = vmatpush1.bf16.msra.mxu0 %v8843_v15  ;;  %1507 = vmatpush1.bf16.msra.mxu1 %v8930_v61  ;;  %v8951_v15 = vld [vmem:[#allocation3 + $0x3d0] ss:$24 sps:$4 sm:$0xff]  }
 0x188   :  { %1517 = vmatprep.subr.bf16.mxu0 %v8851_v9  ;;  %8596 = vmatprep.subr.bf16.mxu1 %v10261_v32  ;;  %v8957_v61 = vld [vmem:[#allocation3 + $0x430] ss:$24 sps:$4 sm:$0xff]  }
 0x18a   :  { %1427 = vmatmul.mubr.bf16.vlgmr.msra.gmra.mrb[0].mxu0 %v10948_v5  ;;  %1509 = vmatmul.mubr.bf16.vlgmr.msra.gmra.mrb[4].mxu1 %v10948_v5 }
 0x18b   :  { %1518 = vmatpush1.bf16.msra.mxu0 %v8849_v25  ;;  %1549 = vmatprep.mubr.bf16.mxu0 %v10933_v27  ;;  %v8875_v27 = vld [vmem:[#allocation3 + $0xd4] ss:$24 sps:$4 sm:$0xff]   ;;  %v8962_v25 = vld [vmem:[#allocation3 + $0x464] ss:$24 sps:$4 sm:$0xff]  }
 0x18c   :  { %1519 = vmatprep.subr.bf16.mxu0 %v8857_v38  ;;  %8598 = vmatpush3.bf16.msra.mxu1 %v11450_v46  ;;  %v8960_v38 = vld [vmem:[#allocation3 + $0x460] ss:$24 sps:$4 sm:$0xff]  }
 0x18d   :  { %8599 = vmatprep.subr.bf16.mxu1 %v10261_v32  ;;  %v8966_v46 = vld [vmem:[#allocation3 + $0x4c0] ss:$24 sps:$4 sm:$0xff]  }
 0x18f   :  { %1520 = vmatpush1.bf16.msra.mxu0 %v8855_v50  ;;  %v8965_v50 = vld [vmem:[#allocation3 + $0x494] ss:$24 sps:$4 sm:$0xff]  }
 0x190   :  { %1521 = vmatprep.subr.bf16.mxu0 %v8863_v59  ;;  %8601 = vmatpush3.bf16.msra.mxu1 %v11451_v51  ;;  %v8963_v59 = vld [vmem:[#allocation3 + $0x490] ss:$24 sps:$4 sm:$0xff]  }
 0x191   :  { %8602 = vmatprep.subr.bf16.mxu1 %v10261_v32  ;;  %v8969_v51 = vld [vmem:[#allocation3 + $0x4f0] ss:$24 sps:$4 sm:$0xff]  }
 0x193   :  { %1522 = vmatpush1.bf16.msra.mxu0 %v8861_v21  ;;  %v8968_v21 = vld [vmem:[#allocation3 + $0x4c4] ss:$24 sps:$4 sm:$0xff]  }
 0x194   :  { %1523 = vmatprep.subr.bf16.mxu0 %v8869_v30  ;;  %8604 = vmatpush3.bf16.msra.mxu1 %v11452_v1  ;;  %v8971_v30 = vld [vmem:[#allocation3 + $0x4f4] ss:$24 sps:$4 sm:$0xff]  }
 0x195   :  { %8605 = vmatprep.subr.bf16.mxu1 %v10261_v32  ;;  %v8977_v1 = vld [vmem:[#allocation3 + $0x554] ss:$24 sps:$4 sm:$0xff]  }
 0x197   :  { %1524 = vmatpush1.bf16.msra.mxu0 %v8867_v37  ;;  %v10263_v37 = vmov 0.0  }
 0x198   :  { %1525 = vmatprep.subr.bf16.mxu0 %v8875_v27  ;;  %8607 = vmatpush3.bf16.msra.mxu1 %v11453_v10  ;;  %v8974_v27 = vld [vmem:[#allocation3 + $0x524] ss:$24 sps:$4 sm:$0xff]   ;;  %v8978_v10 = vld [vmem:[#allocation3 + $0x580] ss:$24 sps:$4 sm:$0xff]  }
 0x199   :  { %8608 = vmatprep.subr.bf16.mxu1 %v10261_v32  ;;  %8569 = vmatprep.mubr.msk.f32.mxu1 %vm10262_vm2, %v10263_v37 }
 0x19b   :  { %1526 = vmatpush1.bf16.msra.mxu0 %v8873_v58  ;;  %v8972_v58 = vld [vmem:[#allocation3 + $0x520] ss:$24 sps:$4 sm:$0xff]  }
 0x19c   :  { %1527 = vmatprep.subr.bf16.mxu0 %v8881_v2  ;;  %8610 = vmatpush3.bf16.msra.mxu1 %v11454_v16  ;;  %v8975_v2 = vld [vmem:[#allocation3 + $0x550] ss:$24 sps:$4 sm:$0xff]  }
 0x19d   :  { %8611 = vmatprep.subr.bf16.mxu1 %v10261_v32  ;;  %v8981_v16 = vld [vmem:[#allocation3 + $0x5b0] ss:$24 sps:$4 sm:$0xff]  }
 0x19f   :  { %1528 = vmatpush1.bf16.msra.mxu0 %v8879_v28  ;;  %v8980_v28 = vld [vmem:[#allocation3 + $0x584] ss:$24 sps:$4 sm:$0xff]  }
 0x1a0   :  { %1529 = vmatprep.subr.bf16.mxu0 %v8887_v12  ;;  %8613 = vmatpush3.bf16.msra.mxu1 %v11455_v22  ;;  %v8983_v12 = vld [vmem:[#allocation3 + $0x5b4] ss:$24 sps:$4 sm:$0xff]  }
 0x1a1   :  { %8614 = vmatprep.subr.bf16.mxu1 %v10261_v32  ;;  %v11460_v22 = vld [vmem:[#allocation22_spill] sm:$0xff] }
 0x1a3   :  { %1530 = vmatpush1.bf16.msra.mxu0 %v8885_v49  ;;  %v8992_v49 = vld [vmem:[#allocation8 + $0x4] ss:$48 sps:$4 sm:$0xff]  }
 0x1a4   :  { %1531 = vmatprep.subr.bf16.mxu0 %v8893_v20  ;;  %8616 = vmatpush3.bf16.msra.mxu1 %v11456_v29  ;;  %v8986_v20 = vld [vmem:[#allocation3 + $0x5e4] ss:$24 sps:$4 sm:$0xff]  }
 0x1a5   :  { %8617 = vmatprep.subr.bf16.mxu1 %v10261_v32  ;;  %v11463_v29 = vld [vmem:[#allocation24_spill] sm:$0xff] }
 0x1a7   :  { %1532 = vmatpush1.bf16.msra.mxu0 %v8891_v6  ;;  %v8984_v6 = vld [vmem:[#allocation3 + $0x5e0] ss:$24 sps:$4 sm:$0xff]  }
 0x1a8   :  { %1533 = vmatprep.subr.bf16.mxu0 %v8899_v26  ;;  %8619 = vmatpush3.bf16.msra.mxu1 %v11459_v35  ;;  %v11461_v26 = vld [vmem:[#allocation21_spill] sm:$0xff]  ;;  %v11468_v35 = vpack.c.bf16 %v11466_v19, %v11467_v48 }
 0x1a9   :  { %3379 = vmatprep.subr.bf16.mxu1 %v8992_v49  ;;  %v8998_v19 = vld [vmem:[#allocation8 + $0x64] ss:$48 sps:$4 sm:$0xff]   ;;  %v8993_v48 = vld [vmem:[#allocation8 + $0x68] ss:$48 sps:$4 sm:$0xff]  }
 0x1ab   :  { %1534 = vmatpush1.bf16.msra.mxu0 %v8897_v60  ;;  %v11462_v60 = vpack.c.bf16 %v11460_v22, %v11461_v26  ;;  %v8987_v22 = vld [vmem:[#allocation8 + $0x8] ss:$48 sps:$4 sm:$0xff]  }
 0x1ac   :  { %1535 = vmatprep.subr.bf16.mxu0 %v8905_v31  ;;  %v11464_v31 = vld [vmem:[#allocation23_spill] sm:$0xff] }
 0x1af   :  { %1536 = vmatpush1.bf16.msra.mxu0 %v8903_v18  ;;  %v11465_v18 = vpack.c.bf16 %v11463_v29, %v11464_v31  ;;  %v8995_v29 = vld [vmem:[#allocation8 + $0x6c] ss:$48 sps:$4 sm:$0xff]   ;;  %v8990_v31 = vld [vmem:[#allocation8] ss:$48 sps:$4 sm:$0xff]  }
 0x1b0   :  { %1537 = vmatprep.subr.bf16.mxu0 %v8911_v40  ;;  %v11469_v40 = vld [vmem:[#allocation28_spill] sm:$0xff] }
 0x1b3   :  { %1538 = vmatpush1.bf16.msra.mxu0 %v8909_v0  ;;  %v11470_v0 = vld [vmem:[#allocation27_spill] sm:$0xff] }
 0x1b4   :  { %1539 = vmatprep.subr.bf16.mxu0 %v8917_v34  ;;  %v11471_v34 = vpack.c.bf16 %v11469_v40, %v11470_v0  ;;  %v9004_v40 = vld [vmem:[#allocation8 + $0xc4] ss:$48 sps:$4 sm:$0xff]   ;;  %v8999_v0 = vld [vmem:[#allocation8 + $0xc8] ss:$48 sps:$4 sm:$0xff]  }
 0x1b7   :  { %1540 = vmatpush1.bf16.msra.mxu0 %v8915_v4  ;;  %v11472_v4 = vld [vmem:[#allocation30_spill] sm:$0xff] }
 0x1b8   :  { %1541 = vmatprep.subr.bf16.mxu0 %v8923_v42  ;;  %v11473_v42 = vld [vmem:[#allocation29_spill] sm:$0xff] }
 0x1bb   :  { %1542 = vmatpush1.bf16.msra.mxu0 %v8921_v45  ;;  %v11474_v45 = vpack.c.bf16 %v11472_v4, %v11473_v42  ;;  %v9002_v4 = vld [vmem:[#allocation8 + $0xc0] ss:$48 sps:$4 sm:$0xff]   ;;  %v9010_v42 = vld [vmem:[#allocation8 + $0x124] ss:$48 sps:$4 sm:$0xff]  }
 0x1bc   :  { %1543 = vmatprep.subr.bf16.mxu0 %v8929_v54 }
 0x1bf   :  { %1544 = vmatpush1.bf16.msra.mxu0 %v8927_v8 }
 0x1c0   :  { %1545 = vmatprep.subr.bf16.mxu0 %v8935_v53  ;;  %v11475_v53 = vld [vmem:[#allocation32_spill] sm:$0xff] }
 0x1c3   :  { %1546 = vmatpush1.bf16.msra.mxu0 %v8933_v52  ;;  %v11476_v52 = vld [vmem:[#allocation31_spill] sm:$0xff] }
 0x1c4   :  { %1547 = vmatprep.subr.bf16.mxu0 %v8938_v36  ;;  %v11477_v36 = vpack.c.bf16 %v11475_v53, %v11476_v52  ;;  %v9016_v53 = vld [vmem:[#allocation8 + $0x184] ss:$48 sps:$4 sm:$0xff]   ;;  %v9011_v52 = vld [vmem:[#allocation8 + $0x188] ss:$48 sps:$4 sm:$0xff]  }
 0x1c7   :  { %1548 = vmatpush1.bf16.msra.mxu0 %v8936_v56 }
 0x1c8   :  { %1558 = vmatprep.subr.bf16.mxu0 %v8941_v24 }
 0x1ca   :  { %1550 = vmatmul.mubr.bf16.vlgmr.msra.gmra.mrb[4].mxu0 %v10935_v39  ;;  %v8956_v39 = vld [vmem:[#allocation3 + $0x404] ss:$24 sps:$4 sm:$0xff]  }
 0x1cb   :  { %1559 = vmatpush1.bf16.msra.mxu0 %v8939_v11  ;;  %1590 = vmatprep.mubr.bf16.mxu0 %v10939_v43  ;;  %v8954_v43 = vld [vmem:[#allocation3 + $0x400] ss:$24 sps:$4 sm:$0xff]   ;;  %v11478_v11 = vld [vmem:[#allocation34_spill] sm:$0xff] }
 0x1cc   :  { %v1986_v57 = vpop.xlane.xlu1 %1985  ;;  %1560 = vmatprep.subr.bf16.mxu0 %v8944_v44  ;;  %v11479_v44 = vld [vmem:[#allocation33_spill] sm:$0xff] }
 0x1cd   :  { %v1987_v41 = vsub.f32 %v10922_v62, %v1986_v57  ;;  %v11481_v57 = vld [vmem:[#allocation38_spill] sm:$0xff] }
 0x1cf   :  { %v1988_v55 = vmul.f32 1.442695, %v1987_v41  ;;  %1561 = vmatpush1.bf16.msra.mxu0 %v8942_v63  ;;  %v11480_v63 = vpack.c.bf16 %v11478_v11, %v11479_v44  ;;  %v11482_v41 = vld [vmem:[#allocation36_spill] sm:$0xff]  ;;  %v9017_v11 = vld [vmem:[#allocation8 + $0x1e8] ss:$48 sps:$4 sm:$0xff]  }
 0x1d0   :  { %1562 = vmatprep.subr.bf16.mxu0 %v8947_v3  ;;  %v8989_v3 = vld [vmem:[#allocation8 + $0xc] ss:$48 sps:$4 sm:$0xff]  }
 0x1d1   :  { %9995 = vpow2.f32 %v1988_v55  ;;  %v11031_v55 = vsub.s32 3, %v10783_v33  ;;  %v9025_v44 = vld [vmem:[#allocation8 + $0x24c] ss:$48 sps:$4 sm:$0xff]  }
 0x1d3   :  { %1563 = vmatpush1.bf16.msra.mxu0 %v8945_v14  ;;  %v11483_v14 = vpack.c.bf16 %v11481_v57, %v11482_v41  ;;  %v9023_v57 = vld [vmem:[#allocation8 + $0x248] ss:$48 sps:$4 sm:$0xff]   ;;  %v9031_v41 = vld [vmem:[#allocation8 + $0x2ac] ss:$48 sps:$4 sm:$0xff]  }
 0x1d4   :  { %1564 = vmatprep.subr.bf16.mxu0 %v8950_v17  ;;  %v11028_v17 = vsub.s32 2, %v10783_v33 }
 0x1d7   :  { %1565 = vmatpush1.bf16.msra.mxu0 %v8948_v23  ;;  %v11036_v23 = vld [vmem:[%s11378_s11] sm:$0x3f] }
 0x1d8   :  { %1566 = vmatprep.subr.bf16.mxu0 %v8953_v7  ;;  %v11041_v7 = vsub.s32 0, %v10783_v33 }
 0x1db   :  { %v10988_v9 = vpop.eup %9995  ;;  %1567 = vmatpush1.bf16.msra.mxu0 %v8951_v15  ;;  %v378_v15 = vrot.slane %v11036_v23, %v11031_v55 }
 0x1dc   :  { %v1990_v62 = vsel %vm1983_vm1, %v10988_v9, 0.0  ;;  %1568 = vmatprep.subr.bf16.mxu0 %v8956_v39 }
 0x1dd   :  { %1991 = vadd.xlane.f32.xlu1 %v1990_v62 }
 0x1df   :  { %1569 = vmatpush1.bf16.msra.mxu0 %v8954_v43  ;;  %v366_v43 = vrot.slane %v11036_v23, %v11041_v7 }
 0x1e0   :  { %1570 = vmatprep.subr.bf16.mxu0 %v8959_v13 }
 0x1e3   :  { %1571 = vmatpush1.bf16.msra.mxu0 %v8957_v61 }
 0x1e4   :  { %1572 = vmatprep.subr.bf16.mxu0 %v8962_v25 }
 0x1e7   :  { %1573 = vmatpush1.bf16.msra.mxu0 %v8960_v38 }
 0x1e8   :  { %1574 = vmatprep.subr.bf16.mxu0 %v8965_v50 }
 0x1eb   :  { %1575 = vmatpush1.bf16.msra.mxu0 %v8963_v59 }
 0x1ec   :  { %1576 = vmatprep.subr.bf16.mxu0 %v8968_v21 }
 0x1ef   :  { %1577 = vmatpush1.bf16.msra.mxu0 %v8966_v46 }
 0x1f0   :  { %1578 = vmatprep.subr.bf16.mxu0 %v8971_v30 }
 0x1f3   :  { %1579 = vmatpush1.bf16.msra.mxu0 %v8969_v51 }
 0x1f4   :  { %1580 = vmatprep.subr.bf16.mxu0 %v8974_v27 }
 0x1f7   :  { %1581 = vmatpush1.bf16.msra.mxu0 %v8972_v58 }
 0x1f8   :  { %1582 = vmatprep.subr.bf16.mxu0 %v8977_v1  ;;  %v10264_v1 = vmov 1966171168  }
 0x1fb   :  { %1583 = vmatpush1.bf16.msra.mxu0 %v8975_v2  ;;  %v1997_v2 = vunpack.c.l.s4 %v10264_v1  ;;  %v9050_v1 = vld [vmem:[#allocation8 + $0x3c0] ss:$48 sps:$4 sm:$0xff]  }
 0x1fc   :  { %1584 = vmatprep.subr.bf16.mxu0 %v8980_v28 }
 0x1fd   :  { %v1998_v28 = vunpack.c.0.s8 %v1997_v2  ;;  %v9058_v2 = vld [vmem:[#allocation8 + $0x424] ss:$48 sps:$4 sm:$0xff]  }
 0x1ff   :  { %1585 = vmatpush1.bf16.msra.mxu0 %v8978_v10  ;;  %v2001_v10 = vsub.s32 %v1998_v28, %v10783_v33  ;;  %v9053_v28 = vld [vmem:[#allocation8 + $0x428] ss:$48 sps:$4 sm:$0xff]  }
 0x200   :  { %1586 = vmatprep.subr.bf16.mxu0 %v8983_v12 }
 0x203   :  { %1587 = vmatpush1.bf16.msra.mxu0 %v8981_v16 }
 0x204   :  { %1588 = vmatprep.subr.bf16.mxu0 %v8986_v20  ;;  %v10059_v20 = vld [vmem:[%s11446_s5] sm:$0xf] }
 0x207   :  { %1589 = vmatpush1.bf16.msra.mxu0 %v8984_v6  ;;  %v11058_v6 = vpack.c.bf16 %v10059_v20, %v10059_v20  ;;  %v9067_v20 = vld [vmem:[#allocation8 + $0x4ec] ss:$48 sps:$4 sm:$0xff]  }
 0x208   :  { %8572 = vmatprep.subr.bf16.mxu0 %v10261_v32 }
 0x20a   :  { %1591 = vmatmul.mubr.bf16.vlgmr.msra.gmra.mrb[4].mxu0 %v10948_v5 }
 0x20b   :  { %8574 = vmatpush3.bf16.msra.mxu0 %v11462_v60  ;;  %8534 = vmatprep.mubr.msk.f32.mxu0 %vm10262_vm2, %v10263_v37 }
 0x20c   :  { %8575 = vmatprep.subr.bf16.mxu0 %v10261_v32 }
 0x20f   :  { %8577 = vmatpush3.bf16.msra.mxu0 %v11465_v18 }
 0x210   :  { %8578 = vmatprep.subr.bf16.mxu0 %v10261_v32 }
 0x213   :  { %8580 = vmatpush3.bf16.msra.mxu0 %v11468_v35  ;;  %v8996_v35 = vld [vmem:[#allocation8 + $0x60] ss:$48 sps:$4 sm:$0xff]  }
 0x214   :  { %8581 = vmatprep.subr.bf16.mxu0 %v10261_v32 }
 0x217   :  { %8583 = vmatpush3.bf16.msra.mxu0 %v11471_v34  ;;  %v9007_v34 = vld [vmem:[#allocation8 + $0x12c] ss:$48 sps:$4 sm:$0xff]  }
 0x218   :  { %8584 = vmatprep.subr.bf16.mxu0 %v10261_v32 }
 0x21b   :  { %8586 = vmatpush3.bf16.msra.mxu0 %v11474_v45  ;;  %v9005_v45 = vld [vmem:[#allocation8 + $0x128] ss:$48 sps:$4 sm:$0xff]  }
 0x21c   :  { %8587 = vmatprep.subr.bf16.mxu0 %v10261_v32 }
 0x21d   :  { %v1469_v54 = vpop.f32.mrb[0].mxu1 }
 0x21e   :  { %v1471_v8 = vpop.f32.mrb[1].mxu1 }
 0x21f   :  { %8589 = vmatpush3.bf16.msra.mxu0 %v11477_v36  ;;  %v1473_v56 = vpop.f32.mrb[2].mxu1  ;;  %v1472_v62 = vadd.f32 %v1471_v8, %v378_v15  ;;  %v9008_v8 = vld [vmem:[#allocation8 + $0x120] ss:$48 sps:$4 sm:$0xff]   ;;  %v9019_v36 = vld [vmem:[#allocation8 + $0x1ec] ss:$48 sps:$4 sm:$0xff]  }
 0x220   :  { %8590 = vmatprep.subr.bf16.mxu0 %v10261_v32  ;;  %v1474_v24 = vpop.f32.mrb[3].mxu1  ;;  %v9014_v56 = vld [vmem:[#allocation8 + $0x180] ss:$48 sps:$4 sm:$0xff]   ;;  %v9029_v15 = vld [vmem:[#allocation8 + $0x2a8] ss:$48 sps:$4 sm:$0xff]  }
 0x221   :  { %v9022_v24 = vld [vmem:[#allocation8 + $0x1e4] ss:$48 sps:$4 sm:$0xff]  }
 0x223   :  { %8592 = vmatpush3.bf16.msra.mxu0 %v11480_v63  ;;  %v9020_v63 = vld [vmem:[#allocation8 + $0x1e0] ss:$48 sps:$4 sm:$0xff]  }
 0x224   :  { %8593 = vmatprep.subr.bf16.mxu0 %v10261_v32  ;;  %v374_v32 = vrot.slane %v11036_v23, %v11028_v17 }
 0x226   :  { %v1470_v39 = vadd.f32 %v1469_v54, %v374_v32  ;;  %v9013_v54 = vld [vmem:[#allocation8 + $0x18c] ss:$48 sps:$4 sm:$0xff]   ;;  %v9034_v32 = vld [vmem:[#allocation8 + $0x2a4] ss:$48 sps:$4 sm:$0xff]  }
 0x227   :  { %8595 = vmatpush3.bf16.msra.mxu0 %v11483_v14  ;;  %v9026_v14 = vld [vmem:[#allocation8 + $0x240] ss:$48 sps:$4 sm:$0xff]  }
 0x228   :  { %3420 = vmatprep.subr.bf16.mxu0 %v8989_v3  ;;  %v9028_v3 = vld [vmem:[#allocation8 + $0x244] ss:$48 sps:$4 sm:$0xff]  }
 0x25d   :  { %v1428_v13 = vpop.f32.mrb[0].mxu0  ;;  %v1510_v61 = vpop.f32.mrb[4].mxu1 }
 0x25e   :  { %v8620_v25 = vadd.f32 %v1428_v13, %v366_v43  ;;  %v11047_v38 = vpop.f32.mrb[1].mxu0  ;;  %v11049_v50 = vadd.f32 %v1510_v61, %v1470_v39  ;;  %v1512_v59 = vpop.f32.mrb[5].mxu1  ;;  %v9037_v39 = vld [vmem:[#allocation8 + $0x30c] ss:$48 sps:$4 sm:$0xff]   ;;  %v9032_v43 = vld [vmem:[#allocation8 + $0x2a0] ss:$48 sps:$4 sm:$0xff]  }
 0x25f   :  { %v1432_v21 = vpop.f32.mrb[2].mxu0  ;;  %v1513_v46 = vadd.f32 %v1512_v59, %v1472_v62  ;;  %v1514_v30 = vpop.f32.mrb[6].mxu1  ;;  %v9040_v62 = vld [vmem:[#allocation8 + $0x304] ss:$48 sps:$4 sm:$0xff]   ;;  %v9035_v13 = vld [vmem:[#allocation8 + $0x308] ss:$48 sps:$4 sm:$0xff]  }
 0x260   :  { %v1433_v37 = vpop.f32.mrb[3].mxu0  ;;  %v1515_v51 = vpop.f32.mrb[7].mxu1  ;;  %v9043_v61 = vld [vmem:[#allocation8 + $0x36c] ss:$48 sps:$4 sm:$0xff]   ;;  %v9046_v59 = vld [vmem:[#allocation8 + $0x364] ss:$48 sps:$4 sm:$0xff]  }
 0x261   :  { %v11051_v27 = vadd.f32 %v8620_v25, %v1513_v46  ;;  %v9038_v25 = vld [vmem:[#allocation8 + $0x300] ss:$48 sps:$4 sm:$0xff]   ;;  %v9041_v21 = vld [vmem:[#allocation8 + $0x368] ss:$48 sps:$4 sm:$0xff]   ;;  %v9049_v46 = vld [vmem:[#allocation8 + $0x3cc] ss:$48 sps:$4 sm:$0xff]  }
 0x262   :  { %v9044_v30 = vld [vmem:[#allocation8 + $0x360] ss:$48 sps:$4 sm:$0xff]   ;;  %v9052_v37 = vld [vmem:[#allocation8 + $0x3c4] ss:$48 sps:$4 sm:$0xff]   ;;  %v9047_v51 = vld [vmem:[#allocation8 + $0x3c8] ss:$48 sps:$4 sm:$0xff]  }
 0x26a   :  { %v1992_v58 = vpop.xlane.xlu1 %1991 }
 0x26b   :  { %9997 = vrcp.f32 %v1992_v58  ;;  %v9055_v58 = vld [vmem:[#allocation8 + $0x42c] ss:$48 sps:$4 sm:$0xff]  }
 0x275   :  { %v9998_v12 = vpop.eup %9997 }
 0x276   :  { %v1994_v49 = vmul.f32 %v9998_v12, %v10988_v9  ;;  %v9001_v9 = vld [vmem:[#allocation8 + $0xcc] ss:$48 sps:$4 sm:$0xff]   ;;  %v9056_v12 = vld [vmem:[#allocation8 + $0x420] ss:$48 sps:$4 sm:$0xff]  }
 0x278   :  { %v2002_v16 = vrot.slane %v1994_v49, %v2001_v10  ;;  %2160 = vst [vmem:[#allocation15] sm:$0x3] %v1994_v49  ;;  %v9064_v49 = vld [vmem:[#allocation8 + $0x484] ss:$48 sps:$4 sm:$0xff]  }
 0x27a   :  { %v2010_v26 = vrot.slane %v2002_v16, %v2001_v10  ;;  %v2003_v60 = vcombine.high %v2002_v16, %v2002_v16  ;;  %v9059_v16 = vld [vmem:[#allocation8 + $0x488] ss:$48 sps:$4 sm:$0xff]  }
 0x27c   :  { %8535 = vmatmul.mubr.f32.vlgmr.msra.gmra.mrb[8].mxu0 %v2010_v26  ;;  %v2017_v18 = vrot.slane %v2003_v60, %v2001_v10  ;;  %v9061_v10 = vld [vmem:[#allocation8 + $0x48c] ss:$48 sps:$4 sm:$0xff]   ;;  %v9070_v26 = vld [vmem:[#allocation8 + $0x4e4] ss:$48 sps:$4 sm:$0xff]   ;;  %v9065_v60 = vld [vmem:[#allocation8 + $0x4e8] ss:$48 sps:$4 sm:$0xff]  }
 0x27d   :  { %3421 = vmatpush1.bf16.msra.mxu0 %v8987_v22  ;;  %3452 = vmatprep.mubr.bf16.mxu0 %v11058_v6  ;;  %v9062_v22 = vld [vmem:[#allocation8 + $0x480] ss:$48 sps:$4 sm:$0xff]  }
 0x27e   :  { %8570 = vmatmul.mubr.f32.vlgmr.msra.gmra.mrb[8].mxu1 %v2017_v18  ;;  %3422 = vmatprep.subr.bf16.mxu0 %v8995_v29  ;;  %v9073_v29 = vld [vmem:[#allocation8 + $0x54c] ss:$48 sps:$4 sm:$0xff]   ;;  %v9076_v18 = vld [vmem:[#allocation8 + $0x544] ss:$48 sps:$4 sm:$0xff]  }
 0x27f   :  { %3380 = vmatpush1.bf16.msra.mxu1 %v8990_v31  ;;  %3411 = vmatprep.mubr.bf16.mxu1 %v11058_v6  ;;  %v9068_v31 = vld [vmem:[#allocation8 + $0x4e0] ss:$48 sps:$4 sm:$0xff]  }
 0x280   :  { %3381 = vmatprep.subr.bf16.mxu1 %v8998_v19  ;;  %v9071_v19 = vld [vmem:[#allocation8 + $0x548] ss:$48 sps:$4 sm:$0xff]  }
 0x281   :  { %3423 = vmatpush1.bf16.msra.mxu0 %v8993_v48  ;;  %v9079_v48 = vld [vmem:[#allocation8 + $0x5ac] ss:$48 sps:$4 sm:$0xff]  }
 0x282   :  { %3424 = vmatprep.subr.bf16.mxu0 %v9001_v9  ;;  %v9074_v9 = vld [vmem:[#allocation8 + $0x540] ss:$48 sps:$4 sm:$0xff]  }
 0x283   :  { %3382 = vmatpush1.bf16.msra.mxu1 %v8996_v35  ;;  %v9082_v35 = vld [vmem:[#allocation8 + $0x5a4] ss:$48 sps:$4 sm:$0xff]  }
 0x284   :  { %3383 = vmatprep.subr.bf16.mxu1 %v9004_v40  ;;  %v9077_v40 = vld [vmem:[#allocation8 + $0x5a8] ss:$48 sps:$4 sm:$0xff]  }
 0x285   :  { %3425 = vmatpush1.bf16.msra.mxu0 %v8999_v0  ;;  %v9085_v0 = vld [vmem:[#allocation8 + $0x1c] ss:$48 sps:$4 sm:$0xff]  }
 0x286   :  { %3426 = vmatprep.subr.bf16.mxu0 %v9007_v34  ;;  %v9080_v34 = vld [vmem:[#allocation8 + $0x5a0] ss:$48 sps:$4 sm:$0xff]  }
 0x287   :  { %3384 = vmatpush1.bf16.msra.mxu1 %v9002_v4  ;;  %v10060_v4 = vld [vmem:[%s11447_s29] sm:$0xf] }
 0x288   :  { %3385 = vmatprep.subr.bf16.mxu1 %v9010_v42  ;;  %v11065_v42 = vpack.c.bf16 %v10060_v4, %v10060_v4 }
 0x289   :  { %3427 = vmatpush1.bf16.msra.mxu0 %v9005_v45  ;;  %v9088_v45 = vld [vmem:[#allocation8 + $0x14] ss:$48 sps:$4 sm:$0xff]  }
 0x28a   :  { %3428 = vmatprep.subr.bf16.mxu0 %v9013_v54  ;;  %v9083_v54 = vld [vmem:[#allocation8 + $0x18] ss:$48 sps:$4 sm:$0xff]  }
 0x28b   :  { %3386 = vmatpush1.bf16.msra.mxu1 %v9008_v8  ;;  %v9091_v8 = vld [vmem:[#allocation8 + $0x7c] ss:$48 sps:$4 sm:$0xff]  }
 0x28c   :  { %3387 = vmatprep.subr.bf16.mxu1 %v9016_v53  ;;  %v9086_v53 = vld [vmem:[#allocation8 + $0x10] ss:$48 sps:$4 sm:$0xff]  }
 0x28d   :  { %3429 = vmatpush1.bf16.msra.mxu0 %v9011_v52  ;;  %v9094_v52 = vld [vmem:[#allocation8 + $0x74] ss:$48 sps:$4 sm:$0xff]  }
 0x28e   :  { %3430 = vmatprep.subr.bf16.mxu0 %v9019_v36  ;;  %v9089_v36 = vld [vmem:[#allocation8 + $0x78] ss:$48 sps:$4 sm:$0xff]  }
 0x28f   :  { %3388 = vmatpush1.bf16.msra.mxu1 %v9014_v56  ;;  %v9097_v56 = vld [vmem:[#allocation8 + $0xdc] ss:$48 sps:$4 sm:$0xff]  }
 0x290   :  { %3389 = vmatprep.subr.bf16.mxu1 %v9022_v24  ;;  %v9092_v24 = vld [vmem:[#allocation8 + $0x70] ss:$48 sps:$4 sm:$0xff]  }
 0x291   :  { %3431 = vmatpush1.bf16.msra.mxu0 %v9017_v11  ;;  %v9100_v11 = vld [vmem:[#allocation8 + $0xd4] ss:$48 sps:$4 sm:$0xff]  }
 0x292   :  { %3432 = vmatprep.subr.bf16.mxu0 %v9025_v44  ;;  %v7783_v44 = vmul.f32 -1.442695, %v11051_v27  ;;  %v9115_v27 = vld [vmem:[#allocation8 + $0x1fc] ss:$48 sps:$4 sm:$0xff]  }
 0x293   :  { %3390 = vmatpush1.bf16.msra.mxu1 %v9020_v63  ;;  %v9095_v63 = vld [vmem:[#allocation8 + $0xd8] ss:$48 sps:$4 sm:$0xff]  }
 0x294   :  { %3391 = vmatprep.subr.bf16.mxu1 %v9028_v3  ;;  %v9103_v3 = vld [vmem:[#allocation8 + $0x13c] ss:$48 sps:$4 sm:$0xff]   ;;  %9999 = vpow2.f32 %v7783_v44  ;;  %v9146_v44 = vld [vmem:[#allocation8 + $0x3d0] ss:$48 sps:$4 sm:$0xff]  }
 0x295   :  { %3433 = vmatpush1.bf16.msra.mxu0 %v9023_v57  ;;  %v9098_v57 = vld [vmem:[#allocation8 + $0xd0] ss:$48 sps:$4 sm:$0xff]  }
 0x296   :  { %3434 = vmatprep.subr.bf16.mxu0 %v9031_v41  ;;  %v9106_v41 = vld [vmem:[#allocation8 + $0x134] ss:$48 sps:$4 sm:$0xff]  }
 0x297   :  { %3392 = vmatpush1.bf16.msra.mxu1 %v9026_v14  ;;  %v9101_v14 = vld [vmem:[#allocation8 + $0x138] ss:$48 sps:$4 sm:$0xff]  }
 0x298   :  { %3393 = vmatprep.subr.bf16.mxu1 %v9034_v32  ;;  %v9109_v32 = vld [vmem:[#allocation8 + $0x19c] ss:$48 sps:$4 sm:$0xff]  }
 0x299   :  { %3435 = vmatpush1.bf16.msra.mxu0 %v9029_v15  ;;  %v9104_v15 = vld [vmem:[#allocation8 + $0x130] ss:$48 sps:$4 sm:$0xff]  }
 0x29a   :  { %3436 = vmatprep.subr.bf16.mxu0 %v9037_v39  ;;  %v9112_v39 = vld [vmem:[#allocation8 + $0x194] ss:$48 sps:$4 sm:$0xff]  }
 0x29b   :  { %3394 = vmatpush1.bf16.msra.mxu1 %v9032_v43  ;;  %v9107_v43 = vld [vmem:[#allocation8 + $0x198] ss:$48 sps:$4 sm:$0xff]  }
 0x29c   :  { %3395 = vmatprep.subr.bf16.mxu1 %v9040_v62  ;;  %v9110_v62 = vld [vmem:[#allocation8 + $0x190] ss:$48 sps:$4 sm:$0xff]  }
 0x29d   :  { %3437 = vmatpush1.bf16.msra.mxu0 %v9035_v13  ;;  %v9118_v13 = vld [vmem:[#allocation8 + $0x1f4] ss:$48 sps:$4 sm:$0xff]  }
 0x29e   :  { %3438 = vmatprep.subr.bf16.mxu0 %v9043_v61  ;;  %v9113_v61 = vld [vmem:[#allocation8 + $0x1f8] ss:$48 sps:$4 sm:$0xff]  }
 0x29f   :  { %3396 = vmatpush1.bf16.msra.mxu1 %v9038_v25  ;;  %v9121_v25 = vld [vmem:[#allocation8 + $0x25c] ss:$48 sps:$4 sm:$0xff]  }
 0x2a0   :  { %3397 = vmatprep.subr.bf16.mxu1 %v9046_v59  ;;  %v10000_v59 = vpop.eup %9999 }
 0x2a1   :  { %3439 = vmatpush1.bf16.msra.mxu0 %v9041_v21  ;;  %v9116_v21 = vld [vmem:[#allocation8 + $0x1f0] ss:$48 sps:$4 sm:$0xff]  }
 0x2a2   :  { %3440 = vmatprep.subr.bf16.mxu0 %v9049_v46  ;;  %v9124_v46 = vld [vmem:[#allocation8 + $0x254] ss:$48 sps:$4 sm:$0xff]  }
 0x2a3   :  { %3398 = vmatpush1.bf16.msra.mxu1 %v9044_v30  ;;  %v9119_v30 = vld [vmem:[#allocation8 + $0x258] ss:$48 sps:$4 sm:$0xff]  }
 0x2a4   :  { %3399 = vmatprep.subr.bf16.mxu1 %v9052_v37  ;;  %v1603_v37 = vadd.f32 1.0, %v10000_v59  ;;  %v9167_v59 = vld [vmem:[#allocation8 + $0x558] ss:$48 sps:$4 sm:$0xff]  }
 0x2a5   :  { %3441 = vmatpush1.bf16.msra.mxu0 %v9047_v51  ;;  %v9127_v51 = vld [vmem:[#allocation8 + $0x2bc] ss:$48 sps:$4 sm:$0xff]  }
 0x2a6   :  { %3442 = vmatprep.subr.bf16.mxu0 %v9055_v58  ;;  %v9122_v58 = vld [vmem:[#allocation8 + $0x250] ss:$48 sps:$4 sm:$0xff]   ;;  %10001 = vrcp.f32 %v1603_v37  ;;  %v9173_v37 = vld [vmem:[#allocation8 + $0x5b8] ss:$48 sps:$4 sm:$0xff]  }
 0x2a7   :  { %3400 = vmatpush1.bf16.msra.mxu1 %v9050_v1  ;;  %v9130_v1 = vld [vmem:[#allocation8 + $0x2b4] ss:$48 sps:$4 sm:$0xff]  }
 0x2a8   :  { %3401 = vmatprep.subr.bf16.mxu1 %v9058_v2  ;;  %v9125_v2 = vld [vmem:[#allocation8 + $0x2b8] ss:$48 sps:$4 sm:$0xff]  }
 0x2a9   :  { %3443 = vmatpush1.bf16.msra.mxu0 %v9053_v28  ;;  %v11073_v28 = vsub.s32 1, %v10783_v33 }
 0x2aa   :  { %3444 = vmatprep.subr.bf16.mxu0 %v9061_v10  ;;  %v9133_v10 = vld [vmem:[#allocation8 + $0x31c] ss:$48 sps:$4 sm:$0xff]  }
 0x2ab   :  { %3402 = vmatpush1.bf16.msra.mxu1 %v9056_v12  ;;  %v11076_v12 = vsub.s32 4, %v10783_v33 }
 0x2ac   :  { %3403 = vmatprep.subr.bf16.mxu1 %v9064_v49  ;;  %v9128_v49 = vld [vmem:[#allocation8 + $0x2b0] ss:$48 sps:$4 sm:$0xff]  }
 0x2ad   :  { %3445 = vmatpush1.bf16.msra.mxu0 %v9059_v16  ;;  %v11079_v16 = vsub.s32 5, %v10783_v33 }
 0x2ae   :  { %3446 = vmatprep.subr.bf16.mxu0 %v9067_v20  ;;  %v9136_v20 = vld [vmem:[#allocation8 + $0x314] ss:$48 sps:$4 sm:$0xff]  }
 0x2af   :  { %3404 = vmatpush1.bf16.msra.mxu1 %v9062_v22  ;;  %v9131_v22 = vld [vmem:[#allocation8 + $0x318] ss:$48 sps:$4 sm:$0xff]  }
 0x2b0   :  { %3405 = vmatprep.subr.bf16.mxu1 %v9070_v26  ;;  %v370_v26 = vrot.slane %v11036_v23, %v11073_v28 }
 0x2b1   :  { %3447 = vmatpush1.bf16.msra.mxu0 %v9065_v60  ;;  %v382_v60 = vrot.slane %v11036_v23, %v11076_v12 }
 0x2b2   :  { %3448 = vmatprep.subr.bf16.mxu0 %v9073_v29  ;;  %v9139_v29 = vld [vmem:[#allocation8 + $0x37c] ss:$48 sps:$4 sm:$0xff]  }
 0x2b3   :  { %3406 = vmatpush1.bf16.msra.mxu1 %v9068_v31  ;;  %v386_v31 = vrot.slane %v11036_v23, %v11079_v16  ;;  %v9148_v23 = vld [vmem:[#allocation8 + $0x3d4] ss:$48 sps:$4 sm:$0xff]  }
 0x2b4   :  { %3407 = vmatprep.subr.bf16.mxu1 %v9076_v18  ;;  %v9134_v18 = vld [vmem:[#allocation8 + $0x310] ss:$48 sps:$4 sm:$0xff]  }
 0x2b5   :  { %3449 = vmatpush1.bf16.msra.mxu0 %v9071_v19  ;;  %v9142_v19 = vld [vmem:[#allocation8 + $0x374] ss:$48 sps:$4 sm:$0xff]  }
 0x2b6   :  { %3450 = vmatprep.subr.bf16.mxu0 %v9079_v48 }
 0x2b7   :  { %3408 = vmatpush1.bf16.msra.mxu1 %v9074_v9  ;;  %v9137_v9 = vld [vmem:[#allocation8 + $0x378] ss:$48 sps:$4 sm:$0xff]  }
 0x2b8   :  { %3409 = vmatprep.subr.bf16.mxu1 %v9082_v35  ;;  %v8621_v35 = vadd.f32 %v11047_v38, %v370_v26  ;;  %v9190_v26 = vld [vmem:[#allocation8 + $0x84] ss:$48 sps:$4 sm:$0xff]  }
 0x2b9   :  { %3451 = vmatpush1.bf16.msra.mxu0 %v9077_v40 }
 0x2ba   :  { %3502 = vmatprep.subr.bf16.mxu0 %v9085_v0 }
 0x2bb   :  { %3410 = vmatpush1.bf16.msra.mxu1 %v9080_v34  ;;  %v9145_v34 = vld [vmem:[#allocation8 + $0x3dc] ss:$48 sps:$4 sm:$0xff]  }
 0x2bc   :  { %3453 = vmatmul.mubr.bf16.vlgmr.msra.gmra.mrb[12].mxu0 %v11065_v42  ;;  %3461 = vmatprep.subr.bf16.mxu1 %v9088_v45 }
 0x2bd   :  { %3503 = vmatpush1.bf16.msra.mxu0 %v9083_v54  ;;  %3534 = vmatprep.mubr.bf16.mxu0 %v11058_v6  ;;  %v9140_v54 = vld [vmem:[#allocation8 + $0x370] ss:$48 sps:$4 sm:$0xff]  }
 0x2be   :  { %3412 = vmatmul.mubr.bf16.vlgmr.msra.gmra.mrb[12].mxu1 %v11065_v42  ;;  %3504 = vmatprep.subr.bf16.mxu0 %v9091_v8  ;;  %v10002_v8 = vpop.eup %10001 }
 0x2bf   :  { %3462 = vmatpush1.bf16.msra.mxu1 %v9086_v53  ;;  %3493 = vmatprep.mubr.bf16.mxu1 %v11058_v6 }
 0x2c0   :  { %3463 = vmatprep.subr.bf16.mxu1 %v9094_v52 }
 0x2c1   :  { %3505 = vmatpush1.bf16.msra.mxu0 %v9089_v36 }
 0x2c2   :  { %3506 = vmatprep.subr.bf16.mxu0 %v9097_v56  ;;  %v9143_v56 = vld [vmem:[#allocation8 + $0x3d8] ss:$48 sps:$4 sm:$0xff]  }
 0x2c3   :  { %3464 = vmatpush1.bf16.msra.mxu1 %v9092_v24 }
 0x2c4   :  { %3465 = vmatprep.subr.bf16.mxu1 %v9100_v11  ;;  %v9151_v11 = vld [vmem:[#allocation8 + $0x43c] ss:$48 sps:$4 sm:$0xff]  }
 0x2c5   :  { %3507 = vmatpush1.bf16.msra.mxu0 %v9095_v63  ;;  %v9154_v63 = vld [vmem:[#allocation8 + $0x434] ss:$48 sps:$4 sm:$0xff]  }
 0x2c6   :  { %3508 = vmatprep.subr.bf16.mxu0 %v9103_v3  ;;  %v9149_v3 = vld [vmem:[#allocation8 + $0x438] ss:$48 sps:$4 sm:$0xff]  }
 0x2c7   :  { %3466 = vmatpush1.bf16.msra.mxu1 %v9098_v57  ;;  %v9157_v57 = vld [vmem:[#allocation8 + $0x49c] ss:$48 sps:$4 sm:$0xff]  }
 0x2c8   :  { %3467 = vmatprep.subr.bf16.mxu1 %v9106_v41  ;;  %v9152_v41 = vld [vmem:[#allocation8 + $0x430] ss:$48 sps:$4 sm:$0xff]  }
 0x2c9   :  { %3509 = vmatpush1.bf16.msra.mxu0 %v9101_v14  ;;  %v9160_v14 = vld [vmem:[#allocation8 + $0x494] ss:$48 sps:$4 sm:$0xff]  }
 0x2ca   :  { %3510 = vmatprep.subr.bf16.mxu0 %v9109_v32  ;;  %v9155_v32 = vld [vmem:[#allocation8 + $0x498] ss:$48 sps:$4 sm:$0xff]  }
 0x2cb   :  { %3468 = vmatpush1.bf16.msra.mxu1 %v9104_v15  ;;  %v9163_v15 = vld [vmem:[#allocation8 + $0x4fc] ss:$48 sps:$4 sm:$0xff]  }
 0x2cc   :  { %3469 = vmatprep.subr.bf16.mxu1 %v9112_v39  ;;  %v9158_v39 = vld [vmem:[#allocation8 + $0x490] ss:$48 sps:$4 sm:$0xff]  }
 0x2cd   :  { %3511 = vmatpush1.bf16.msra.mxu0 %v9107_v43  ;;  %v9161_v43 = vld [vmem:[#allocation8 + $0x4f8] ss:$48 sps:$4 sm:$0xff]  }
 0x2ce   :  { %3512 = vmatprep.subr.bf16.mxu0 %v9115_v27 }
 0x2cf   :  { %3470 = vmatpush1.bf16.msra.mxu1 %v9110_v62  ;;  %v9169_v62 = vld [vmem:[#allocation8 + $0x55c] ss:$48 sps:$4 sm:$0xff]  }
 0x2d0   :  { %3471 = vmatprep.subr.bf16.mxu1 %v9118_v13 }
 0x2d1   :  { %3513 = vmatpush1.bf16.msra.mxu0 %v9113_v61  ;;  %v9164_v61 = vld [vmem:[#allocation8 + $0x4f0] ss:$48 sps:$4 sm:$0xff]  }
 0x2d2   :  { %3514 = vmatprep.subr.bf16.mxu0 %v9121_v25  ;;  %v9172_v25 = vld [vmem:[#allocation8 + $0x554] ss:$48 sps:$4 sm:$0xff]  }
 0x2d3   :  { %3472 = vmatpush1.bf16.msra.mxu1 %v9116_v21  ;;  %v9175_v21 = vld [vmem:[#allocation8 + $0x5bc] ss:$48 sps:$4 sm:$0xff]  }
 0x2d4   :  { %3473 = vmatprep.subr.bf16.mxu1 %v9124_v46  ;;  %v9170_v46 = vld [vmem:[#allocation8 + $0x550] ss:$48 sps:$4 sm:$0xff]  }
 0x2d5   :  { %3515 = vmatpush1.bf16.msra.mxu0 %v9119_v30  ;;  %v9178_v30 = vld [vmem:[#allocation8 + $0x5b4] ss:$48 sps:$4 sm:$0xff]  }
 0x2d6   :  { %3516 = vmatprep.subr.bf16.mxu0 %v9127_v51  ;;  %v9181_v51 = vld [vmem:[#allocation8 + $0x2c] ss:$48 sps:$4 sm:$0xff]  }
 0x2d7   :  { %3474 = vmatpush1.bf16.msra.mxu1 %v9122_v58  ;;  %v9176_v58 = vld [vmem:[#allocation8 + $0x5b0] ss:$48 sps:$4 sm:$0xff]  }
 0x2d8   :  { %3475 = vmatprep.subr.bf16.mxu1 %v9130_v1  ;;  %v9184_v1 = vld [vmem:[#allocation8 + $0x24] ss:$48 sps:$4 sm:$0xff]  }
 0x2d9   :  { %3517 = vmatpush1.bf16.msra.mxu0 %v9125_v2  ;;  %v9179_v2 = vld [vmem:[#allocation8 + $0x28] ss:$48 sps:$4 sm:$0xff]  }
 0x2da   :  { %3518 = vmatprep.subr.bf16.mxu0 %v9133_v10  ;;  %v9187_v10 = vld [vmem:[#allocation8 + $0x8c] ss:$48 sps:$4 sm:$0xff]  }
 0x2db   :  { %3476 = vmatpush1.bf16.msra.mxu1 %v9128_v49 }
 0x2dc   :  { %3477 = vmatprep.subr.bf16.mxu1 %v9136_v20  ;;  %v9182_v20 = vld [vmem:[#allocation8 + $0x20] ss:$48 sps:$4 sm:$0xff]  }
 0x2dd   :  { %v1592_v48 = vpop.f32.mrb[4].mxu0  ;;  %3519 = vmatpush1.bf16.msra.mxu0 %v9131_v22 }
 0x2de   :  { %v8622_v40 = vadd.f32 %v1592_v48, %v382_v60  ;;  %v1594_v0 = vpop.f32.mrb[5].mxu0  ;;  %3520 = vmatprep.subr.bf16.mxu0 %v9139_v29  ;;  %v9185_v29 = vld [vmem:[#allocation8 + $0x88] ss:$48 sps:$4 sm:$0xff]   ;;  %v9193_v48 = vld [vmem:[#allocation8 + $0xec] ss:$48 sps:$4 sm:$0xff]  }
 0x2df   :  { %v8623_v4 = vadd.f32 %v1594_v0, %v386_v31  ;;  %v1596_v45 = vpop.f32.mrb[6].mxu0  ;;  %3478 = vmatpush1.bf16.msra.mxu1 %v9134_v18  ;;  %v10061_v31 = vld [vmem:[%s11448_s27] sm:$0x3]  ;;  %v9191_v0 = vld [vmem:[#allocation8 + $0xe8] ss:$48 sps:$4 sm:$0xff]  }
 0x2e0   :  { %v1606_v53 = vadd.f32 %v8622_v40, %v8621_v35  ;;  %v1597_v52 = vpop.f32.mrb[7].mxu0  ;;  %3479 = vmatprep.subr.bf16.mxu1 %v9142_v19  ;;  %v9196_v40 = vld [vmem:[#allocation8 + $0xe4] ss:$48 sps:$4 sm:$0xff]  }
 0x2e1   :  { %v1613_v36 = vmul.f32 %v10002_v8, %v8623_v4  ;;  %3521 = vmatpush1.bf16.msra.mxu0 %v9137_v9  ;;  %v9188_v9 = vld [vmem:[#allocation8 + $0x80] ss:$48 sps:$4 sm:$0xff]   ;;  %v9202_v45 = vld [vmem:[#allocation8 + $0x144] ss:$48 sps:$4 sm:$0xff]   ;;  %v9205_v8 = vld [vmem:[#allocation8 + $0x1ac] ss:$48 sps:$4 sm:$0xff]  }
 0x2e2   :  { %v7784_v24 = vmul.f32 -1.442695, %v1606_v53  ;;  %3522 = vmatprep.subr.bf16.mxu0 %v9145_v34  ;;  %v9199_v34 = vld [vmem:[#allocation8 + $0x14c] ss:$48 sps:$4 sm:$0xff]   ;;  %v9194_v4 = vld [vmem:[#allocation8 + $0xe0] ss:$48 sps:$4 sm:$0xff]  }
 0x2e3   :  { %v1614_v38 = vadd.f32 %v1613_v36, %v11049_v50  ;;  %3480 = vmatpush1.bf16.msra.mxu1 %v9140_v54  ;;  %v9166_v50 = vld [vmem:[#allocation8 + $0x4f4] ss:$48 sps:$4 sm:$0xff]   ;;  %v9197_v54 = vld [vmem:[#allocation8 + $0x148] ss:$48 sps:$4 sm:$0xff]   ;;  %v9206_v36 = vld [vmem:[#allocation8 + $0x1a0] ss:$48 sps:$4 sm:$0xff]  }
 0x2e4   :  { %10003 = vpow2.f32 %v7784_v24  ;;  %3481 = vmatprep.subr.bf16.mxu1 %v9148_v23  ;;  %v9208_v53 = vld [vmem:[#allocation8 + $0x1a4] ss:$48 sps:$4 sm:$0xff]   ;;  %v9203_v52 = vld [vmem:[#allocation8 + $0x1a8] ss:$48 sps:$4 sm:$0xff]   ;;  %v9211_v23 = vld [vmem:[#allocation8 + $0x20c] ss:$48 sps:$4 sm:$0xff]  }
 0x2e5   :  { %3523 = vmatpush1.bf16.msra.mxu0 %v9143_v56  ;;  %v9214_v56 = vld [vmem:[#allocation8 + $0x204] ss:$48 sps:$4 sm:$0xff]   ;;  %v9209_v24 = vld [vmem:[#allocation8 + $0x208] ss:$48 sps:$4 sm:$0xff]  }
 0x2e6   :  { %3524 = vmatprep.subr.bf16.mxu0 %v9151_v11  ;;  %v9217_v11 = vld [vmem:[#allocation8 + $0x26c] ss:$48 sps:$4 sm:$0xff]  }
 0x2e7   :  { %3482 = vmatpush1.bf16.msra.mxu1 %v9146_v44  ;;  %v9220_v44 = vld [vmem:[#allocation8 + $0x264] ss:$48 sps:$4 sm:$0xff]  }
 0x2e8   :  { %3483 = vmatprep.subr.bf16.mxu1 %v9154_v63  ;;  %v9215_v63 = vld [vmem:[#allocation8 + $0x268] ss:$48 sps:$4 sm:$0xff]  }
 0x2e9   :  { %3525 = vmatpush1.bf16.msra.mxu0 %v9149_v3  ;;  %v9223_v3 = vld [vmem:[#allocation8 + $0x2cc] ss:$48 sps:$4 sm:$0xff]  }
 0x2ea   :  { %3526 = vmatprep.subr.bf16.mxu0 %v9157_v57  ;;  %v9218_v57 = vld [vmem:[#allocation8 + $0x260] ss:$48 sps:$4 sm:$0xff]  }
 0x2eb   :  { %3484 = vmatpush1.bf16.msra.mxu1 %v9152_v41  ;;  %v9226_v41 = vld [vmem:[#allocation8 + $0x2c4] ss:$48 sps:$4 sm:$0xff]  }
 0x2ec   :  { %3485 = vmatprep.subr.bf16.mxu1 %v9160_v14  ;;  %v9221_v14 = vld [vmem:[#allocation8 + $0x2c8] ss:$48 sps:$4 sm:$0xff]  }
 0x2ed   :  { %3527 = vmatpush1.bf16.msra.mxu0 %v9155_v32  ;;  %v9229_v32 = vld [vmem:[#allocation8 + $0x32c] ss:$48 sps:$4 sm:$0xff]  }
 0x2ee   :  { %v10004_v27 = vpop.eup %10003  ;;  %3528 = vmatprep.subr.bf16.mxu0 %v9163_v15  ;;  %v9224_v15 = vld [vmem:[#allocation8 + $0x2c0] ss:$48 sps:$4 sm:$0xff]  }
 0x2ef   :  { %v1610_v13 = vadd.f32 1.0, %v10004_v27  ;;  %3486 = vmatpush1.bf16.msra.mxu1 %v9158_v39  ;;  %v9232_v39 = vld [vmem:[#allocation8 + $0x324] ss:$48 sps:$4 sm:$0xff]   ;;  %v9230_v27 = vld [vmem:[#allocation8 + $0x320] ss:$48 sps:$4 sm:$0xff]  }
 0x2f0   :  { %3487 = vmatprep.subr.bf16.mxu1 %v9166_v50  ;;  %v9227_v50 = vld [vmem:[#allocation8 + $0x328] ss:$48 sps:$4 sm:$0xff]  }
 0x2f1   :  { %10005 = vrcp.f32 %v1610_v13  ;;  %3529 = vmatpush1.bf16.msra.mxu0 %v9161_v43  ;;  %v9235_v43 = vld [vmem:[#allocation8 + $0x38c] ss:$48 sps:$4 sm:$0xff]   ;;  %v9233_v13 = vld [vmem:[#allocation8 + $0x388] ss:$48 sps:$4 sm:$0xff]  }
 0x2f2   :  { %3530 = vmatprep.subr.bf16.mxu0 %v9169_v62  ;;  %10007 = vtanh.f32 %v1614_v38  ;;  %v9212_v38 = vld [vmem:[#allocation8 + $0x200] ss:$48 sps:$4 sm:$0xff]   ;;  %v9238_v62 = vld [vmem:[#allocation8 + $0x384] ss:$48 sps:$4 sm:$0xff]  }
 0x2f3   :  { %3488 = vmatpush1.bf16.msra.mxu1 %v9164_v61  ;;  %v9241_v61 = vld [vmem:[#allocation8 + $0x3ec] ss:$48 sps:$4 sm:$0xff]  }
 0x2f4   :  { %3489 = vmatprep.subr.bf16.mxu1 %v9172_v25  ;;  %v9236_v25 = vld [vmem:[#allocation8 + $0x380] ss:$48 sps:$4 sm:$0xff]  }
 0x2f5   :  { %3531 = vmatpush1.bf16.msra.mxu0 %v9167_v59  ;;  %v9244_v59 = vld [vmem:[#allocation8 + $0x3e4] ss:$48 sps:$4 sm:$0xff]  }
 0x2f6   :  { %3532 = vmatprep.subr.bf16.mxu0 %v9175_v21  ;;  %v9239_v21 = vld [vmem:[#allocation8 + $0x3e8] ss:$48 sps:$4 sm:$0xff]  }
 0x2f7   :  { %3490 = vmatpush1.bf16.msra.mxu1 %v9170_v46  ;;  %v9247_v46 = vld [vmem:[#allocation8 + $0x44c] ss:$48 sps:$4 sm:$0xff]  }
 0x2f8   :  { %3491 = vmatprep.subr.bf16.mxu1 %v9178_v30  ;;  %v9242_v30 = vld [vmem:[#allocation8 + $0x3e0] ss:$48 sps:$4 sm:$0xff]  }
 0x2f9   :  { %3533 = vmatpush1.bf16.msra.mxu0 %v9173_v37  ;;  %v9250_v37 = vld [vmem:[#allocation8 + $0x444] ss:$48 sps:$4 sm:$0xff]  }
 0x2fa   :  { %3584 = vmatprep.subr.bf16.mxu0 %v9181_v51  ;;  %v9245_v51 = vld [vmem:[#allocation8 + $0x448] ss:$48 sps:$4 sm:$0xff]  }
 0x2fb   :  { %v10006_v49 = vpop.eup %10005  ;;  %3492 = vmatpush1.bf16.msra.mxu1 %v9176_v58  ;;  %v9253_v58 = vld [vmem:[#allocation8 + $0x4ac] ss:$48 sps:$4 sm:$0xff]  }
 0x2fc   :  { %v1616_v22 = vsub.f32 1.0, %v10006_v49  ;;  %3535 = vmatmul.mubr.bf16.vlgmr.msra.gmra.mrb[16].mxu0 %v11065_v42  ;;  %3543 = vmatprep.subr.bf16.mxu1 %v9184_v1  ;;  %v10008_v60 = vpop.eup %10007  ;;  %v1618_v18 = vmul.f32 %v10061_v31, %v10006_v49  ;;  %v9248_v1 = vld [vmem:[#allocation8 + $0x440] ss:$48 sps:$4 sm:$0xff]   ;;  %v9259_v49 = vld [vmem:[#allocation8 + $0x50c] ss:$48 sps:$4 sm:$0xff]  }
 0x2fd   :  { %3585 = vmatpush1.bf16.msra.mxu0 %v9179_v2  ;;  %3616 = vmatprep.mubr.bf16.mxu0 %v11058_v6  ;;  %v9256_v2 = vld [vmem:[#allocation8 + $0x4a4] ss:$48 sps:$4 sm:$0xff]  }
 0x2fe   :  { %v1617_v19 = vmul.f32 %v10008_v60, %v1616_v22  ;;  %3494 = vmatmul.mubr.bf16.vlgmr.msra.gmra.mrb[16].mxu1 %v11065_v42  ;;  %3586 = vmatprep.subr.bf16.mxu0 %v9187_v10  ;;  %v9251_v10 = vld [vmem:[#allocation8 + $0x4a8] ss:$48 sps:$4 sm:$0xff]   ;;  %v9262_v22 = vld [vmem:[#allocation8 + $0x504] ss:$48 sps:$4 sm:$0xff]   ;;  %v9265_v60 = vld [vmem:[#allocation8 + $0x56c] ss:$48 sps:$4 sm:$0xff]  }
 0x2ff   :  { %3544 = vmatpush1.bf16.msra.mxu1 %v9182_v20  ;;  %3575 = vmatprep.mubr.bf16.mxu1 %v11058_v6  ;;  %v9200_v6 = vld [vmem:[#allocation8 + $0x140] ss:$48 sps:$4 sm:$0xff]   ;;  %v9268_v31 = vld [vmem:[#allocation8 + $0x564] ss:$48 sps:$4 sm:$0xff]  }
 0x300   :  { %v11096_v35 = vadd.f32 %v1618_v18, %v1617_v19  ;;  %3545 = vmatprep.subr.bf16.mxu1 %v9190_v26  ;;  %v9254_v20 = vld [vmem:[#allocation8 + $0x4a0] ss:$48 sps:$4 sm:$0xff]   ;;  %v9257_v26 = vld [vmem:[#allocation8 + $0x508] ss:$48 sps:$4 sm:$0xff]   ;;  %v9271_v19 = vld [vmem:[#allocation8 + $0x5cc] ss:$48 sps:$4 sm:$0xff]  }
 0x301   :  { %3587 = vmatpush1.bf16.msra.mxu0 %v9185_v29  ;;  %v9260_v29 = vld [vmem:[#allocation8 + $0x500] ss:$48 sps:$4 sm:$0xff]   ;;  %v9263_v18 = vld [vmem:[#allocation8 + $0x568] ss:$48 sps:$4 sm:$0xff]  }
 0x302   :  { %7535 = vst [vmem:[#allocation12] sm:$0x3] %v11096_v35  ;;  %3588 = vmatprep.subr.bf16.mxu0 %v9193_v48  ;;  %v9266_v48 = vld [vmem:[#allocation8 + $0x560] ss:$48 sps:$4 sm:$0xff]  }
 0x303   :  { %3546 = vmatpush1.bf16.msra.mxu1 %v9188_v9  ;;  %v9274_v9 = vld [vmem:[#allocation8 + $0x5c4] ss:$48 sps:$4 sm:$0xff]  }
 0x304   :  { %3547 = vmatprep.subr.bf16.mxu1 %v9196_v40  ;;  %v9269_v40 = vld [vmem:[#allocation8 + $0x5c8] ss:$48 sps:$4 sm:$0xff]  }
 0x305   :  { %3589 = vmatpush1.bf16.msra.mxu0 %v9191_v0  ;;  %v9277_v0 = vld [vmem:[#allocation6 + $0xc] ss:$24 sps:$4 sm:$0xff]  }
 0x306   :  { %3590 = vmatprep.subr.bf16.mxu0 %v9199_v34  ;;  %v9272_v34 = vld [vmem:[#allocation8 + $0x5c0] ss:$48 sps:$4 sm:$0xff]  }
 0x307   :  { %3548 = vmatpush1.bf16.msra.mxu1 %v9194_v4  ;;  %v9280_v4 = vld [vmem:[#allocation6 + $0x4] ss:$24 sps:$4 sm:$0xff]  }
 0x308   :  { %3549 = vmatprep.subr.bf16.mxu1 %v9202_v45  ;;  %v9275_v45 = vld [vmem:[#allocation6 + $0x8] ss:$24 sps:$4 sm:$0xff]  }
 0x309   :  { %3591 = vmatpush1.bf16.msra.mxu0 %v9197_v54  ;;  %v9283_v54 = vld [vmem:[#allocation6 + $0x3c] ss:$24 sps:$4 sm:$0xff]  }
 0x30a   :  { %3592 = vmatprep.subr.bf16.mxu0 %v9205_v8  ;;  %v9278_v8 = vld [vmem:[#allocation6] ss:$24 sps:$4 sm:$0xff]  }
 0x30b   :  { %3550 = vmatpush1.bf16.msra.mxu1 %v9200_v6  ;;  %v9286_v6 = vld [vmem:[#allocation6 + $0x34] ss:$24 sps:$4 sm:$0xff]  }
 0x30c   :  { %3551 = vmatprep.subr.bf16.mxu1 %v9208_v53  ;;  %v9281_v53 = vld [vmem:[#allocation6 + $0x38] ss:$24 sps:$4 sm:$0xff]  }
 0x30d   :  { %3593 = vmatpush1.bf16.msra.mxu0 %v9203_v52  ;;  %v9289_v52 = vld [vmem:[#allocation6 + $0x6c] ss:$24 sps:$4 sm:$0xff]  }
 0x30e   :  { %3594 = vmatprep.subr.bf16.mxu0 %v9211_v23  ;;  %v9284_v23 = vld [vmem:[#allocation6 + $0x30] ss:$24 sps:$4 sm:$0xff]  }
 0x30f   :  { %3552 = vmatpush1.bf16.msra.mxu1 %v9206_v36  ;;  %v9292_v36 = vld [vmem:[#allocation6 + $0x64] ss:$24 sps:$4 sm:$0xff]  }
 0x310   :  { %3553 = vmatprep.subr.bf16.mxu1 %v9214_v56  ;;  %v9287_v56 = vld [vmem:[#allocation6 + $0x68] ss:$24 sps:$4 sm:$0xff]  }
 0x311   :  { %3595 = vmatpush1.bf16.msra.mxu0 %v9209_v24  ;;  %v9295_v24 = vld [vmem:[#allocation6 + $0x9c] ss:$24 sps:$4 sm:$0xff]  }
 0x312   :  { %3596 = vmatprep.subr.bf16.mxu0 %v9217_v11  ;;  %v9290_v11 = vld [vmem:[#allocation6 + $0x60] ss:$24 sps:$4 sm:$0xff]  }
 0x313   :  { %3554 = vmatpush1.bf16.msra.mxu1 %v9212_v38  ;;  %v9298_v38 = vld [vmem:[#allocation6 + $0x94] ss:$24 sps:$4 sm:$0xff]  }
 0x314   :  { %3555 = vmatprep.subr.bf16.mxu1 %v9220_v44  ;;  %v9293_v44 = vld [vmem:[#allocation6 + $0x98] ss:$24 sps:$4 sm:$0xff]  }
 0x315   :  { %3597 = vmatpush1.bf16.msra.mxu0 %v9215_v63  ;;  %v9296_v63 = vld [vmem:[#allocation6 + $0x90] ss:$24 sps:$4 sm:$0xff]  }
 0x316   :  { %3598 = vmatprep.subr.bf16.mxu0 %v9223_v3  ;;  %v9304_v3 = vld [vmem:[#allocation6 + $0xc4] ss:$24 sps:$4 sm:$0xff]  }
 0x317   :  { %3556 = vmatpush1.bf16.msra.mxu1 %v9218_v57  ;;  %v9299_v57 = vld [vmem:[#allocation6 + $0xc8] ss:$24 sps:$4 sm:$0xff]  }
 0x318   :  { %3557 = vmatprep.subr.bf16.mxu1 %v9226_v41  ;;  %v9307_v41 = vld [vmem:[#allocation6 + $0xfc] ss:$24 sps:$4 sm:$0xff]  }
 0x319   :  { %3599 = vmatpush1.bf16.msra.mxu0 %v9221_v14  ;;  %v9302_v14 = vld [vmem:[#allocation6 + $0xc0] ss:$24 sps:$4 sm:$0xff]  }
 0x31a   :  { %3600 = vmatprep.subr.bf16.mxu0 %v9229_v32  ;;  %v9310_v32 = vld [vmem:[#allocation6 + $0xf4] ss:$24 sps:$4 sm:$0xff]  }
 0x31b   :  { %3558 = vmatpush1.bf16.msra.mxu1 %v9224_v15  ;;  %v9305_v15 = vld [vmem:[#allocation6 + $0xf8] ss:$24 sps:$4 sm:$0xff]  }
 0x31c   :  { %3559 = vmatprep.subr.bf16.mxu1 %v9232_v39  ;;  %v9313_v39 = vld [vmem:[#allocation6 + $0x12c] ss:$24 sps:$4 sm:$0xff]  }
 0x31d   :  { %3601 = vmatpush1.bf16.msra.mxu0 %v9227_v50 }
 0x31e   :  { %3602 = vmatprep.subr.bf16.mxu0 %v9235_v43  ;;  %v9308_v43 = vld [vmem:[#allocation6 + $0xf0] ss:$24 sps:$4 sm:$0xff]  }
 0x31f   :  { %3560 = vmatpush1.bf16.msra.mxu1 %v9230_v27 }
 0x320   :  { %3561 = vmatprep.subr.bf16.mxu1 %v9238_v62  ;;  %v9316_v62 = vld [vmem:[#allocation6 + $0x124] ss:$24 sps:$4 sm:$0xff]  }
 0x321   :  { %3603 = vmatpush1.bf16.msra.mxu0 %v9233_v13 }
 0x322   :  { %3604 = vmatprep.subr.bf16.mxu0 %v9241_v61  ;;  %v9311_v61 = vld [vmem:[#allocation6 + $0x128] ss:$24 sps:$4 sm:$0xff]  }
 0x323   :  { %3562 = vmatpush1.bf16.msra.mxu1 %v9236_v25 }
 0x324   :  { %3563 = vmatprep.subr.bf16.mxu1 %v9244_v59 }
 0x325   :  { %3605 = vmatpush1.bf16.msra.mxu0 %v9239_v21  ;;  %v9319_v21 = vld [vmem:[#allocation6 + $0x15c] ss:$24 sps:$4 sm:$0xff]  }
 0x326   :  { %3606 = vmatprep.subr.bf16.mxu0 %v9247_v46  ;;  %v9314_v46 = vld [vmem:[#allocation6 + $0x120] ss:$24 sps:$4 sm:$0xff]  }
 0x327   :  { %3564 = vmatpush1.bf16.msra.mxu1 %v9242_v30 }
 0x328   :  { %3565 = vmatprep.subr.bf16.mxu1 %v9250_v37  ;;  %v9322_v37 = vld [vmem:[#allocation6 + $0x154] ss:$24 sps:$4 sm:$0xff]  }
 0x329   :  { %3607 = vmatpush1.bf16.msra.mxu0 %v9245_v51  ;;  %v9317_v51 = vld [vmem:[#allocation6 + $0x158] ss:$24 sps:$4 sm:$0xff]  }
 0x32a   :  { %3608 = vmatprep.subr.bf16.mxu0 %v9253_v58  ;;  %v9325_v58 = vld [vmem:[#allocation6 + $0x18c] ss:$24 sps:$4 sm:$0xff]  }
 0x32b   :  { %3566 = vmatpush1.bf16.msra.mxu1 %v9248_v1  ;;  %v9320_v1 = vld [vmem:[#allocation6 + $0x150] ss:$24 sps:$4 sm:$0xff]  }
 0x32c   :  { %3567 = vmatprep.subr.bf16.mxu1 %v9256_v2  ;;  %v9328_v2 = vld [vmem:[#allocation6 + $0x184] ss:$24 sps:$4 sm:$0xff]  }
 0x32d   :  { %3609 = vmatpush1.bf16.msra.mxu0 %v9251_v10  ;;  %v9323_v10 = vld [vmem:[#allocation6 + $0x188] ss:$24 sps:$4 sm:$0xff]  }
 0x32e   :  { %3610 = vmatprep.subr.bf16.mxu0 %v9259_v49  ;;  %v9331_v49 = vld [vmem:[#allocation6 + $0x1bc] ss:$24 sps:$4 sm:$0xff]  }
 0x32f   :  { %3568 = vmatpush1.bf16.msra.mxu1 %v9254_v20  ;;  %v9326_v20 = vld [vmem:[#allocation6 + $0x180] ss:$24 sps:$4 sm:$0xff]  }
 0x330   :  { %3569 = vmatprep.subr.bf16.mxu1 %v9262_v22  ;;  %v9334_v22 = vld [vmem:[#allocation6 + $0x1b4] ss:$24 sps:$4 sm:$0xff]  }
 0x331   :  { %3611 = vmatpush1.bf16.msra.mxu0 %v9257_v26  ;;  %v9329_v26 = vld [vmem:[#allocation6 + $0x1b8] ss:$24 sps:$4 sm:$0xff]  }
 0x332   :  { %3612 = vmatprep.subr.bf16.mxu0 %v9265_v60  ;;  %v9337_v60 = vld [vmem:[#allocation6 + $0x1ec] ss:$24 sps:$4 sm:$0xff]  }
 0x333   :  { %3570 = vmatpush1.bf16.msra.mxu1 %v9260_v29  ;;  %v9332_v29 = vld [vmem:[#allocation6 + $0x1b0] ss:$24 sps:$4 sm:$0xff]  }
 0x334   :  { %3571 = vmatprep.subr.bf16.mxu1 %v9268_v31  ;;  %v9340_v31 = vld [vmem:[#allocation6 + $0x1e4] ss:$24 sps:$4 sm:$0xff]  }
 0x335   :  { %3613 = vmatpush1.bf16.msra.mxu0 %v9263_v18  ;;  %v9335_v18 = vld [vmem:[#allocation6 + $0x1e8] ss:$24 sps:$4 sm:$0xff]  }
 0x336   :  { %3614 = vmatprep.subr.bf16.mxu0 %v9271_v19  ;;  %v9343_v19 = vld [vmem:[#allocation6 + $0x21c] ss:$24 sps:$4 sm:$0xff]  }
 0x337   :  { %3572 = vmatpush1.bf16.msra.mxu1 %v9266_v48  ;;  %v9338_v48 = vld [vmem:[#allocation6 + $0x1e0] ss:$24 sps:$4 sm:$0xff]  }
 0x338   :  { %3573 = vmatprep.subr.bf16.mxu1 %v9274_v9  ;;  %v9346_v9 = vld [vmem:[#allocation6 + $0x214] ss:$24 sps:$4 sm:$0xff]  }
 0x339   :  { %3615 = vmatpush1.bf16.msra.mxu0 %v9269_v40  ;;  %v9341_v40 = vld [vmem:[#allocation6 + $0x218] ss:$24 sps:$4 sm:$0xff]  }
 0x33a   :  { %4610 = vmatprep.subr.bf16.mxu0 %v9277_v0  ;;  %v9349_v0 = vld [vmem:[#allocation6 + $0x24c] ss:$24 sps:$4 sm:$0xff]  }
 0x33b   :  { %3574 = vmatpush1.bf16.msra.mxu1 %v9272_v34  ;;  %v9344_v34 = vld [vmem:[#allocation6 + $0x210] ss:$24 sps:$4 sm:$0xff]  }
 0x33c   :  { %3617 = vmatmul.mubr.bf16.vlgmr.msra.gmra.mrb[20].mxu0 %v11065_v42  ;;  %4528 = vmatprep.subr.bf16.mxu1 %v9280_v4  ;;  %v9352_v4 = vld [vmem:[#allocation6 + $0x244] ss:$24 sps:$4 sm:$0xff]  }
 0x33d   :  { %4611 = vmatpush1.bf16.msra.mxu0 %v9275_v45  ;;  %4642 = vmatprep.mubr.bf16.mxu0 %v10948_v5  ;;  %v9347_v45 = vld [vmem:[#allocation6 + $0x248] ss:$24 sps:$4 sm:$0xff]  }
 0x33e   :  { %3576 = vmatmul.mubr.bf16.vlgmr.msra.gmra.mrb[20].mxu1 %v11065_v42  ;;  %4612 = vmatprep.subr.bf16.mxu0 %v9283_v54  ;;  %v9301_v42 = vld [vmem:[#allocation6 + $0xcc] ss:$24 sps:$4 sm:$0xff]   ;;  %v9355_v54 = vld [vmem:[#allocation6 + $0x27c] ss:$24 sps:$4 sm:$0xff]  }
 0x33f   :  { %4529 = vmatpush1.bf16.msra.mxu1 %v9278_v8  ;;  %4560 = vmatprep.mubr.bf16.mxu1 %v10948_v5  ;;  %v9350_v8 = vld [vmem:[#allocation6 + $0x240] ss:$24 sps:$4 sm:$0xff]  }
 0x340   :  { %4530 = vmatprep.subr.bf16.mxu1 %v9286_v6  ;;  %v9358_v6 = vld [vmem:[#allocation6 + $0x274] ss:$24 sps:$4 sm:$0xff]  }
 0x341   :  { %4613 = vmatpush1.bf16.msra.mxu0 %v9281_v53  ;;  %v9353_v53 = vld [vmem:[#allocation6 + $0x278] ss:$24 sps:$4 sm:$0xff]  }
 0x342   :  { %4614 = vmatprep.subr.bf16.mxu0 %v9289_v52  ;;  %v9361_v52 = vld [vmem:[#allocation6 + $0x2ac] ss:$24 sps:$4 sm:$0xff]  }
 0x343   :  { %4531 = vmatpush1.bf16.msra.mxu1 %v9284_v23  ;;  %v9356_v23 = vld [vmem:[#allocation6 + $0x270] ss:$24 sps:$4 sm:$0xff]  }
 0x344   :  { %4532 = vmatprep.subr.bf16.mxu1 %v9292_v36  ;;  %v9364_v36 = vld [vmem:[#allocation6 + $0x2a4] ss:$24 sps:$4 sm:$0xff]  }
 0x345   :  { %4615 = vmatpush1.bf16.msra.mxu0 %v9287_v56  ;;  %v9359_v56 = vld [vmem:[#allocation6 + $0x2a8] ss:$24 sps:$4 sm:$0xff]  }
 0x346   :  { %4616 = vmatprep.subr.bf16.mxu0 %v9295_v24  ;;  %v9367_v24 = vld [vmem:[#allocation6 + $0x2dc] ss:$24 sps:$4 sm:$0xff]  }
 0x347   :  { %4533 = vmatpush1.bf16.msra.mxu1 %v9290_v11  ;;  %v9362_v11 = vld [vmem:[#allocation6 + $0x2a0] ss:$24 sps:$4 sm:$0xff]  }
 0x348   :  { %4534 = vmatprep.subr.bf16.mxu1 %v9298_v38  ;;  %v9370_v38 = vld [vmem:[#allocation6 + $0x2d4] ss:$24 sps:$4 sm:$0xff]  }
 0x349   :  { %4617 = vmatpush1.bf16.msra.mxu0 %v9293_v44  ;;  %v9365_v44 = vld [vmem:[#allocation6 + $0x2d8] ss:$24 sps:$4 sm:$0xff]  }
 0x34a   :  { %4618 = vmatprep.subr.bf16.mxu0 %v9301_v42  ;;  %v9373_v42 = vld [vmem:[#allocation6 + $0x30c] ss:$24 sps:$4 sm:$0xff]  }
 0x34b   :  { %4535 = vmatpush1.bf16.msra.mxu1 %v9296_v63  ;;  %v9368_v63 = vld [vmem:[#allocation6 + $0x2d0] ss:$24 sps:$4 sm:$0xff]  }
 0x34c   :  { %4536 = vmatprep.subr.bf16.mxu1 %v9304_v3  ;;  %v9376_v3 = vld [vmem:[#allocation6 + $0x304] ss:$24 sps:$4 sm:$0xff]  }
 0x34d   :  { %4619 = vmatpush1.bf16.msra.mxu0 %v9299_v57  ;;  %v9371_v57 = vld [vmem:[#allocation6 + $0x308] ss:$24 sps:$4 sm:$0xff]  }
 0x34e   :  { %4620 = vmatprep.subr.bf16.mxu0 %v9307_v41 }
 0x34f   :  { %4537 = vmatpush1.bf16.msra.mxu1 %v9302_v14  ;;  %v2086_v50 = vpop.f32.mrb[8].mxu0  ;;  %v9379_v14 = vld [vmem:[#allocation6 + $0x33c] ss:$24 sps:$4 sm:$0xff]  }
 0x350   :  { %v8536_v27 = vpop.f32.mrb[9].mxu0  ;;  %4538 = vmatprep.subr.bf16.mxu1 %v9310_v32  ;;  %v9374_v32 = vld [vmem:[#allocation6 + $0x300] ss:$24 sps:$4 sm:$0xff]  }
 0x351   :  { %4621 = vmatpush1.bf16.msra.mxu0 %v9305_v15  ;;  %v2156_v13 = vpop.f32.mrb[8].mxu1  ;;  %v9382_v15 = vld [vmem:[#allocation6 + $0x334] ss:$24 sps:$4 sm:$0xff]   ;;  %v9380_v27 = vld [vmem:[#allocation6 + $0x330] ss:$24 sps:$4 sm:$0xff]  }
 0x352   :  { %v3627_v25 = vrot.slane %v2156_v13, 7  ;;  %v8571_v59 = vpop.f32.mrb[9].mxu1  ;;  %4622 = vmatprep.subr.bf16.mxu0 %v9313_v39  ;;  %v9377_v39 = vld [vmem:[#allocation6 + $0x338] ss:$24 sps:$4 sm:$0xff]   ;;  %v9383_v13 = vld [vmem:[#allocation6 + $0x368] ss:$24 sps:$4 sm:$0xff]  }
 0x353   :  { %4539 = vmatpush1.bf16.msra.mxu1 %v9308_v43  ;;  %v9385_v43 = vld [vmem:[#allocation6 + $0x36c] ss:$24 sps:$4 sm:$0xff]  }
 0x354   :  { %v11104_v30 = vsel %vm1979_vm15, %v3627_v25, %v2086_v50  ;;  %4540 = vmatprep.subr.bf16.mxu1 %v9316_v62  ;;  %v11484_v50 = vmov 0   ;;  %v9388_v62 = vld [vmem:[#allocation6 + $0x364] ss:$24 sps:$4 sm:$0xff]   ;;  %v9386_v25 = vld [vmem:[#allocation6 + $0x360] ss:$24 sps:$4 sm:$0xff]  }
 0x355   :  { %4623 = vmatpush1.bf16.msra.mxu0 %v9311_v61  ;;  %v11108_v41 = vpack.c.bf16 %v11104_v30, %v11104_v30  ;;  %v9391_v61 = vld [vmem:[#allocation6 + $0x39c] ss:$24 sps:$4 sm:$0xff]   ;;  %v9392_v30 = vld [vmem:[#allocation6 + $0x390] ss:$24 sps:$4 sm:$0xff]  }
 0x356   :  { %4624 = vmatprep.subr.bf16.mxu0 %v9319_v21  ;;  %v9394_v59 = vld [vmem:[#allocation6 + $0x394] ss:$24 sps:$4 sm:$0xff]   ;;  %v9389_v21 = vld [vmem:[#allocation6 + $0x398] ss:$24 sps:$4 sm:$0xff]  }
 0x357   :  { %4541 = vmatpush1.bf16.msra.mxu1 %v9314_v46  ;;  %v9397_v46 = vld [vmem:[#allocation6 + $0x3cc] ss:$24 sps:$4 sm:$0xff]  }
 0x358   :  { %4542 = vmatprep.subr.bf16.mxu1 %v9322_v37  ;;  %v9400_v37 = vld [vmem:[#allocation6 + $0x3c4] ss:$24 sps:$4 sm:$0xff]  }
 0x359   :  { %4625 = vmatpush1.bf16.msra.mxu0 %v9317_v51  ;;  %v9395_v51 = vld [vmem:[#allocation6 + $0x3c8] ss:$24 sps:$4 sm:$0xff]  }
 0x35a   :  { %4626 = vmatprep.subr.bf16.mxu0 %v9325_v58  ;;  %v9403_v58 = vld [vmem:[#allocation6 + $0x3fc] ss:$24 sps:$4 sm:$0xff]  }
 0x35b   :  { %4543 = vmatpush1.bf16.msra.mxu1 %v9320_v1  ;;  %v9398_v1 = vld [vmem:[#allocation6 + $0x3c0] ss:$24 sps:$4 sm:$0xff]  }
 0x35c   :  { %4544 = vmatprep.subr.bf16.mxu1 %v9328_v2  ;;  %v9406_v2 = vld [vmem:[#allocation6 + $0x3f4] ss:$24 sps:$4 sm:$0xff]  }
 0x35d   :  { %4627 = vmatpush1.bf16.msra.mxu0 %v9323_v10  ;;  %v9401_v10 = vld [vmem:[#allocation6 + $0x3f8] ss:$24 sps:$4 sm:$0xff]  }
 0x35e   :  { %4628 = vmatprep.subr.bf16.mxu0 %v9331_v49  ;;  %v9409_v49 = vld [vmem:[#allocation6 + $0x42c] ss:$24 sps:$4 sm:$0xff]  }
 0x35f   :  { %4545 = vmatpush1.bf16.msra.mxu1 %v9326_v20  ;;  %v9404_v20 = vld [vmem:[#allocation6 + $0x3f0] ss:$24 sps:$4 sm:$0xff]  }
 0x360   :  { %4546 = vmatprep.subr.bf16.mxu1 %v9334_v22 }
 0x361   :  { %4629 = vmatpush1.bf16.msra.mxu0 %v9329_v26  ;;  %v9412_v26 = vld [vmem:[#allocation6 + $0x424] ss:$24 sps:$4 sm:$0xff]  }
 0x362   :  { %4630 = vmatprep.subr.bf16.mxu0 %v9337_v60 }
 0x363   :  { %4547 = vmatpush1.bf16.msra.mxu1 %v9332_v29 }
 0x364   :  { %4548 = vmatprep.subr.bf16.mxu1 %v9340_v31  ;;  %v9407_v31 = vld [vmem:[#allocation6 + $0x428] ss:$24 sps:$4 sm:$0xff]  }
 0x365   :  { %4631 = vmatpush1.bf16.msra.mxu0 %v9335_v18 }
 0x366   :  { %4632 = vmatprep.subr.bf16.mxu0 %v9343_v19 }
 0x367   :  { %4549 = vmatpush1.bf16.msra.mxu1 %v9338_v48  ;;  %v9415_v48 = vld [vmem:[#allocation6 + $0x45c] ss:$24 sps:$4 sm:$0xff]  }
 0x368   :  { %4550 = vmatprep.subr.bf16.mxu1 %v9346_v9 }
 0x369   :  { %4633 = vmatpush1.bf16.msra.mxu0 %v9341_v40 }
 0x36a   :  { %4634 = vmatprep.subr.bf16.mxu0 %v9349_v0  ;;  %v9410_v0 = vld [vmem:[#allocation6 + $0x420] ss:$24 sps:$4 sm:$0xff]  }
 0x36b   :  { %4551 = vmatpush1.bf16.msra.mxu1 %v9344_v34 }
 0x36c   :  { %4552 = vmatprep.subr.bf16.mxu1 %v9352_v4  ;;  %v9418_v4 = vld [vmem:[#allocation6 + $0x454] ss:$24 sps:$4 sm:$0xff]  }
 0x36d   :  { %4635 = vmatpush1.bf16.msra.mxu0 %v9347_v45  ;;  %v145_v45 = vld [vmem:[%s11485_s26] sm:$0xf] }
 0x36e   :  { %4636 = vmatprep.subr.bf16.mxu0 %v9355_v54  ;;  %v9413_v54 = vld [vmem:[#allocation6 + $0x458] ss:$24 sps:$4 sm:$0xff]   ;;  %6062 = vperm.xlu1 %8698, %v145_v45  }
 0x36f   :  { %4553 = vmatpush1.bf16.msra.mxu1 %v9350_v8  ;;  %v6066_v8 = vsub.f32 1.0, %v145_v45  ;;  %v9472_v45 = vld [vmem:[#allocation6 + $0x344] ss:$24 sps:$4 sm:$0xff]  }
 0x370   :  { %4554 = vmatprep.subr.bf16.mxu1 %v9358_v6  ;;  %v9493_v6 = vld [vmem:[#allocation9 + $0x4] ss:$24 sps:$4 sm:$0xff]  }
 0x371   :  { %4637 = vmatpush1.bf16.msra.mxu0 %v9353_v53  ;;  %v9416_v53 = vld [vmem:[#allocation6 + $0x450] ss:$24 sps:$4 sm:$0xff]  }
 0x372   :  { %4638 = vmatprep.subr.bf16.mxu0 %v9361_v52  ;;  %v9421_v52 = vld [vmem:[#allocation6 + $0x14] ss:$24 sps:$4 sm:$0xff]   ;;  %6069 = vperm.xlu1 %8698, %v6066_v8  }
 0x373   :  { %4555 = vmatpush1.bf16.msra.mxu1 %v9356_v23  ;;  %v9491_v23 = vld [vmem:[#allocation9] ss:$24 sps:$4 sm:$0xff]   ;;  %v9475_v8 = vld [vmem:[#allocation6 + $0x374] ss:$24 sps:$4 sm:$0xff]  }
 0x374   :  { %4556 = vmatprep.subr.bf16.mxu1 %v9364_v36  ;;  %v11127_v36 = vpack.c.bf16 %v11096_v35, %v11096_v35  ;;  %v9425_v35 = vld [vmem:[#allocation6 + $0x70] ss:$24 sps:$4 sm:$0xff]  }
 0x375   :  { %4639 = vmatpush1.bf16.msra.mxu0 %v9359_v56  ;;  %v9419_v56 = vld [vmem:[#allocation6 + $0x10] ss:$24 sps:$4 sm:$0xff]  }
 0x376   :  { %4640 = vmatprep.subr.bf16.mxu0 %v9367_v24  ;;  %v9424_v24 = vld [vmem:[#allocation6 + $0x44] ss:$24 sps:$4 sm:$0xff]  }
 0x377   :  { %4557 = vmatpush1.bf16.msra.mxu1 %v9362_v11  ;;  %v9422_v11 = vld [vmem:[#allocation6 + $0x40] ss:$24 sps:$4 sm:$0xff]  }
 0x378   :  { %4558 = vmatprep.subr.bf16.mxu1 %v9370_v38  ;;  %v9427_v38 = vld [vmem:[#allocation6 + $0x74] ss:$24 sps:$4 sm:$0xff]  }
 0x379   :  { %4641 = vmatpush1.bf16.msra.mxu0 %v9365_v44  ;;  %v9430_v44 = vld [vmem:[#allocation6 + $0xa4] ss:$24 sps:$4 sm:$0xff]  }
 0x37a   :  { %4651 = vmatprep.subr.bf16.mxu0 %v9373_v42  ;;  %v9428_v42 = vld [vmem:[#allocation6 + $0xa0] ss:$24 sps:$4 sm:$0xff]  }
 0x37b   :  { %4559 = vmatpush1.bf16.msra.mxu1 %v9368_v63  ;;  %v9433_v63 = vld [vmem:[#allocation6 + $0xd4] ss:$24 sps:$4 sm:$0xff]  }
 0x37c   :  { %4643 = vmatmul.mubr.bf16.vlgmr.msra.gmra.mrb[24].mxu0 %v11108_v41  ;;  %4569 = vmatprep.subr.bf16.mxu1 %v9376_v3  ;;  %v9431_v3 = vld [vmem:[#allocation6 + $0xd0] ss:$24 sps:$4 sm:$0xff]  }
 0x37d   :  { %4652 = vmatpush1.bf16.msra.mxu0 %v9371_v57  ;;  %4683 = vmatprep.mubr.bf16.mxu0 %v11484_v50  ;;  %v9436_v57 = vld [vmem:[#allocation6 + $0x104] ss:$24 sps:$4 sm:$0xff]  }
 0x37e   :  { %4561 = vmatmul.mubr.bf16.vlgmr.msra.gmra.mrb[24].mxu1 %v11108_v41  ;;  %4653 = vmatprep.subr.bf16.mxu0 %v9379_v14  ;;  %v9434_v14 = vld [vmem:[#allocation6 + $0x100] ss:$24 sps:$4 sm:$0xff]  }
 0x37f   :  { %4570 = vmatpush1.bf16.msra.mxu1 %v9374_v32  ;;  %4601 = vmatprep.mubr.bf16.mxu1 %v11484_v50  ;;  %v9439_v32 = vld [vmem:[#allocation6 + $0x134] ss:$24 sps:$4 sm:$0xff]  }
 0x380   :  { %4571 = vmatprep.subr.bf16.mxu1 %v9382_v15  ;;  %v9437_v15 = vld [vmem:[#allocation6 + $0x130] ss:$24 sps:$4 sm:$0xff]  }
 0x381   :  { %4654 = vmatpush1.bf16.msra.mxu0 %v9377_v39  ;;  %v9442_v39 = vld [vmem:[#allocation6 + $0x164] ss:$24 sps:$4 sm:$0xff]  }
 0x382   :  { %4655 = vmatprep.subr.bf16.mxu0 %v9385_v43  ;;  %v9440_v43 = vld [vmem:[#allocation6 + $0x160] ss:$24 sps:$4 sm:$0xff]  }
 0x383   :  { %4572 = vmatpush1.bf16.msra.mxu1 %v9380_v27  ;;  %v9445_v27 = vld [vmem:[#allocation6 + $0x194] ss:$24 sps:$4 sm:$0xff]  }
 0x384   :  { %4573 = vmatprep.subr.bf16.mxu1 %v9388_v62  ;;  %v9443_v62 = vld [vmem:[#allocation6 + $0x190] ss:$24 sps:$4 sm:$0xff]  }
 0x385   :  { %4656 = vmatpush1.bf16.msra.mxu0 %v9383_v13  ;;  %v9448_v13 = vld [vmem:[#allocation6 + $0x1c4] ss:$24 sps:$4 sm:$0xff]  }
 0x386   :  { %4657 = vmatprep.subr.bf16.mxu0 %v9391_v61  ;;  %v9446_v61 = vld [vmem:[#allocation6 + $0x1c0] ss:$24 sps:$4 sm:$0xff]  }
 0x387   :  { %4574 = vmatpush1.bf16.msra.mxu1 %v9386_v25  ;;  %v9451_v25 = vld [vmem:[#allocation6 + $0x1f4] ss:$24 sps:$4 sm:$0xff]  }
 0x388   :  { %4575 = vmatprep.subr.bf16.mxu1 %v9394_v59  ;;  %v9449_v59 = vld [vmem:[#allocation6 + $0x1f0] ss:$24 sps:$4 sm:$0xff]  }
 0x389   :  { %4658 = vmatpush1.bf16.msra.mxu0 %v9389_v21  ;;  %v9454_v21 = vld [vmem:[#allocation6 + $0x224] ss:$24 sps:$4 sm:$0xff]  }
 0x38a   :  { %4659 = vmatprep.subr.bf16.mxu0 %v9397_v46  ;;  %v9452_v46 = vld [vmem:[#allocation6 + $0x220] ss:$24 sps:$4 sm:$0xff]  }
 0x38b   :  { %4576 = vmatpush1.bf16.msra.mxu1 %v9392_v30  ;;  %v9457_v30 = vld [vmem:[#allocation6 + $0x254] ss:$24 sps:$4 sm:$0xff]  }
 0x38c   :  { %4577 = vmatprep.subr.bf16.mxu1 %v9400_v37  ;;  %v9455_v37 = vld [vmem:[#allocation6 + $0x250] ss:$24 sps:$4 sm:$0xff]  }
 0x38d   :  { %4660 = vmatpush1.bf16.msra.mxu0 %v9395_v51  ;;  %v9460_v51 = vld [vmem:[#allocation6 + $0x284] ss:$24 sps:$4 sm:$0xff]  }
 0x38e   :  { %4661 = vmatprep.subr.bf16.mxu0 %v9403_v58  ;;  %v9458_v58 = vld [vmem:[#allocation6 + $0x280] ss:$24 sps:$4 sm:$0xff]  }
 0x38f   :  { %4578 = vmatpush1.bf16.msra.mxu1 %v9398_v1  ;;  %v11114_v22 = vpop.f32.mrb[12].mxu0 }
 0x390   :  { %4579 = vmatprep.subr.bf16.mxu1 %v9406_v2  ;;  %v11116_v60 = vpop.f32.mrb[13].mxu0  ;;  %v9463_v2 = vld [vmem:[#allocation6 + $0x2b4] ss:$24 sps:$4 sm:$0xff]  }
 0x391   :  { %v11118_v29 = vpop.f32.mrb[12].mxu1  ;;  %4662 = vmatpush1.bf16.msra.mxu0 %v9401_v10  ;;  %v3458_v18 = vpop.f32.mrb[14].mxu0 }
 0x392   :  { %v11120_v19 = vpop.f32.mrb[13].mxu1  ;;  %4663 = vmatprep.subr.bf16.mxu0 %v9409_v49  ;;  %v3459_v9 = vpop.f32.mrb[15].mxu0 }
 0x393   :  { %v3417_v40 = vpop.f32.mrb[14].mxu1  ;;  %4580 = vmatpush1.bf16.msra.mxu1 %v9404_v20 }
 0x394   :  { %v3418_v34 = vpop.f32.mrb[15].mxu1  ;;  %4581 = vmatprep.subr.bf16.mxu1 %v9412_v26  ;;  %v9466_v40 = vld [vmem:[#allocation6 + $0x2e4] ss:$24 sps:$4 sm:$0xff]  }
 0x395   :  { %4664 = vmatpush1.bf16.msra.mxu0 %v9407_v31  ;;  %v9469_v34 = vld [vmem:[#allocation6 + $0x314] ss:$24 sps:$4 sm:$0xff]  }
 0x396   :  { %4665 = vmatprep.subr.bf16.mxu0 %v9415_v48  ;;  %v9461_v48 = vld [vmem:[#allocation6 + $0x2b0] ss:$24 sps:$4 sm:$0xff]  }
 0x397   :  { %4582 = vmatpush1.bf16.msra.mxu1 %v9410_v0  ;;  %v9464_v0 = vld [vmem:[#allocation6 + $0x2e0] ss:$24 sps:$4 sm:$0xff]  }
 0x398   :  { %4583 = vmatprep.subr.bf16.mxu1 %v9418_v4  ;;  %v9467_v4 = vld [vmem:[#allocation6 + $0x310] ss:$24 sps:$4 sm:$0xff]  }
 0x399   :  { %4666 = vmatpush1.bf16.msra.mxu0 %v9413_v54  ;;  %v9470_v54 = vld [vmem:[#allocation6 + $0x340] ss:$24 sps:$4 sm:$0xff]  }
 0x39a   :  { %5748 = vmatprep.subr.bf16.mxu0 %v9493_v6  ;;  %v9473_v6 = vld [vmem:[#allocation6 + $0x370] ss:$24 sps:$4 sm:$0xff]  }
 0x39b   :  { %4584 = vmatpush1.bf16.msra.mxu1 %v9416_v53  ;;  %v9478_v53 = vld [vmem:[#allocation6 + $0x3a4] ss:$24 sps:$4 sm:$0xff]  }
 0x39c   :  { %4684 = vmatmul.mubr.bf16.vlgmr.msra.gmra.mrb[24].mxu0 %v11127_v36  ;;  %4692 = vmatprep.subr.bf16.mxu1 %v9421_v52  ;;  %v9476_v52 = vld [vmem:[#allocation6 + $0x3a0] ss:$24 sps:$4 sm:$0xff]  }
 0x39d   :  { %5749 = vmatpush1.bf16.msra.mxu0 %v9491_v23  ;;  %5780 = vmatprep.mubr.bf16.mxu0 %v10948_v5  ;;  %v9481_v23 = vld [vmem:[#allocation6 + $0x3d4] ss:$24 sps:$4 sm:$0xff]  }
 0x39e   :  { %4602 = vmatmul.mubr.bf16.vlgmr.msra.gmra.mrb[24].mxu1 %v11127_v36 }
 0x39f   :  { %4693 = vmatpush1.bf16.msra.mxu1 %v9419_v56  ;;  %4724 = vmatprep.mubr.bf16.mxu1 %v10948_v5  ;;  %v9479_v56 = vld [vmem:[#allocation6 + $0x3d0] ss:$24 sps:$4 sm:$0xff]  }
 0x3a0   :  { %4694 = vmatprep.subr.bf16.mxu1 %v9424_v24  ;;  %v9484_v24 = vld [vmem:[#allocation6 + $0x404] ss:$24 sps:$4 sm:$0xff]  }
 0x3a3   :  { %4695 = vmatpush1.bf16.msra.mxu1 %v9422_v11  ;;  %v9487_v11 = vld [vmem:[#allocation6 + $0x434] ss:$24 sps:$4 sm:$0xff]  }
 0x3a4   :  { %4696 = vmatprep.subr.bf16.mxu1 %v9427_v38  ;;  %v9499_v38 = vld [vmem:[#allocation9 + $0x34] ss:$24 sps:$4 sm:$0xff]  }
 0x3a5   :  { %5750 = vmatprep.subr.bf16.mxu0 %v9499_v38 }
 0x3a7   :  { %4697 = vmatpush1.bf16.msra.mxu1 %v9425_v35  ;;  %v9497_v35 = vld [vmem:[#allocation9 + $0x30] ss:$24 sps:$4 sm:$0xff]  }
 0x3a8   :  { %4698 = vmatprep.subr.bf16.mxu1 %v9430_v44  ;;  %v9485_v44 = vld [vmem:[#allocation6 + $0x430] ss:$24 sps:$4 sm:$0xff]   ;;  %5751 = vmatpush1.bf16.msra.mxu0 %v9497_v35 }
 0x3ab   :  { %4699 = vmatpush1.bf16.msra.mxu1 %v9428_v42  ;;  %v9490_v42 = vld [vmem:[#allocation6 + $0x464] ss:$24 sps:$4 sm:$0xff]  }
 0x3ac   :  { %4700 = vmatprep.subr.bf16.mxu1 %v9433_v63  ;;  %v9505_v63 = vld [vmem:[#allocation9 + $0x64] ss:$24 sps:$4 sm:$0xff]  }
 0x3ad   :  { %5752 = vmatprep.subr.bf16.mxu0 %v9505_v63 }
 0x3af   :  { %4701 = vmatpush1.bf16.msra.mxu1 %v9431_v3  ;;  %v9503_v3 = vld [vmem:[#allocation9 + $0x60] ss:$24 sps:$4 sm:$0xff]  }
 0x3b0   :  { %4702 = vmatprep.subr.bf16.mxu1 %v9436_v57  ;;  %v9488_v57 = vld [vmem:[#allocation6 + $0x460] ss:$24 sps:$4 sm:$0xff]   ;;  %5753 = vmatpush1.bf16.msra.mxu0 %v9503_v3  ;;  %v9538_v3 = vld [vmem:[#allocation9 + $0x15c] ss:$24 sps:$4 sm:$0xff]  }
 0x3b3   :  { %4703 = vmatpush1.bf16.msra.mxu1 %v9434_v14  ;;  %v9496_v14 = vld [vmem:[#allocation9 + $0xc] ss:$24 sps:$4 sm:$0xff]  }
 0x3b4   :  { %4704 = vmatprep.subr.bf16.mxu1 %v9439_v32  ;;  %v9511_v32 = vld [vmem:[#allocation9 + $0x94] ss:$24 sps:$4 sm:$0xff]  }
 0x3b5   :  { %5754 = vmatprep.subr.bf16.mxu0 %v9511_v32  ;;  %v9557_v32 = vld [vmem:[#allocation9 + $0x210] ss:$24 sps:$4 sm:$0xff]  }
 0x3b7   :  { %4705 = vmatpush1.bf16.msra.mxu1 %v9437_v15  ;;  %v9509_v15 = vld [vmem:[#allocation9 + $0x90] ss:$24 sps:$4 sm:$0xff]  }
 0x3b8   :  { %4706 = vmatprep.subr.bf16.mxu1 %v9442_v39  ;;  %v9494_v39 = vld [vmem:[#allocation9 + $0x8] ss:$24 sps:$4 sm:$0xff]   ;;  %5755 = vmatpush1.bf16.msra.mxu0 %v9509_v15  ;;  %v9544_v15 = vld [vmem:[#allocation9 + $0x18c] ss:$24 sps:$4 sm:$0xff]  }
 0x3bb   :  { %4707 = vmatpush1.bf16.msra.mxu1 %v9440_v43  ;;  %v9502_v43 = vld [vmem:[#allocation9 + $0x3c] ss:$24 sps:$4 sm:$0xff]  }
 0x3bc   :  { %4708 = vmatprep.subr.bf16.mxu1 %v9445_v27  ;;  %v9517_v27 = vld [vmem:[#allocation9 + $0xc4] ss:$24 sps:$4 sm:$0xff]  }
 0x3bd   :  { %5756 = vmatprep.subr.bf16.mxu0 %v9517_v27  ;;  %v9563_v27 = vld [vmem:[#allocation9 + $0x240] ss:$24 sps:$4 sm:$0xff]  }
 0x3bf   :  { %4709 = vmatpush1.bf16.msra.mxu1 %v9443_v62  ;;  %v9515_v62 = vld [vmem:[#allocation9 + $0xc0] ss:$24 sps:$4 sm:$0xff]  }
 0x3c0   :  { %4710 = vmatprep.subr.bf16.mxu1 %v9448_v13  ;;  %v9500_v13 = vld [vmem:[#allocation9 + $0x38] ss:$24 sps:$4 sm:$0xff]   ;;  %5757 = vmatpush1.bf16.msra.mxu0 %v9515_v62  ;;  %v9550_v62 = vld [vmem:[#allocation9 + $0x1bc] ss:$24 sps:$4 sm:$0xff]  }
 0x3c3   :  { %4711 = vmatpush1.bf16.msra.mxu1 %v9446_v61  ;;  %v9508_v61 = vld [vmem:[#allocation9 + $0x6c] ss:$24 sps:$4 sm:$0xff]  }
 0x3c4   :  { %4712 = vmatprep.subr.bf16.mxu1 %v9451_v25  ;;  %v9523_v25 = vld [vmem:[#allocation9 + $0xf4] ss:$24 sps:$4 sm:$0xff]  }
 0x3c5   :  { %5758 = vmatprep.subr.bf16.mxu0 %v9523_v25  ;;  %v9569_v25 = vld [vmem:[#allocation9 + $0x270] ss:$24 sps:$4 sm:$0xff]  }
 0x3c7   :  { %4713 = vmatpush1.bf16.msra.mxu1 %v9449_v59  ;;  %v9521_v59 = vld [vmem:[#allocation9 + $0xf0] ss:$24 sps:$4 sm:$0xff]  }
 0x3c8   :  { %4714 = vmatprep.subr.bf16.mxu1 %v9454_v21  ;;  %v9506_v21 = vld [vmem:[#allocation9 + $0x68] ss:$24 sps:$4 sm:$0xff]   ;;  %5759 = vmatpush1.bf16.msra.mxu0 %v9521_v59  ;;  %v9556_v59 = vld [vmem:[#allocation9 + $0x1ec] ss:$24 sps:$4 sm:$0xff]  }
 0x3cb   :  { %4715 = vmatpush1.bf16.msra.mxu1 %v9452_v46  ;;  %v9514_v46 = vld [vmem:[#allocation9 + $0x9c] ss:$24 sps:$4 sm:$0xff]  }
 0x3cc   :  { %4716 = vmatprep.subr.bf16.mxu1 %v9457_v30  ;;  %v9529_v30 = vld [vmem:[#allocation9 + $0x124] ss:$24 sps:$4 sm:$0xff]  }
 0x3cd   :  { %5760 = vmatprep.subr.bf16.mxu0 %v9529_v30  ;;  %v9577_v30 = vld [vmem:[#allocation9 + $0x2a4] ss:$24 sps:$4 sm:$0xff]  }
 0x3cf   :  { %4717 = vmatpush1.bf16.msra.mxu1 %v9455_v37  ;;  %v11133_v1 = vpop.f32.mrb[16].mxu0  ;;  %v9527_v37 = vld [vmem:[#allocation9 + $0x120] ss:$24 sps:$4 sm:$0xff]  }
 0x3d0   :  { %4718 = vmatprep.subr.bf16.mxu1 %v9460_v51  ;;  %v11135_v10 = vpop.f32.mrb[17].mxu0  ;;  %v9512_v51 = vld [vmem:[#allocation9 + $0x98] ss:$24 sps:$4 sm:$0xff]   ;;  %5761 = vmatpush1.bf16.msra.mxu0 %v9527_v37 }
 0x3d1   :  { %v11137_v49 = vpop.f32.mrb[16].mxu1  ;;  %v3540_v20 = vpop.f32.mrb[18].mxu0  ;;  %v9575_v37 = vld [vmem:[#allocation9 + $0x2a0] ss:$24 sps:$4 sm:$0xff]  }
 0x3d2   :  { %v11139_v26 = vpop.f32.mrb[17].mxu1  ;;  %v3541_v31 = vpop.f32.mrb[19].mxu0  ;;  %v9533_v20 = vld [vmem:[#allocation9 + $0x150] ss:$24 sps:$4 sm:$0xff]  }
 0x3d3   :  { %v3499_v18 = vpop.f32.mrb[18].mxu1  ;;  %4719 = vmatpush1.bf16.msra.mxu1 %v9458_v58  ;;  %v9520_v58 = vld [vmem:[#allocation9 + $0xcc] ss:$24 sps:$4 sm:$0xff]  }
 0x3d4   :  { %v3500_v9 = vpop.f32.mrb[19].mxu1  ;;  %4720 = vmatprep.subr.bf16.mxu1 %v9463_v2  ;;  %v9535_v2 = vld [vmem:[#allocation9 + $0x154] ss:$24 sps:$4 sm:$0xff]   ;;  %v9541_v31 = vld [vmem:[#allocation9 + $0x184] ss:$24 sps:$4 sm:$0xff]  }
 0x3d5   :  { %5762 = vmatprep.subr.bf16.mxu0 %v9535_v2  ;;  %v11148_v18 = vld [vmem:[%s11382_s15 + $0x8] sm:$0xf]  ;;  %v9539_v9 = vld [vmem:[#allocation9 + $0x180] ss:$24 sps:$4 sm:$0xff]   ;;  %v9583_v2 = vld [vmem:[#allocation9 + $0x2d4] ss:$24 sps:$4 sm:$0xff]  }
 0x3d6   :  { %5763 = vmatpush1.bf16.msra.mxu0 %v9533_v20  ;;  %v9581_v20 = vld [vmem:[#allocation9 + $0x2d0] ss:$24 sps:$4 sm:$0xff]  }
 0x3d7   :  { %4721 = vmatpush1.bf16.msra.mxu1 %v9461_v48  ;;  %v9518_v48 = vld [vmem:[#allocation9 + $0xc8] ss:$24 sps:$4 sm:$0xff]   ;;  %5764 = vmatprep.subr.bf16.mxu0 %v9541_v31 }
 0x3d8   :  { %4722 = vmatprep.subr.bf16.mxu1 %v9466_v40  ;;  %v2402_v40 = vrot.slane %v11148_v18, %v11028_v17  ;;  %v9566_v31 = vld [vmem:[#allocation9 + $0x248] ss:$24 sps:$4 sm:$0xff]  }
 0x3da   :  { %5765 = vmatpush1.bf16.msra.mxu0 %v9539_v9  ;;  %v9572_v9 = vld [vmem:[#allocation9 + $0x278] ss:$24 sps:$4 sm:$0xff]  }
 0x3db   :  { %4723 = vmatpush1.bf16.msra.mxu1 %v9464_v0  ;;  %v9526_v0 = vld [vmem:[#allocation9 + $0xfc] ss:$24 sps:$4 sm:$0xff]  }
 0x3dc   :  { %4733 = vmatprep.subr.bf16.mxu1 %v9469_v34  ;;  %v9547_v34 = vld [vmem:[#allocation9 + $0x1b4] ss:$24 sps:$4 sm:$0xff]  }
 0x3dd   :  { %5766 = vmatprep.subr.bf16.mxu0 %v9547_v34  ;;  %v9586_v34 = vld [vmem:[#allocation9 + $0x2dc] ss:$24 sps:$4 sm:$0xff]  }
 0x3de   :  { %4725 = vmatmul.mubr.bf16.vlgmr.msra.gmra.mrb[28].mxu1 %v11108_v41  ;;  %v9482_v41 = vld [vmem:[#allocation6 + $0x400] ss:$24 sps:$4 sm:$0xff]  }
 0x3df   :  { %4734 = vmatpush1.bf16.msra.mxu1 %v9467_v4  ;;  %4765 = vmatprep.mubr.bf16.mxu1 %v11484_v50  ;;  %v2406_v4 = vrot.slane %v11148_v18, %v11031_v55 }
 0x3e0   :  { %4735 = vmatprep.subr.bf16.mxu1 %v9472_v45 }
 0x3e3   :  { %4736 = vmatpush1.bf16.msra.mxu1 %v9470_v54  ;;  %v9524_v54 = vld [vmem:[#allocation9 + $0xf8] ss:$24 sps:$4 sm:$0xff]  }
 0x3e4   :  { %4737 = vmatprep.subr.bf16.mxu1 %v9475_v8  ;;  %v9545_v8 = vld [vmem:[#allocation9 + $0x1b0] ss:$24 sps:$4 sm:$0xff]  }
 0x3e5   :  { %5767 = vmatpush1.bf16.msra.mxu0 %v9545_v8  ;;  %v11165_v8 = vld [vmem:[%s11380_s13] sm:$0x3f] }
 0x3e7   :  { %4738 = vmatpush1.bf16.msra.mxu1 %v9473_v6 }
 0x3e8   :  { %4739 = vmatprep.subr.bf16.mxu1 %v9478_v53 }
 0x3eb   :  { %4740 = vmatpush1.bf16.msra.mxu1 %v9476_v52  ;;  %v9532_v52 = vld [vmem:[#allocation9 + $0x12c] ss:$24 sps:$4 sm:$0xff]  }
 0x3ec   :  { %4741 = vmatprep.subr.bf16.mxu1 %v9481_v23  ;;  %v9553_v23 = vld [vmem:[#allocation9 + $0x1e4] ss:$24 sps:$4 sm:$0xff]  }
 0x3ed   :  { %5768 = vmatprep.subr.bf16.mxu0 %v9553_v23  ;;  %v3781_v23 = vrot.slane %v11165_v8, %v11041_v7 }
 0x3ef   :  { %4742 = vmatpush1.bf16.msra.mxu1 %v9479_v56 }
 0x3f0   :  { %4743 = vmatprep.subr.bf16.mxu1 %v9484_v24 }
 0x3f3   :  { %4744 = vmatpush1.bf16.msra.mxu1 %v9482_v41 }
 0x3f4   :  { %4745 = vmatprep.subr.bf16.mxu1 %v9487_v11 }
 0x3f7   :  { %4746 = vmatpush1.bf16.msra.mxu1 %v9485_v44  ;;  %v9530_v44 = vld [vmem:[#allocation9 + $0x128] ss:$24 sps:$4 sm:$0xff]  }
 0x3f8   :  { %4747 = vmatprep.subr.bf16.mxu1 %v9490_v42  ;;  %v9551_v42 = vld [vmem:[#allocation9 + $0x1e0] ss:$24 sps:$4 sm:$0xff]  }
 0x3f9   :  { %5769 = vmatpush1.bf16.msra.mxu0 %v9551_v42 }
 0x3fb   :  { %4748 = vmatpush1.bf16.msra.mxu1 %v9488_v57  ;;  %v9559_v57 = vld [vmem:[#allocation9 + $0x214] ss:$24 sps:$4 sm:$0xff]  }
 0x3fc   :  { %5830 = vmatprep.subr.bf16.mxu1 %v9496_v14  ;;  %v9536_v14 = vld [vmem:[#allocation9 + $0x158] ss:$24 sps:$4 sm:$0xff]   ;;  %5770 = vmatprep.subr.bf16.mxu0 %v9559_v57 }
 0x3fd   :  { %5771 = vmatpush1.bf16.msra.mxu0 %v9557_v32 }
 0x3fe   :  { %4766 = vmatmul.mubr.bf16.vlgmr.msra.gmra.mrb[28].mxu1 %v11127_v36 }
 0x3ff   :  { %5831 = vmatpush1.bf16.msra.mxu1 %v9494_v39  ;;  %5862 = vmatprep.mubr.bf16.mxu1 %v10948_v5  ;;  %v9565_v39 = vld [vmem:[#allocation9 + $0x244] ss:$24 sps:$4 sm:$0xff]  }
 0x400   :  { %5832 = vmatprep.subr.bf16.mxu1 %v9502_v43  ;;  %v9542_v43 = vld [vmem:[#allocation9 + $0x188] ss:$24 sps:$4 sm:$0xff]   ;;  %5772 = vmatprep.subr.bf16.mxu0 %v9565_v39 }
 0x401   :  { %5773 = vmatpush1.bf16.msra.mxu0 %v9563_v27 }
 0x403   :  { %5833 = vmatpush1.bf16.msra.mxu1 %v9500_v13  ;;  %v9571_v13 = vld [vmem:[#allocation9 + $0x274] ss:$24 sps:$4 sm:$0xff]  }
 0x404   :  { %5834 = vmatprep.subr.bf16.mxu1 %v9508_v61  ;;  %v9548_v61 = vld [vmem:[#allocation9 + $0x1b8] ss:$24 sps:$4 sm:$0xff]   ;;  %5774 = vmatprep.subr.bf16.mxu0 %v9571_v13 }
 0x405   :  { %5775 = vmatpush1.bf16.msra.mxu0 %v9569_v25 }
 0x406   :  { %5776 = vmatprep.subr.bf16.mxu0 %v9577_v30 }
 0x407   :  { %5835 = vmatpush1.bf16.msra.mxu1 %v9506_v21  ;;  %v9554_v21 = vld [vmem:[#allocation9 + $0x1e8] ss:$24 sps:$4 sm:$0xff]  }
 0x408   :  { %5836 = vmatprep.subr.bf16.mxu1 %v9514_v46  ;;  %v9562_v46 = vld [vmem:[#allocation9 + $0x21c] ss:$24 sps:$4 sm:$0xff]  }
 0x409   :  { %5777 = vmatpush1.bf16.msra.mxu0 %v9575_v37 }
 0x40a   :  { %5778 = vmatprep.subr.bf16.mxu0 %v9583_v2 }
 0x40b   :  { %5837 = vmatpush1.bf16.msra.mxu1 %v9512_v51  ;;  %v9560_v51 = vld [vmem:[#allocation9 + $0x218] ss:$24 sps:$4 sm:$0xff]  }
 0x40c   :  { %5838 = vmatprep.subr.bf16.mxu1 %v9520_v58  ;;  %v9568_v58 = vld [vmem:[#allocation9 + $0x24c] ss:$24 sps:$4 sm:$0xff]  }
 0x40d   :  { %5779 = vmatpush1.bf16.msra.mxu0 %v9581_v20 }
 0x40f   :  { %v3618_v45 = vpop.f32.mrb[20].mxu0  ;;  %5839 = vmatpush1.bf16.msra.mxu1 %v9518_v48  ;;  %v9574_v48 = vld [vmem:[#allocation9 + $0x27c] ss:$24 sps:$4 sm:$0xff]  }
 0x410   :  { %v11154_v6 = vadd.f32 %v3618_v45, %v2402_v40  ;;  %v3620_v53 = vpop.f32.mrb[21].mxu0  ;;  %5840 = vmatprep.subr.bf16.mxu1 %v9526_v0  ;;  %v9580_v40 = vld [vmem:[#allocation9 + $0x2ac] ss:$24 sps:$4 sm:$0xff]   ;;  %v9578_v0 = vld [vmem:[#allocation9 + $0x2a8] ss:$24 sps:$4 sm:$0xff]  }
 0x411   :  { %v11156_v56 = vpop.f32.mrb[20].mxu1  ;;  %v11158_v24 = vadd.f32 %v3620_v53, %v2406_v4  ;;  %v3622_v41 = vpop.f32.mrb[22].mxu0  ;;  %v9584_v4 = vld [vmem:[#allocation9 + $0x2d8] ss:$24 sps:$4 sm:$0xff]   ;;  %v9589_v45 = vld [vmem:[#allocation9 + $0x304] ss:$24 sps:$4 sm:$0xff]   ;;  %v3793_v53 = vrot.slane %v11165_v8, %v11031_v55 }
 0x412   :  { %v11160_v11 = vpop.f32.mrb[21].mxu1  ;;  %v3623_v38 = vpop.f32.mrb[23].mxu0  ;;  %5789 = vmatprep.subr.bf16.mxu0 %v9589_v45 }
 0x413   :  { %v3581_v35 = vpop.f32.mrb[22].mxu1  ;;  %5841 = vmatpush1.bf16.msra.mxu1 %v9524_v54  ;;  %v9592_v54 = vld [vmem:[#allocation9 + $0x30c] ss:$24 sps:$4 sm:$0xff]   ;;  %v3785_v38 = vrot.slane %v11165_v8, %v11073_v28 }
 0x414   :  { %v3582_v63 = vpop.f32.mrb[23].mxu1  ;;  %5842 = vmatprep.subr.bf16.mxu1 %v9532_v52  ;;  %v11172_v52 = vld [vmem:[%s11382_s15] sm:$0xff] }
 0x415   :  { %v2374_v35 = vrot.slane %v11172_v52, %v11031_v55  ;;  %v2362_v42 = vrot.slane %v11172_v52, %v11041_v7 }
 0x417   :  { %5843 = vmatpush1.bf16.msra.mxu1 %v9530_v44  ;;  %v3457_v13 = vadd.f32 %v11116_v60, %v2374_v35 }
 0x418   :  { %5844 = vmatprep.subr.bf16.mxu1 %v9538_v3 }
 0x41b   :  { %5845 = vmatpush1.bf16.msra.mxu1 %v9536_v14  ;;  %v2366_v14 = vrot.slane %v11172_v52, %v11073_v28 }
 0x41c   :  { %5846 = vmatprep.subr.bf16.mxu1 %v9544_v15 }
 0x41d   :  { %v3416_v30 = vadd.f32 %v11120_v19, %v2366_v14  ;;  %v3789_v19 = vrot.slane %v11165_v8, %v11028_v17 }
 0x41f   :  { %5847 = vmatpush1.bf16.msra.mxu1 %v9542_v43 }
 0x420   :  { %5848 = vmatprep.subr.bf16.mxu1 %v9550_v62 }
 0x423   :  { %5849 = vmatpush1.bf16.msra.mxu1 %v9548_v61 }
 0x424   :  { %5850 = vmatprep.subr.bf16.mxu1 %v9556_v59  ;;  %v3414_v59 = vadd.f32 %v11118_v29, %v2362_v42 }
 0x427   :  { %5851 = vmatpush1.bf16.msra.mxu1 %v9554_v21 }
 0x428   :  { %5852 = vmatprep.subr.bf16.mxu1 %v9562_v46 }
 0x42b   :  { %5853 = vmatpush1.bf16.msra.mxu1 %v9560_v51 }
 0x42c   :  { %5854 = vmatprep.subr.bf16.mxu1 %v9568_v58 }
 0x42f   :  { %5855 = vmatpush1.bf16.msra.mxu1 %v9566_v31 }
 0x430   :  { %5856 = vmatprep.subr.bf16.mxu1 %v9574_v48 }
 0x433   :  { %5857 = vmatpush1.bf16.msra.mxu1 %v9572_v9 }
 0x434   :  { %5858 = vmatprep.subr.bf16.mxu1 %v9580_v40 }
 0x437   :  { %5859 = vmatpush1.bf16.msra.mxu1 %v9578_v0 }
 0x438   :  { %5860 = vmatprep.subr.bf16.mxu1 %v9586_v34 }
 0x43b   :  { %5861 = vmatpush1.bf16.msra.mxu1 %v9584_v4  ;;  %v2382_v4 = vrot.slane %v11172_v52, %v11079_v16 }
 0x43c   :  { %5871 = vmatprep.subr.bf16.mxu1 %v9592_v54  ;;  %v2370_v54 = vrot.slane %v11172_v52, %v11028_v17 }
 0x46f   :  { %v4685_v41 = vpop.f32.mrb[24].mxu0 }
 0x470   :  { %v4687_v44 = vpop.f32.mrb[25].mxu0  ;;  %v8626_v45 = vadd.f32 %v4685_v41, %v3789_v19  ;;  %v9614_v19 = vld [vmem:[#allocation9 + $0x3c8] ss:$24 sps:$4 sm:$0xff]  }
 0x471   :  { %v8627_v63 = vadd.f32 %v4687_v44, %v3793_v53  ;;  %v4603_v3 = vpop.f32.mrb[24].mxu1  ;;  %v4689_v57 = vpop.f32.mrb[26].mxu0  ;;  %v3455_v44 = vadd.f32 %v11114_v22, %v2370_v54  ;;  %v9620_v54 = vld [vmem:[#allocation9 + $0x3f8] ss:$24 sps:$4 sm:$0xff]  }
 0x472   :  { %v8624_v32 = vadd.f32 %v4603_v3, %v3781_v23  ;;  %v4605_v15 = vpop.f32.mrb[25].mxu1  ;;  %v4690_v39 = vpop.f32.mrb[27].mxu0  ;;  %v3498_v23 = vadd.f32 %v11139_v26, %v2382_v4  ;;  %v11204_v26 = vld [vmem:[%s11447_s29] sm:$0xf]  ;;  %v9622_v4 = vld [vmem:[#allocation9 + $0x3fc] ss:$24 sps:$4 sm:$0xff]  }
 0x473   :  { %v4783_v43 = vrot.slane %v8627_v63, 6  ;;  %v8625_v27 = vadd.f32 %v4605_v15, %v3785_v38  ;;  %v4607_v62 = vpop.f32.mrb[26].mxu1  ;;  %v4782_v38 = vrot.slane %v8626_v45, 6 }
 0x474   :  { %v4780_v61 = vrot.slane %v8624_v32, 6  ;;  %v4608_v25 = vpop.f32.mrb[27].mxu1 }
 0x475   :  { %v4795_v21 = vsel %vm1983_vm1, %v8627_v63, %v4783_v43  ;;  %v4781_v46 = vrot.slane %v8625_v27, 6  ;;  %v4794_v57 = vsel %vm1983_vm1, %v8626_v45, %v4782_v38  ;;  %v9590_v25 = vld [vmem:[#allocation9 + $0x308] ss:$24 sps:$4 sm:$0xff]  }
 0x476   :  { %v4819_v37 = vadd.f32 %v4795_v21, %v3457_v13  ;;  %v4792_v51 = vsel %vm1983_vm1, %v8624_v32, %v4780_v61  ;;  %v9587_v61 = vld [vmem:[#allocation9 + $0x300] ss:$24 sps:$4 sm:$0xff]   ;;  %v9595_v21 = vld [vmem:[#allocation9 + $0x334] ss:$24 sps:$4 sm:$0xff]   ;;  %v9617_v45 = vld [vmem:[#allocation9 + $0x3f0] ss:$24 sps:$4 sm:$0xff]  }
 0x477   :  { %v4798_v58 = vadd.f32 %v4792_v51, %v3414_v59  ;;  %v4793_v2 = vsel %vm1983_vm1, %v8625_v27, %v4781_v46  ;;  %v9598_v46 = vld [vmem:[#allocation9 + $0x33c] ss:$24 sps:$4 sm:$0xff]   ;;  %v9623_v38 = vld [vmem:[#allocation9 + $0x420] ss:$24 sps:$4 sm:$0xff]  }
 0x478   :  { %v8124_v20 = vmul.f32 -1.442695, %v4819_v37  ;;  %v4805_v31 = vadd.f32 %v4793_v2, %v3416_v30  ;;  %v9593_v30 = vld [vmem:[#allocation9 + $0x330] ss:$24 sps:$4 sm:$0xff]   ;;  %v9601_v51 = vld [vmem:[#allocation9 + $0x364] ss:$24 sps:$4 sm:$0xff]  }
 0x479   :  { %v8122_v48 = vmul.f32 -1.442695, %v4798_v58  ;;  %v9596_v37 = vld [vmem:[#allocation9 + $0x338] ss:$24 sps:$4 sm:$0xff]   ;;  %v9604_v58 = vld [vmem:[#allocation9 + $0x36c] ss:$24 sps:$4 sm:$0xff]  }
 0x47a   :  { %10009 = vpow2.f32 %v8124_v20  ;;  %v8123_v60 = vmul.f32 -1.442695, %v4805_v31  ;;  %v9599_v2 = vld [vmem:[#allocation9 + $0x360] ss:$24 sps:$4 sm:$0xff]   ;;  %v9607_v31 = vld [vmem:[#allocation9 + $0x394] ss:$24 sps:$4 sm:$0xff]  }
 0x47b   :  { %10011 = vpow2.f32 %v8122_v48  ;;  %v9602_v20 = vld [vmem:[#allocation9 + $0x368] ss:$24 sps:$4 sm:$0xff]   ;;  %v9610_v48 = vld [vmem:[#allocation9 + $0x39c] ss:$24 sps:$4 sm:$0xff]  }
 0x47c   :  { %10013 = vpow2.f32 %v8123_v60  ;;  %v9605_v60 = vld [vmem:[#allocation9 + $0x390] ss:$24 sps:$4 sm:$0xff]  }
 0x484   :  { %v10010_v9 = vpop.eup %10009 }
 0x485   :  { %v10012_v29 = vpop.eup %10011  ;;  %v4823_v40 = vadd.f32 1.0, %v10010_v9  ;;  %v9608_v9 = vld [vmem:[#allocation9 + $0x398] ss:$24 sps:$4 sm:$0xff]  }
 0x486   :  { %v4802_v0 = vadd.f32 1.0, %v10012_v29  ;;  %v10014_v34 = vpop.eup %10013  ;;  %v9613_v29 = vld [vmem:[#allocation9 + $0x3c4] ss:$24 sps:$4 sm:$0xff]  }
 0x487   :  { %10015 = vrcp.f32 %v4823_v40  ;;  %v4809_v53 = vadd.f32 1.0, %v10014_v34  ;;  %v9616_v40 = vld [vmem:[#allocation9 + $0x3cc] ss:$24 sps:$4 sm:$0xff]  }
 0x488   :  { %10017 = vrcp.f32 %v4802_v0  ;;  %v9611_v0 = vld [vmem:[#allocation9 + $0x3c0] ss:$24 sps:$4 sm:$0xff]   ;;  %v9619_v34 = vld [vmem:[#allocation9 + $0x3f4] ss:$24 sps:$4 sm:$0xff]  }
 0x489   :  { %10019 = vrcp.f32 %v4809_v53  ;;  %v9625_v53 = vld [vmem:[#allocation9 + $0x424] ss:$24 sps:$4 sm:$0xff]  }
 0x491   :  { %v10016_v35 = vpop.eup %10015 }
 0x492   :  { %v10018_v42 = vpop.eup %10017  ;;  %v11198_v63 = vmul.f32 %v10016_v35, %v3498_v23  ;;  %v9628_v23 = vld [vmem:[#allocation9 + $0x42c] ss:$24 sps:$4 sm:$0xff]   ;;  %v9626_v35 = vld [vmem:[#allocation9 + $0x428] ss:$24 sps:$4 sm:$0xff]  }
 0x493   :  { %v4812_v3 = vmul.f32 %v10018_v42, %v3455_v44  ;;  %v10020_v41 = vpop.eup %10019  ;;  %v9631_v44 = vld [vmem:[#allocation9 + $0x454] ss:$24 sps:$4 sm:$0xff]  }
 0x494   :  { %v4815_v32 = vsub.f32 1.0, %v10020_v41  ;;  %v4817_v22 = vmul.f32 %v11204_v26, %v10020_v41  ;;  %v9634_v42 = vld [vmem:[#allocation9 + $0x45c] ss:$24 sps:$4 sm:$0xff]   ;;  %v3797_v41 = vrot.slane %v11165_v8, %v11076_v12 }
 0x495   :  { %v4813_v14 = vadd.f32 %v4812_v3, %v4794_v57  ;;  %v9629_v3 = vld [vmem:[#allocation9 + $0x450] ss:$24 sps:$4 sm:$0xff]  }
 0x496   :  { %v9632_v57 = vld [vmem:[#allocation9 + $0x458] ss:$24 sps:$4 sm:$0xff]  }
 0x497   :  { %10021 = vtanh.f32 %v4813_v14  ;;  %v9637_v14 = vld [vmem:[#allocation9 + $0x14] ss:$24 sps:$4 sm:$0xff]  }
 0x4a1   :  { %v10022_v15 = vpop.eup %10021 }
 0x4a2   :  { %v4816_v39 = vmul.f32 %v10022_v15, %v4815_v32  ;;  %v3801_v32 = vrot.slane %v11165_v8, %v11079_v16  ;;  %v2378_v15 = vrot.slane %v11172_v52, %v11076_v12 }
 0x4a4   :  { %v11207_v43 = vadd.f32 %v4817_v22, %v4816_v39 }
 0x4a6   :  { %v4840_v27 = vmul.f32 %v11207_v43, %v10926_v47 }
 0x4a8   :  { %v4842_v62 = vrot.slane %v4840_v27, 2 }
 0x4aa   :  { %v4844_v13 = vadd.f32 %v4842_v62, %v4840_v27 }
 0x4ac   :  { %v11211_v59 = vpack.c.bf16 %v4844_v13, %v4844_v13 }
 0x4ae   :  { %5781 = vmatmul.mubr.bf16.vlgmr.msra.gmra.mrb[28].mxu0 %v11211_v59  ;;  %5863 = vmatmul.mubr.bf16.vlgmr.msra.gmra.mrb[32].mxu1 %v11211_v59 }
 0x4af   :  { %5790 = vmatpush1.bf16.msra.mxu0 %v9587_v61  ;;  %5872 = vmatpush1.bf16.msra.mxu1 %v9590_v25 }
 0x4b0   :  { %5791 = vmatprep.subr.bf16.mxu0 %v9595_v21  ;;  %5873 = vmatprep.subr.bf16.mxu1 %v9598_v46  ;;  %v3496_v21 = vadd.f32 %v11137_v49, %v2378_v15  ;;  %v11230_v49 = vld [vmem:[%s11446_s5] sm:$0xf] }
 0x4b1   :  { %5821 = vmatprep.mubr.bf16.mxu0 %v11484_v50  ;;  %5903 = vmatprep.mubr.bf16.mxu1 %v11484_v50  ;;  %v9656_v15 = vld [vmem:[#allocation9 + $0x160] ss:$24 sps:$4 sm:$0xff]  }
 0x4b3   :  { %5792 = vmatpush1.bf16.msra.mxu0 %v9593_v30  ;;  %5874 = vmatpush1.bf16.msra.mxu1 %v9596_v37 }
 0x4b4   :  { %5793 = vmatprep.subr.bf16.mxu0 %v9601_v51  ;;  %5875 = vmatprep.subr.bf16.mxu1 %v9604_v58 }
 0x4b7   :  { %5794 = vmatpush1.bf16.msra.mxu0 %v9599_v2  ;;  %5876 = vmatpush1.bf16.msra.mxu1 %v9602_v20 }
 0x4b8   :  { %5795 = vmatprep.subr.bf16.mxu0 %v9607_v31  ;;  %5877 = vmatprep.subr.bf16.mxu1 %v9610_v48 }
 0x4bb   :  { %5796 = vmatpush1.bf16.msra.mxu0 %v9605_v60  ;;  %5878 = vmatpush1.bf16.msra.mxu1 %v9608_v9 }
 0x4bc   :  { %5797 = vmatprep.subr.bf16.mxu0 %v9613_v29  ;;  %5879 = vmatprep.subr.bf16.mxu1 %v9616_v40 }
 0x4bf   :  { %5798 = vmatpush1.bf16.msra.mxu0 %v9611_v0  ;;  %5880 = vmatpush1.bf16.msra.mxu1 %v9614_v19 }
 0x4c0   :  { %5799 = vmatprep.subr.bf16.mxu0 %v9619_v34  ;;  %5881 = vmatprep.subr.bf16.mxu1 %v9622_v4  ;;  %v9635_v34 = vld [vmem:[#allocation9 + $0x10] ss:$24 sps:$4 sm:$0xff]  }
 0x4c3   :  { %5800 = vmatpush1.bf16.msra.mxu0 %v9617_v45  ;;  %5882 = vmatpush1.bf16.msra.mxu1 %v9620_v54  ;;  %v9640_v45 = vld [vmem:[#allocation9 + $0x44] ss:$24 sps:$4 sm:$0xff]   ;;  %v9638_v54 = vld [vmem:[#allocation9 + $0x40] ss:$24 sps:$4 sm:$0xff]  }
 0x4c4   :  { %5801 = vmatprep.subr.bf16.mxu0 %v9625_v53  ;;  %5883 = vmatprep.subr.bf16.mxu1 %v9628_v23  ;;  %v9643_v53 = vld [vmem:[#allocation9 + $0x74] ss:$24 sps:$4 sm:$0xff]   ;;  %v9641_v23 = vld [vmem:[#allocation9 + $0x70] ss:$24 sps:$4 sm:$0xff]  }
 0x4c7   :  { %5802 = vmatpush1.bf16.msra.mxu0 %v9623_v38  ;;  %5884 = vmatpush1.bf16.msra.mxu1 %v9626_v35  ;;  %v9646_v38 = vld [vmem:[#allocation9 + $0xa4] ss:$24 sps:$4 sm:$0xff]   ;;  %v9644_v35 = vld [vmem:[#allocation9 + $0xa0] ss:$24 sps:$4 sm:$0xff]  }
 0x4c8   :  { %5803 = vmatprep.subr.bf16.mxu0 %v9631_v44  ;;  %5885 = vmatprep.subr.bf16.mxu1 %v9634_v42  ;;  %v9649_v44 = vld [vmem:[#allocation9 + $0xd4] ss:$24 sps:$4 sm:$0xff]   ;;  %v9647_v42 = vld [vmem:[#allocation9 + $0xd0] ss:$24 sps:$4 sm:$0xff]  }
 0x4cb   :  { %5804 = vmatpush1.bf16.msra.mxu0 %v9629_v3  ;;  %5886 = vmatpush1.bf16.msra.mxu1 %v9632_v57  ;;  %v9652_v3 = vld [vmem:[#allocation9 + $0x104] ss:$24 sps:$4 sm:$0xff]   ;;  %v9650_v57 = vld [vmem:[#allocation9 + $0x100] ss:$24 sps:$4 sm:$0xff]  }
 0x4cc   :  { %5912 = vmatprep.subr.bf16.mxu0 %v9637_v14  ;;  %v9655_v14 = vld [vmem:[#allocation9 + $0x134] ss:$24 sps:$4 sm:$0xff]  }
 0x4d1   :  { %v4767_v39 = vpop.f32.mrb[28].mxu1 }
 0x4d2   :  { %v8628_v22 = vadd.f32 %v4767_v39, %v3797_v41  ;;  %v4769_v27 = vpop.f32.mrb[29].mxu1  ;;  %v9653_v41 = vld [vmem:[#allocation9 + $0x130] ss:$24 sps:$4 sm:$0xff]   ;;  %v9661_v39 = vld [vmem:[#allocation9 + $0x194] ss:$24 sps:$4 sm:$0xff]  }
 0x4d3   :  { %v8629_v62 = vadd.f32 %v4769_v27, %v3801_v32  ;;  %v4771_v13 = vpop.f32.mrb[30].mxu1  ;;  %v9658_v32 = vld [vmem:[#allocation9 + $0x164] ss:$24 sps:$4 sm:$0xff]  }
 0x4d4   :  { %v4784_v61 = vrot.slane %v8628_v22, 6  ;;  %v4772_v25 = vpop.f32.mrb[31].mxu1  ;;  %v9664_v27 = vld [vmem:[#allocation9 + $0x1c4] ss:$24 sps:$4 sm:$0xff]   ;;  %v9667_v13 = vld [vmem:[#allocation9 + $0x1f4] ss:$24 sps:$4 sm:$0xff]  }
 0x4d5   :  { %v4785_v46 = vrot.slane %v8629_v62, 6  ;;  %v9670_v25 = vld [vmem:[#allocation9 + $0x224] ss:$24 sps:$4 sm:$0xff]  }
 0x4d6   :  { %v4796_v30 = vsel %vm1983_vm1, %v8628_v22, %v4784_v61  ;;  %v9659_v22 = vld [vmem:[#allocation9 + $0x190] ss:$24 sps:$4 sm:$0xff]  }
 0x4d7   :  { %v4826_v37 = vadd.f32 %v4796_v30, %v3496_v21  ;;  %v4797_v51 = vsel %vm1983_vm1, %v8629_v62, %v4785_v46  ;;  %v9662_v62 = vld [vmem:[#allocation9 + $0x1c0] ss:$24 sps:$4 sm:$0xff]   ;;  %v9665_v61 = vld [vmem:[#allocation9 + $0x1f0] ss:$24 sps:$4 sm:$0xff]   ;;  %v9673_v46 = vld [vmem:[#allocation9 + $0x254] ss:$24 sps:$4 sm:$0xff]  }
 0x4d8   :  { %v4834_v8 = vadd.f32 %v11198_v63, %v4797_v51  ;;  %v9668_v21 = vld [vmem:[#allocation9 + $0x220] ss:$24 sps:$4 sm:$0xff]   ;;  %v9671_v30 = vld [vmem:[#allocation9 + $0x250] ss:$24 sps:$4 sm:$0xff]  }
 0x4d9   :  { %v8125_v58 = vmul.f32 -1.442695, %v4826_v37  ;;  %v9676_v37 = vld [vmem:[#allocation9 + $0x284] ss:$24 sps:$4 sm:$0xff]   ;;  %v9674_v51 = vld [vmem:[#allocation9 + $0x280] ss:$24 sps:$4 sm:$0xff]  }
 0x4db   :  { %10023 = vpow2.f32 %v8125_v58  ;;  %v9677_v58 = vld [vmem:[#allocation9 + $0x2b0] ss:$24 sps:$4 sm:$0xff]  }
 0x4e5   :  { %v10024_v2 = vpop.eup %10023 }
 0x4e6   :  { %v4830_v20 = vadd.f32 1.0, %v10024_v2  ;;  %v9682_v2 = vld [vmem:[#allocation9 + $0x2e4] ss:$24 sps:$4 sm:$0xff]  }
 0x4e8   :  { %10025 = vrcp.f32 %v4830_v20  ;;  %v9680_v20 = vld [vmem:[#allocation9 + $0x2e0] ss:$24 sps:$4 sm:$0xff]  }
 0x4e9   :  { %10027 = vtanh.f32 %v4834_v8  ;;  %v9679_v8 = vld [vmem:[#allocation9 + $0x2b4] ss:$24 sps:$4 sm:$0xff]  }
 0x4f2   :  { %v10026_v31 = vpop.eup %10025 }
 0x4f3   :  { %v4836_v48 = vsub.f32 1.0, %v10026_v31  ;;  %v10028_v60 = vpop.eup %10027  ;;  %v4838_v29 = vmul.f32 %v11230_v49, %v10026_v31  ;;  %v9685_v31 = vld [vmem:[#allocation9 + $0x314] ss:$24 sps:$4 sm:$0xff]  }
 0x4f5   :  { %v4837_v9 = vmul.f32 %v10028_v60, %v4836_v48  ;;  %v9683_v48 = vld [vmem:[#allocation9 + $0x310] ss:$24 sps:$4 sm:$0xff]   ;;  %v9688_v60 = vld [vmem:[#allocation9 + $0x344] ss:$24 sps:$4 sm:$0xff]  }
 0x4f7   :  { %v11233_v40 = vadd.f32 %v4838_v29, %v4837_v9  ;;  %v9686_v9 = vld [vmem:[#allocation9 + $0x340] ss:$24 sps:$4 sm:$0xff]   ;;  %v9691_v29 = vld [vmem:[#allocation9 + $0x374] ss:$24 sps:$4 sm:$0xff]  }
 0x4f9   :  { %v4845_v63 = vmul.f32 %v11233_v40, %v10926_v47 }
 0x4fb   :  { %v4847_v0 = vrot.slane %v4845_v63, 2 }
 0x4fd   :  { %v4849_v19 = vadd.f32 %v4847_v0, %v4845_v63  ;;  %v9689_v63 = vld [vmem:[#allocation9 + $0x370] ss:$24 sps:$4 sm:$0xff]   ;;  %v9694_v0 = vld [vmem:[#allocation9 + $0x3a4] ss:$24 sps:$4 sm:$0xff]  }
 0x4ff   :  { %v11237_v4 = vpack.c.bf16 %v4849_v19, %v4849_v19  ;;  %v9692_v19 = vld [vmem:[#allocation9 + $0x3a0] ss:$24 sps:$4 sm:$0xff]  }
 0x501   :  { %5822 = vmatmul.mubr.bf16.vlgmr.msra.gmra.mrb[28].mxu0 %v11237_v4  ;;  %5904 = vmatmul.mubr.bf16.vlgmr.msra.gmra.mrb[32].mxu1 %v11237_v4 }
 0x502   :  { %5913 = vmatpush1.bf16.msra.mxu0 %v9635_v34  ;;  %5944 = vmatprep.mubr.bf16.mxu0 %v10948_v5  ;;  %v9697_v34 = vld [vmem:[#allocation9 + $0x3d4] ss:$24 sps:$4 sm:$0xff]  }
 0x503   :  { %5914 = vmatprep.subr.bf16.mxu0 %v9640_v45  ;;  %v9695_v45 = vld [vmem:[#allocation9 + $0x3d0] ss:$24 sps:$4 sm:$0xff]  }
 0x506   :  { %5915 = vmatpush1.bf16.msra.mxu0 %v9638_v54  ;;  %v9700_v54 = vld [vmem:[#allocation9 + $0x404] ss:$24 sps:$4 sm:$0xff]  }
 0x507   :  { %5916 = vmatprep.subr.bf16.mxu0 %v9643_v53  ;;  %v9703_v53 = vld [vmem:[#allocation9 + $0x434] ss:$24 sps:$4 sm:$0xff]  }
 0x50a   :  { %5917 = vmatpush1.bf16.msra.mxu0 %v9641_v23  ;;  %v9706_v23 = vld [vmem:[#allocation9 + $0x464] ss:$24 sps:$4 sm:$0xff]  }
 0x50b   :  { %5918 = vmatprep.subr.bf16.mxu0 %v9646_v38  ;;  %v9704_v38 = vld [vmem:[#allocation9 + $0x460] ss:$24 sps:$4 sm:$0xff]  }
 0x50e   :  { %5919 = vmatpush1.bf16.msra.mxu0 %v9644_v35  ;;  %v9707_v35 = vld [vmem:[#allocation11] ss:$24 sps:$4 sm:$0xff]  }
 0x50f   :  { %5920 = vmatprep.subr.bf16.mxu0 %v9649_v44  ;;  %v9709_v44 = vld [vmem:[#allocation11 + $0x4] ss:$24 sps:$4 sm:$0xff]  }
 0x510   :  { %7268 = vmatprep.subr.bf16.mxu1 %v9709_v44  ;;  %v9770_v44 = vld [vmem:[#allocation11 + $0x1e8] ss:$24 sps:$4 sm:$0xff]  }
 0x511   :  { %7269 = vmatpush1.bf16.msra.mxu1 %v9707_v35  ;;  %v9767_v35 = vld [vmem:[#allocation11 + $0x1e0] ss:$24 sps:$4 sm:$0xff]  }
 0x512   :  { %5921 = vmatpush1.bf16.msra.mxu0 %v9647_v42  ;;  %v9710_v42 = vld [vmem:[#allocation11 + $0x8] ss:$24 sps:$4 sm:$0xff]  }
 0x513   :  { %5922 = vmatprep.subr.bf16.mxu0 %v9652_v3  ;;  %v9712_v3 = vld [vmem:[#allocation11 + $0xc] ss:$24 sps:$4 sm:$0xff]  }
 0x516   :  { %5923 = vmatpush1.bf16.msra.mxu0 %v9650_v57  ;;  %v9715_v57 = vld [vmem:[#allocation11 + $0x34] ss:$24 sps:$4 sm:$0xff]  }
 0x517   :  { %5924 = vmatprep.subr.bf16.mxu0 %v9655_v14  ;;  %v9718_v14 = vld [vmem:[#allocation11 + $0x3c] ss:$24 sps:$4 sm:$0xff]   ;;  %7270 = vmatprep.subr.bf16.mxu1 %v9715_v57 }
 0x518   :  { %v9778_v57 = vld [vmem:[#allocation11 + $0x21c] ss:$24 sps:$4 sm:$0xff]  }
 0x51a   :  { %5925 = vmatpush1.bf16.msra.mxu0 %v9653_v41  ;;  %v9713_v41 = vld [vmem:[#allocation11 + $0x30] ss:$24 sps:$4 sm:$0xff]  }
 0x51b   :  { %5926 = vmatprep.subr.bf16.mxu0 %v9658_v32  ;;  %v9716_v32 = vld [vmem:[#allocation11 + $0x38] ss:$24 sps:$4 sm:$0xff]   ;;  %7271 = vmatpush1.bf16.msra.mxu1 %v9713_v41  ;;  %v2389_v41 = vsub.s32 7, %v10783_v33 }
 0x51e   :  { %5927 = vmatpush1.bf16.msra.mxu0 %v9656_v15  ;;  %v9721_v15 = vld [vmem:[#allocation11 + $0x64] ss:$24 sps:$4 sm:$0xff]  }
 0x51f   :  { %5928 = vmatprep.subr.bf16.mxu0 %v9661_v39  ;;  %v9724_v39 = vld [vmem:[#allocation11 + $0x6c] ss:$24 sps:$4 sm:$0xff]   ;;  %7272 = vmatprep.subr.bf16.mxu1 %v9721_v15  ;;  %v9773_v15 = vld [vmem:[#allocation11 + $0x210] ss:$24 sps:$4 sm:$0xff]  }
 0x522   :  { %5929 = vmatpush1.bf16.msra.mxu0 %v9659_v22  ;;  %v9719_v22 = vld [vmem:[#allocation11 + $0x60] ss:$24 sps:$4 sm:$0xff]  }
 0x523   :  { %5930 = vmatprep.subr.bf16.mxu0 %v9664_v27  ;;  %7273 = vmatpush1.bf16.msra.mxu1 %v9719_v22  ;;  %v9727_v27 = vld [vmem:[#allocation11 + $0x94] ss:$24 sps:$4 sm:$0xff]  }
 0x524   :  { %7274 = vmatprep.subr.bf16.mxu1 %v9727_v27  ;;  %v9781_v27 = vld [vmem:[#allocation11 + $0x244] ss:$24 sps:$4 sm:$0xff]  }
 0x526   :  { %5931 = vmatpush1.bf16.msra.mxu0 %v9662_v62  ;;  %v9730_v62 = vld [vmem:[#allocation11 + $0x9c] ss:$24 sps:$4 sm:$0xff]  }
 0x527   :  { %5932 = vmatprep.subr.bf16.mxu0 %v9667_v13  ;;  %v9725_v13 = vld [vmem:[#allocation11 + $0x90] ss:$24 sps:$4 sm:$0xff]  }
 0x528   :  { %7275 = vmatpush1.bf16.msra.mxu1 %v9725_v13 }
 0x52a   :  { %5933 = vmatpush1.bf16.msra.mxu0 %v9665_v61  ;;  %v9728_v61 = vld [vmem:[#allocation11 + $0x98] ss:$24 sps:$4 sm:$0xff]  }
 0x52b   :  { %5934 = vmatprep.subr.bf16.mxu0 %v9670_v25  ;;  %v9733_v25 = vld [vmem:[#allocation11 + $0xc4] ss:$24 sps:$4 sm:$0xff]  }
 0x52c   :  { %7276 = vmatprep.subr.bf16.mxu1 %v9733_v25  ;;  %v2398_v25 = vrot.slane %v11148_v18, %v11073_v28 }
 0x52e   :  { %5935 = vmatpush1.bf16.msra.mxu0 %v9668_v21  ;;  %v9736_v21 = vld [vmem:[#allocation11 + $0xcc] ss:$24 sps:$4 sm:$0xff]  }
 0x52f   :  { %5936 = vmatprep.subr.bf16.mxu0 %v9673_v46  ;;  %v9731_v46 = vld [vmem:[#allocation11 + $0xc0] ss:$24 sps:$4 sm:$0xff]  }
 0x530   :  { %7277 = vmatpush1.bf16.msra.mxu1 %v9731_v46 }
 0x532   :  { %5937 = vmatpush1.bf16.msra.mxu0 %v9671_v30  ;;  %v9734_v30 = vld [vmem:[#allocation11 + $0xc8] ss:$24 sps:$4 sm:$0xff]  }
 0x533   :  { %5938 = vmatprep.subr.bf16.mxu0 %v9676_v37  ;;  %v9739_v37 = vld [vmem:[#allocation11 + $0xf4] ss:$24 sps:$4 sm:$0xff]  }
 0x534   :  { %7278 = vmatprep.subr.bf16.mxu1 %v9739_v37 }
 0x536   :  { %5939 = vmatpush1.bf16.msra.mxu0 %v9674_v51  ;;  %v9742_v51 = vld [vmem:[#allocation11 + $0xfc] ss:$24 sps:$4 sm:$0xff]  }
 0x537   :  { %5940 = vmatprep.subr.bf16.mxu0 %v9679_v8  ;;  %v9737_v8 = vld [vmem:[#allocation11 + $0xf0] ss:$24 sps:$4 sm:$0xff]  }
 0x538   :  { %7279 = vmatpush1.bf16.msra.mxu1 %v9737_v8  ;;  %v9782_v8 = vld [vmem:[#allocation11 + $0x248] ss:$24 sps:$4 sm:$0xff]  }
 0x53a   :  { %5941 = vmatpush1.bf16.msra.mxu0 %v9677_v58  ;;  %v9740_v58 = vld [vmem:[#allocation11 + $0xf8] ss:$24 sps:$4 sm:$0xff]  }
 0x53b   :  { %5942 = vmatprep.subr.bf16.mxu0 %v9682_v2  ;;  %v9745_v2 = vld [vmem:[#allocation11 + $0x124] ss:$24 sps:$4 sm:$0xff]  }
 0x53c   :  { %7280 = vmatprep.subr.bf16.mxu1 %v9745_v2 }
 0x53e   :  { %5943 = vmatpush1.bf16.msra.mxu0 %v9680_v20  ;;  %v9748_v20 = vld [vmem:[#allocation11 + $0x12c] ss:$24 sps:$4 sm:$0xff]  }
 0x53f   :  { %5953 = vmatprep.subr.bf16.mxu0 %v9685_v31  ;;  %v9743_v31 = vld [vmem:[#allocation11 + $0x120] ss:$24 sps:$4 sm:$0xff]  }
 0x540   :  { %7281 = vmatpush1.bf16.msra.mxu1 %v9743_v31 }
 0x541   :  { %5945 = vmatmul.mubr.bf16.vlgmr.msra.gmra.mrb[32].mxu0 %v11211_v59  ;;  %v9698_v59 = vld [vmem:[#allocation9 + $0x400] ss:$24 sps:$4 sm:$0xff]  }
 0x542   :  { %5954 = vmatpush1.bf16.msra.mxu0 %v9683_v48  ;;  %5985 = vmatprep.mubr.bf16.mxu0 %v11484_v50  ;;  %v9701_v50 = vld [vmem:[#allocation9 + $0x430] ss:$24 sps:$4 sm:$0xff]  }
 0x543   :  { %5955 = vmatprep.subr.bf16.mxu0 %v9688_v60  ;;  %v9746_v48 = vld [vmem:[#allocation11 + $0x128] ss:$24 sps:$4 sm:$0xff]   ;;  %v9751_v60 = vld [vmem:[#allocation11 + $0x154] ss:$24 sps:$4 sm:$0xff]  }
 0x544   :  { %7282 = vmatprep.subr.bf16.mxu1 %v9751_v60  ;;  %v9790_v60 = vld [vmem:[#allocation11 + $0x27c] ss:$24 sps:$4 sm:$0xff]  }
 0x546   :  { %5956 = vmatpush1.bf16.msra.mxu0 %v9686_v9  ;;  %v9754_v9 = vld [vmem:[#allocation11 + $0x15c] ss:$24 sps:$4 sm:$0xff]  }
 0x547   :  { %5957 = vmatprep.subr.bf16.mxu0 %v9691_v29  ;;  %v9749_v29 = vld [vmem:[#allocation11 + $0x150] ss:$24 sps:$4 sm:$0xff]  }
 0x548   :  { %7283 = vmatpush1.bf16.msra.mxu1 %v9749_v29 }
 0x54a   :  { %5958 = vmatpush1.bf16.msra.mxu0 %v9689_v63  ;;  %v9752_v63 = vld [vmem:[#allocation11 + $0x158] ss:$24 sps:$4 sm:$0xff]  }
 0x54b   :  { %5959 = vmatprep.subr.bf16.mxu0 %v9694_v0  ;;  %v9757_v0 = vld [vmem:[#allocation11 + $0x184] ss:$24 sps:$4 sm:$0xff]  }
 0x54c   :  { %7284 = vmatprep.subr.bf16.mxu1 %v9757_v0 }
 0x54e   :  { %5960 = vmatpush1.bf16.msra.mxu0 %v9692_v19  ;;  %v9760_v19 = vld [vmem:[#allocation11 + $0x18c] ss:$24 sps:$4 sm:$0xff]  }
 0x54f   :  { %5961 = vmatprep.subr.bf16.mxu0 %v9697_v34  ;;  %v9755_v34 = vld [vmem:[#allocation11 + $0x180] ss:$24 sps:$4 sm:$0xff]  }
 0x550   :  { %7285 = vmatpush1.bf16.msra.mxu1 %v9755_v34 }
 0x552   :  { %5962 = vmatpush1.bf16.msra.mxu0 %v9695_v45  ;;  %v9758_v45 = vld [vmem:[#allocation11 + $0x188] ss:$24 sps:$4 sm:$0xff]  }
 0x553   :  { %5963 = vmatprep.subr.bf16.mxu0 %v9700_v54  ;;  %v9763_v54 = vld [vmem:[#allocation11 + $0x1b4] ss:$24 sps:$4 sm:$0xff]  }
 0x554   :  { %7286 = vmatprep.subr.bf16.mxu1 %v9763_v54  ;;  %v9785_v54 = vld [vmem:[#allocation11 + $0x270] ss:$24 sps:$4 sm:$0xff]  }
 0x556   :  { %5964 = vmatpush1.bf16.msra.mxu0 %v9698_v59  ;;  %v9766_v59 = vld [vmem:[#allocation11 + $0x1bc] ss:$24 sps:$4 sm:$0xff]  }
 0x557   :  { %5965 = vmatprep.subr.bf16.mxu0 %v9703_v53  ;;  %v9761_v53 = vld [vmem:[#allocation11 + $0x1b0] ss:$24 sps:$4 sm:$0xff]  }
 0x558   :  { %7287 = vmatpush1.bf16.msra.mxu1 %v9761_v53 }
 0x55a   :  { %5966 = vmatpush1.bf16.msra.mxu0 %v9701_v50  ;;  %v9764_v50 = vld [vmem:[#allocation11 + $0x1b8] ss:$24 sps:$4 sm:$0xff]  }
 0x55b   :  { %5967 = vmatprep.subr.bf16.mxu0 %v9706_v23  ;;  %v9769_v23 = vld [vmem:[#allocation11 + $0x1e4] ss:$24 sps:$4 sm:$0xff]  }
 0x55c   :  { %7288 = vmatprep.subr.bf16.mxu1 %v9769_v23 }
 0x55d   :  { %7289 = vmatpush1.bf16.msra.mxu1 %v9767_v35 }
 0x55e   :  { %5968 = vmatpush1.bf16.msra.mxu0 %v9704_v38  ;;  %v9772_v38 = vld [vmem:[#allocation11 + $0x1ec] ss:$24 sps:$4 sm:$0xff]  }
 0x55f   :  { %7350 = vmatprep.subr.bf16.mxu0 %v9712_v3  ;;  %v9775_v3 = vld [vmem:[#allocation11 + $0x214] ss:$24 sps:$4 sm:$0xff]  }
 0x560   :  { %7290 = vmatprep.subr.bf16.mxu1 %v9775_v3 }
 0x561   :  { %5986 = vmatmul.mubr.bf16.vlgmr.msra.gmra.mrb[32].mxu0 %v11237_v4  ;;  %v9722_v4 = vld [vmem:[#allocation11 + $0x68] ss:$24 sps:$4 sm:$0xff]   ;;  %7291 = vmatpush1.bf16.msra.mxu1 %v9773_v15 }
 0x562   :  { %7351 = vmatpush1.bf16.msra.mxu0 %v9710_v42  ;;  %v11248_v42 = vld [vmem:[%s11384_s17] sm:$0x3f]  ;;  %7292 = vmatprep.subr.bf16.mxu1 %v9781_v27  ;;  %v9797_v15 = vld [vmem:[#allocation11 + $0x2d0] ss:$24 sps:$4 sm:$0xff]  }
 0x563   :  { %7352 = vmatprep.subr.bf16.mxu0 %v9718_v14  ;;  %v2385_v14 = vsub.s32 6, %v10783_v33  ;;  %v5005_v22 = vrot.slane %v11248_v42, %v11073_v28 }
 0x565   :  { %v2386_v13 = vrot.slane %v11172_v52, %v2385_v14  ;;  %v9799_v14 = vld [vmem:[#allocation11 + $0x2d4] ss:$24 sps:$4 sm:$0xff]  }
 0x566   :  { %7353 = vmatpush1.bf16.msra.mxu0 %v9716_v32  ;;  %v5001_v32 = vrot.slane %v11248_v42, %v11041_v7 }
 0x567   :  { %7354 = vmatprep.subr.bf16.mxu0 %v9724_v39  ;;  %v9776_v39 = vld [vmem:[#allocation11 + $0x218] ss:$24 sps:$4 sm:$0xff]  }
 0x56a   :  { %7355 = vmatpush1.bf16.msra.mxu0 %v9722_v4  ;;  %v5013_v4 = vrot.slane %v11248_v42, %v11031_v55 }
 0x56b   :  { %7356 = vmatprep.subr.bf16.mxu0 %v9730_v62  ;;  %v9784_v62 = vld [vmem:[#allocation11 + $0x24c] ss:$24 sps:$4 sm:$0xff]  }
 0x56e   :  { %7357 = vmatpush1.bf16.msra.mxu0 %v9728_v61 }
 0x56f   :  { %7358 = vmatprep.subr.bf16.mxu0 %v9736_v21  ;;  %v2390_v21 = vrot.slane %v11172_v52, %v2389_v41  ;;  %v3537_v52 = vadd.f32 %v11133_v1, %v2386_v13  ;;  %v9793_v1 = vld [vmem:[#allocation11 + $0x2a4] ss:$24 sps:$4 sm:$0xff]  }
 0x570   :  { %v9802_v41 = vld [vmem:[#allocation11 + $0x2dc] ss:$24 sps:$4 sm:$0xff]  }
 0x571   :  { %v3539_v34 = vadd.f32 %v11135_v10, %v2390_v21  ;;  %v9791_v10 = vld [vmem:[#allocation11 + $0x2a0] ss:$24 sps:$4 sm:$0xff]  }
 0x572   :  { %7359 = vmatpush1.bf16.msra.mxu0 %v9734_v30 }
 0x573   :  { %7360 = vmatprep.subr.bf16.mxu0 %v9742_v51  ;;  %v9779_v51 = vld [vmem:[#allocation11 + $0x240] ss:$24 sps:$4 sm:$0xff]  }
 0x574   :  { %7293 = vmatpush1.bf16.msra.mxu1 %v9779_v51 }
 0x576   :  { %7361 = vmatpush1.bf16.msra.mxu0 %v9740_v58 }
 0x577   :  { %7362 = vmatprep.subr.bf16.mxu0 %v9748_v20 }
 0x57a   :  { %7363 = vmatpush1.bf16.msra.mxu0 %v9746_v48  ;;  %v9787_v48 = vld [vmem:[#allocation11 + $0x274] ss:$24 sps:$4 sm:$0xff]  }
 0x57b   :  { %7364 = vmatprep.subr.bf16.mxu0 %v9754_v9  ;;  %7294 = vmatprep.subr.bf16.mxu1 %v9787_v48 }
 0x57c   :  { %7295 = vmatpush1.bf16.msra.mxu1 %v9785_v54 }
 0x57d   :  { %7296 = vmatprep.subr.bf16.mxu1 %v9793_v1 }
 0x57e   :  { %7365 = vmatpush1.bf16.msra.mxu0 %v9752_v63 }
 0x57f   :  { %7366 = vmatprep.subr.bf16.mxu0 %v9760_v19  ;;  %v3580_v19 = vadd.f32 %v11160_v11, %v2398_v25 }
 0x580   :  { %7297 = vmatpush1.bf16.msra.mxu1 %v9791_v10 }
 0x581   :  { %7298 = vmatprep.subr.bf16.mxu1 %v9799_v14 }
 0x582   :  { %7367 = vmatpush1.bf16.msra.mxu0 %v9758_v45 }
 0x583   :  { %7368 = vmatprep.subr.bf16.mxu0 %v9766_v59  ;;  %v9788_v59 = vld [vmem:[#allocation11 + $0x278] ss:$24 sps:$4 sm:$0xff]  }
 0x584   :  { %7299 = vmatpush1.bf16.msra.mxu1 %v9797_v15 }
 0x586   :  { %7369 = vmatpush1.bf16.msra.mxu0 %v9764_v50 }
 0x587   :  { %7370 = vmatprep.subr.bf16.mxu0 %v9772_v38  ;;  %v9796_v38 = vld [vmem:[#allocation11 + $0x2ac] ss:$24 sps:$4 sm:$0xff]  }
 0x58a   :  { %7371 = vmatpush1.bf16.msra.mxu0 %v9770_v44 }
 0x58b   :  { %7372 = vmatprep.subr.bf16.mxu0 %v9778_v57  ;;  %v9794_v57 = vld [vmem:[#allocation11 + $0x2a8] ss:$24 sps:$4 sm:$0xff]  }
 0x58e   :  { %7373 = vmatpush1.bf16.msra.mxu0 %v9776_v39  ;;  %v9800_v39 = vld [vmem:[#allocation11 + $0x2d8] ss:$24 sps:$4 sm:$0xff]  }
 0x58f   :  { %7374 = vmatprep.subr.bf16.mxu0 %v9784_v62 }
 0x592   :  { %7375 = vmatpush1.bf16.msra.mxu0 %v9782_v8 }
 0x593   :  { %7376 = vmatprep.subr.bf16.mxu0 %v9790_v60 }
 0x596   :  { %7377 = vmatpush1.bf16.msra.mxu0 %v9788_v59  ;;  %v5021_v59 = vrot.slane %v11248_v42, %v11079_v16 }
 0x597   :  { %7378 = vmatprep.subr.bf16.mxu0 %v9796_v38 }
 0x59a   :  { %7379 = vmatpush1.bf16.msra.mxu0 %v9794_v57 }
 0x59b   :  { %7380 = vmatprep.subr.bf16.mxu0 %v9802_v41 }
 0x59e   :  { %7381 = vmatpush1.bf16.msra.mxu0 %v9800_v39 }
 0x5d4   :  { %v5823_v33 = vpop.f32.mrb[28].mxu0  ;;  %v11259_v61 = vpop.f32.mrb[32].mxu1 }
 0x5d5   :  { %v8630_v46 = vadd.f32 %v5823_v33, %v5001_v32  ;;  %v5825_v30 = vpop.f32.mrb[29].mxu0  ;;  %v5907_v37 = vpop.f32.mrb[33].mxu1  ;;  %v5009_v33 = vrot.slane %v11248_v42, %v11028_v17 }
 0x5d6   :  { %v8631_v58 = vadd.f32 %v5825_v30, %v5005_v22  ;;  %v8633_v2 = vadd.f32 %v5907_v37, %v5013_v4  ;;  %v5827_v20 = vpop.f32.mrb[30].mxu0  ;;  %v5909_v31 = vpop.f32.mrb[34].mxu1  ;;  %v9805_v22 = vld [vmem:[#allocation11 + $0x304] ss:$24 sps:$4 sm:$0xff]   ;;  %v10064_v30 = vld [vmem:[%s11382_s15 + $0x8] sm:$0xf] }
 0x5d7   :  { %v6000_v9 = vrot.slane %v8630_v46, 6  ;;  %v5828_v29 = vpop.f32.mrb[31].mxu0  ;;  %v5910_v18 = vpop.f32.mrb[35].mxu1  ;;  %v9808_v4 = vld [vmem:[#allocation11 + $0x30c] ss:$24 sps:$4 sm:$0xff]   ;;  %7309 = vmatprep.subr.bf16.mxu1 %v9805_v22  ;;  %v2394_v37 = vrot.slane %v10064_v30, %v11041_v7 }
 0x5d8   :  { %v6001_v63 = vrot.slane %v8631_v58, 6  ;;  %v6003_v0 = vrot.slane %v8633_v2, 6  ;;  %7391 = vmatprep.subr.bf16.mxu0 %v9808_v4  ;;  %v9806_v30 = vld [vmem:[#allocation11 + $0x308] ss:$24 sps:$4 sm:$0xff]  }
 0x5d9   :  { %v6012_v45 = vsel %vm1983_vm1, %v8630_v46, %v6000_v9  ;;  %v8632_v46 = vadd.f32 %v11259_v61, %v5009_v33 }
 0x5da   :  { %v6018_v53 = vadd.f32 %v6012_v45, %v3537_v52  ;;  %v6013_v50 = vsel %vm1983_vm1, %v8631_v58, %v6001_v63  ;;  %v6015_v23 = vsel %vm1983_vm1, %v8633_v2, %v6003_v0  ;;  %v3578_v58 = vadd.f32 %v11156_v56, %v2394_v37  ;;  %v6063_v52 = vpop.permute.xlu1 %6062  ;;  %v9814_v37 = vld [vmem:[#allocation11 + $0x33c] ss:$24 sps:$4 sm:$0xff]  }
 0x5db   :  { %v6025_v35 = vadd.f32 %v6013_v50, %v3539_v34  ;;  %v6039_v44 = vadd.f32 %v6015_v23, %v3580_v19  ;;  %v6002_v8 = vrot.slane %v8632_v46, 6  ;;  %v6074_v56 = vmul.f32 %v6063_v52, %v11207_v43 }
 0x5dc   :  { %v8270_v11 = vmul.f32 -1.442695, %v6018_v53 }
 0x5dd   :  { %v8272_v3 = vmul.f32 -1.442695, %v6039_v44  ;;  %v8271_v32 = vmul.f32 -1.442695, %v6025_v35  ;;  %v6014_v48 = vsel %vm1983_vm1, %v8632_v46, %v6002_v8  ;;  %v9812_v8 = vld [vmem:[#allocation11 + $0x338] ss:$24 sps:$4 sm:$0xff]  }
 0x5de   :  { %10029 = vpow2.f32 %v8270_v11  ;;  %v6070_v34 = vpop.permute.xlu1 %6069 }
 0x5df   :  { %10031 = vpow2.f32 %v8272_v3 }
 0x5e0   :  { %10033 = vpow2.f32 %v8271_v32 }
 0x5e8   :  { %v10030_v27 = vpop.eup %10029 }
 0x5e9   :  { %v6022_v62 = vadd.f32 1.0, %v10030_v27  ;;  %v10032_v13 = vpop.eup %10031  ;;  %v6072_v27 = vmul.f32 %v6070_v34, %v11233_v40  ;;  %v9811_v40 = vld [vmem:[#allocation11 + $0x334] ss:$24 sps:$4 sm:$0xff]  }
 0x5ea   :  { %v6043_v25 = vadd.f32 1.0, %v10032_v13  ;;  %v10034_v21 = vpop.eup %10033 }
 0x5eb   :  { %10035 = vrcp.f32 %v6022_v62  ;;  %v6029_v51 = vadd.f32 1.0, %v10034_v21  ;;  %v11301_v21 = vld [vmem:[%s11486_s4] sm:$0x3] }
 0x5ec   :  { %10037 = vrcp.f32 %v6043_v25 }
 0x5ed   :  { %10039 = vrcp.f32 %v6029_v51  ;;  %v9809_v51 = vld [vmem:[#allocation11 + $0x330] ss:$24 sps:$4 sm:$0xff]  }
 0x5f5   :  { %v10036_v2 = vpop.eup %10035 }
 0x5f6   :  { %v6032_v20 = vmul.f32 %v10036_v2, %v3578_v58  ;;  %v10038_v31 = vpop.eup %10037  ;;  %v9817_v58 = vld [vmem:[#allocation11 + $0x364] ss:$24 sps:$4 sm:$0xff]  }
 0x5f7   :  { %v6053_v9 = vmul.f32 %v10038_v31, %v11158_v24  ;;  %v10040_v61 = vpop.eup %10039  ;;  %v5017_v24 = vrot.slane %v11248_v42, %v11076_v12  ;;  %v9820_v2 = vld [vmem:[#allocation11 + $0x36c] ss:$24 sps:$4 sm:$0xff]   ;;  %v9818_v31 = vld [vmem:[#allocation11 + $0x368] ss:$24 sps:$4 sm:$0xff]  }
 0x5f8   :  { %v6033_v60 = vadd.f32 %v6032_v20, %v6014_v48  ;;  %v6035_v29 = vsub.f32 1.0, %v10040_v61  ;;  %v6037_v0 = vmul.f32 %v11204_v26, %v10040_v61  ;;  %v9815_v20 = vld [vmem:[#allocation11 + $0x360] ss:$24 sps:$4 sm:$0xff]   ;;  %v9823_v48 = vld [vmem:[#allocation11 + $0x394] ss:$24 sps:$4 sm:$0xff]  }
 0x5f9   :  { %v9824_v61 = vld [vmem:[#allocation11 + $0x398] ss:$24 sps:$4 sm:$0xff]  }
 0x5fa   :  { %10041 = vtanh.f32 %v6033_v60  ;;  %v9826_v60 = vld [vmem:[#allocation11 + $0x39c] ss:$24 sps:$4 sm:$0xff]  }
 0x604   :  { %v10042_v18 = vpop.eup %10041 }
 0x605   :  { %v6036_v63 = vmul.f32 %v10042_v18, %v6035_v29  ;;  %v9829_v29 = vld [vmem:[#allocation11 + $0x3c4] ss:$24 sps:$4 sm:$0xff]  }
 0x606   :  { %v9832_v18 = vld [vmem:[#allocation11 + $0x3cc] ss:$24 sps:$4 sm:$0xff]  }
 0x607   :  { %v6038_v19 = vadd.f32 %v6037_v0, %v6036_v63  ;;  %v9830_v63 = vld [vmem:[#allocation11 + $0x3c8] ss:$24 sps:$4 sm:$0xff]   ;;  %v9835_v0 = vld [vmem:[#allocation11 + $0x3f4] ss:$24 sps:$4 sm:$0xff]  }
 0x609   :  { %v6075_v45 = vmul.f32 %v6070_v34, %v6038_v19  ;;  %v9838_v19 = vld [vmem:[#allocation11 + $0x3fc] ss:$24 sps:$4 sm:$0xff]   ;;  %v9833_v34 = vld [vmem:[#allocation11 + $0x3f0] ss:$24 sps:$4 sm:$0xff]  }
 0x60b   :  { %v6076_v54 = vadd.f32 %v6075_v45, %v6074_v56  ;;  %v9836_v56 = vld [vmem:[#allocation11 + $0x3f8] ss:$24 sps:$4 sm:$0xff]   ;;  %v9841_v45 = vld [vmem:[#allocation11 + $0x424] ss:$24 sps:$4 sm:$0xff]  }
 0x60d   :  { %7537 = vst [vmem:[%s11389_s22] sm:$0xf] %v6076_v54  ;;  %v9844_v54 = vld [vmem:[#allocation11 + $0x42c] ss:$24 sps:$4 sm:$0xff]  }
 0x634   :  { %v5987_v53 = vpop.f32.mrb[32].mxu0 }
 0x635   :  { %v8634_v50 = vadd.f32 %v5987_v53, %v5017_v24  ;;  %v5989_v23 = vpop.f32.mrb[33].mxu0  ;;  %v9839_v24 = vld [vmem:[#allocation11 + $0x420] ss:$24 sps:$4 sm:$0xff]   ;;  %v9847_v53 = vld [vmem:[#allocation11 + $0x454] ss:$24 sps:$4 sm:$0xff]  }
 0x636   :  { %v8635_v26 = vadd.f32 %v5989_v23, %v5021_v59  ;;  %v5991_v1 = vpop.f32.mrb[34].mxu0  ;;  %v9842_v59 = vld [vmem:[#allocation11 + $0x428] ss:$24 sps:$4 sm:$0xff]  }
 0x637   :  { %v6004_v38 = vrot.slane %v8634_v50, 6  ;;  %v5992_v35 = vpop.f32.mrb[35].mxu0  ;;  %v9845_v23 = vld [vmem:[#allocation11 + $0x450] ss:$24 sps:$4 sm:$0xff]   ;;  %v9853_v1 = vld [vmem:[#allocation11 + $0x484] ss:$24 sps:$4 sm:$0xff]  }
 0x638   :  { %v6005_v43 = vrot.slane %v8635_v26, 6  ;;  %v9851_v35 = vld [vmem:[#allocation11 + $0x480] ss:$24 sps:$4 sm:$0xff]  }
 0x639   :  { %v6016_v44 = vsel %vm1983_vm1, %v8634_v50, %v6004_v38  ;;  %v9850_v50 = vld [vmem:[#allocation11 + $0x45c] ss:$24 sps:$4 sm:$0xff]   ;;  %v9856_v38 = vld [vmem:[#allocation11 + $0x48c] ss:$24 sps:$4 sm:$0xff]  }
 0x63a   :  { %v6046_v11 = vadd.f32 %v6016_v44, %v11154_v6  ;;  %v6017_v3 = vsel %vm1983_vm1, %v8635_v26, %v6005_v43  ;;  %v9848_v26 = vld [vmem:[#allocation11 + $0x458] ss:$24 sps:$4 sm:$0xff]   ;;  %v9854_v43 = vld [vmem:[#allocation11 + $0x488] ss:$24 sps:$4 sm:$0xff]   ;;  %v9859_v44 = vld [vmem:[#allocation11 + $0x4b4] ss:$24 sps:$4 sm:$0xff]  }
 0x63b   :  { %v6054_v10 = vadd.f32 %v6053_v9, %v6017_v3  ;;  %v9821_v9 = vld [vmem:[#allocation11 + $0x390] ss:$24 sps:$4 sm:$0xff]  }
 0x63c   :  { %v8273_v57 = vmul.f32 -1.442695, %v6046_v11  ;;  %v9862_v11 = vld [vmem:[#allocation11 + $0x4bc] ss:$24 sps:$4 sm:$0xff]   ;;  %v9857_v3 = vld [vmem:[#allocation11 + $0x4b0] ss:$24 sps:$4 sm:$0xff]  }
 0x63e   :  { %10043 = vpow2.f32 %v8273_v57  ;;  %v9865_v57 = vld [vmem:[#allocation11 + $0x4e4] ss:$24 sps:$4 sm:$0xff]  }
 0x648   :  { %v10044_v14 = vpop.eup %10043 }
 0x649   :  { %v6050_v41 = vadd.f32 1.0, %v10044_v14  ;;  %v9868_v14 = vld [vmem:[#allocation11 + $0x4ec] ss:$24 sps:$4 sm:$0xff]  }
 0x64b   :  { %10045 = vrcp.f32 %v6050_v41  ;;  %v9863_v41 = vld [vmem:[#allocation11 + $0x4e0] ss:$24 sps:$4 sm:$0xff]  }
 0x64c   :  { %10047 = vtanh.f32 %v6054_v10  ;;  %v9860_v10 = vld [vmem:[#allocation11 + $0x4b8] ss:$24 sps:$4 sm:$0xff]  }
 0x655   :  { %v10046_v42 = vpop.eup %10045 }
 0x656   :  { %v6056_v32 = vsub.f32 1.0, %v10046_v42  ;;  %v10048_v15 = vpop.eup %10047  ;;  %v6058_v22 = vmul.f32 %v11230_v49, %v10046_v42  ;;  %v9803_v49 = vld [vmem:[#allocation11 + $0x300] ss:$24 sps:$4 sm:$0xff]  }
 0x657   :  { %v9866_v42 = vld [vmem:[#allocation11 + $0x4e8] ss:$24 sps:$4 sm:$0xff]  }
 0x658   :  { %v6057_v39 = vmul.f32 %v10048_v15, %v6056_v32  ;;  %v9871_v32 = vld [vmem:[#allocation11 + $0x514] ss:$24 sps:$4 sm:$0xff]  }
 0x659   :  { %v9874_v15 = vld [vmem:[#allocation11 + $0x51c] ss:$24 sps:$4 sm:$0xff]  }
 0x65a   :  { %v6059_v4 = vadd.f32 %v6058_v22, %v6057_v39  ;;  %v9869_v39 = vld [vmem:[#allocation11 + $0x510] ss:$24 sps:$4 sm:$0xff]  }
 0x65b   :  { %v9872_v22 = vld [vmem:[#allocation11 + $0x518] ss:$24 sps:$4 sm:$0xff]  }
 0x65c   :  { %v6065_v62 = vmul.f32 %v6063_v52, %v6059_v4  ;;  %v9827_v52 = vld [vmem:[#allocation11 + $0x3c0] ss:$24 sps:$4 sm:$0xff]   ;;  %v9877_v4 = vld [vmem:[#allocation11 + $0x544] ss:$24 sps:$4 sm:$0xff]  }
 0x65e   :  { %v6073_v6 = vadd.f32 %v6072_v27, %v6065_v62  ;;  %v9880_v27 = vld [vmem:[#allocation11 + $0x54c] ss:$24 sps:$4 sm:$0xff]   ;;  %v9875_v62 = vld [vmem:[#allocation11 + $0x540] ss:$24 sps:$4 sm:$0xff]  }
 0x660   :  { %v6077_v13 = vmul.f32 %v6073_v6, %v10926_v47  ;;  %7536 = vst [vmem:[%s11388_s21] sm:$0xf] %v6073_v6  ;;  %v11309_v47 = vpack.c.bf16 %v11301_v21, %v11301_v21  ;;  %v9878_v6 = vld [vmem:[#allocation11 + $0x548] ss:$24 sps:$4 sm:$0xff]  }
 0x662   :  { %v6079_v33 = vrot.slane %v6077_v13, 2 }
 0x664   :  { %v6081_v25 = vadd.f32 %v6079_v33, %v6077_v13  ;;  %v9883_v13 = vld [vmem:[#allocation11 + $0x574] ss:$24 sps:$4 sm:$0xff]  }
 0x665   :  { %v9886_v33 = vld [vmem:[#allocation11 + $0x57c] ss:$24 sps:$4 sm:$0xff]  }
 0x666   :  { %v11303_v46 = vpack.c.bf16 %v6081_v25, %v6081_v25  ;;  %v9881_v25 = vld [vmem:[#allocation11 + $0x570] ss:$24 sps:$4 sm:$0xff]  }
 0x668   :  { %7300 = vmatprep.mubr.bf16.mxu1 %v11303_v46  ;;  %7382 = vmatprep.mubr.bf16.mxu0 %v11303_v46 }
 0x669   :  { %7301 = vmatmul.mubr.bf16.vlgmr.msra.gmra.mrb[36].mxu1 %v10948_v5  ;;  %7383 = vmatmul.mubr.bf16.vlgmr.msra.gmra.mrb[36].mxu0 %v10948_v5 }
 0x66a   :  { %7310 = vmatpush1.bf16.msra.mxu1 %v9803_v49  ;;  %7392 = vmatpush1.bf16.msra.mxu0 %v9806_v30  ;;  %v9884_v49 = vld [vmem:[#allocation11 + $0x578] ss:$24 sps:$4 sm:$0xff]   ;;  %v9889_v30 = vld [vmem:[#allocation11 + $0x5a4] ss:$24 sps:$4 sm:$0xff]  }
 0x66b   :  { %7311 = vmatprep.subr.bf16.mxu1 %v9811_v40  ;;  %7393 = vmatprep.subr.bf16.mxu0 %v9814_v37  ;;  %v9892_v40 = vld [vmem:[#allocation11 + $0x5ac] ss:$24 sps:$4 sm:$0xff]   ;;  %v9887_v37 = vld [vmem:[#allocation11 + $0x5a0] ss:$24 sps:$4 sm:$0xff]  }
 0x66c   :  { %7341 = vmatprep.mubr.bf16.mxu1 %v11309_v47  ;;  %7423 = vmatprep.mubr.bf16.mxu0 %v11309_v47 }
 0x66e   :  { %7312 = vmatpush1.bf16.msra.mxu1 %v9809_v51  ;;  %7394 = vmatpush1.bf16.msra.mxu0 %v9812_v8  ;;  %v9890_v51 = vld [vmem:[#allocation11 + $0x5a8] ss:$24 sps:$4 sm:$0xff]   ;;  %v9895_v8 = vld [vmem:[#allocation11 + $0x5d4] ss:$24 sps:$4 sm:$0xff]  }
 0x66f   :  { %7313 = vmatprep.subr.bf16.mxu1 %v9817_v58  ;;  %7395 = vmatprep.subr.bf16.mxu0 %v9820_v2  ;;  %v9898_v58 = vld [vmem:[#allocation11 + $0x5dc] ss:$24 sps:$4 sm:$0xff]   ;;  %v9893_v2 = vld [vmem:[#allocation11 + $0x5d0] ss:$24 sps:$4 sm:$0xff]  }
 0x672   :  { %7314 = vmatpush1.bf16.msra.mxu1 %v9815_v20  ;;  %7396 = vmatpush1.bf16.msra.mxu0 %v9818_v31  ;;  %v9896_v20 = vld [vmem:[#allocation11 + $0x5d8] ss:$24 sps:$4 sm:$0xff]   ;;  %v9901_v31 = vld [vmem:[#allocation11 + $0x14] ss:$24 sps:$4 sm:$0xff]  }
 0x673   :  { %7315 = vmatprep.subr.bf16.mxu1 %v9823_v48  ;;  %7397 = vmatprep.subr.bf16.mxu0 %v9826_v60  ;;  %v9899_v48 = vld [vmem:[#allocation11 + $0x10] ss:$24 sps:$4 sm:$0xff]   ;;  %v9904_v60 = vld [vmem:[#allocation11 + $0x44] ss:$24 sps:$4 sm:$0xff]  }
 0x676   :  { %7316 = vmatpush1.bf16.msra.mxu1 %v9821_v9  ;;  %7398 = vmatpush1.bf16.msra.mxu0 %v9824_v61  ;;  %v9902_v9 = vld [vmem:[#allocation11 + $0x40] ss:$24 sps:$4 sm:$0xff]   ;;  %v9907_v61 = vld [vmem:[#allocation11 + $0x74] ss:$24 sps:$4 sm:$0xff]  }
 0x677   :  { %7317 = vmatprep.subr.bf16.mxu1 %v9829_v29  ;;  %7399 = vmatprep.subr.bf16.mxu0 %v9832_v18  ;;  %v9905_v29 = vld [vmem:[#allocation11 + $0x70] ss:$24 sps:$4 sm:$0xff]   ;;  %v9910_v18 = vld [vmem:[#allocation11 + $0xa4] ss:$24 sps:$4 sm:$0xff]  }
 0x67a   :  { %7318 = vmatpush1.bf16.msra.mxu1 %v9827_v52  ;;  %7400 = vmatpush1.bf16.msra.mxu0 %v9830_v63  ;;  %v9908_v52 = vld [vmem:[#allocation11 + $0xa0] ss:$24 sps:$4 sm:$0xff]   ;;  %v9913_v63 = vld [vmem:[#allocation11 + $0xd4] ss:$24 sps:$4 sm:$0xff]  }
 0x67b   :  { %7319 = vmatprep.subr.bf16.mxu1 %v9835_v0  ;;  %7401 = vmatprep.subr.bf16.mxu0 %v9838_v19  ;;  %v9911_v0 = vld [vmem:[#allocation11 + $0xd0] ss:$24 sps:$4 sm:$0xff]   ;;  %v9916_v19 = vld [vmem:[#allocation11 + $0x104] ss:$24 sps:$4 sm:$0xff]  }
 0x67e   :  { %7320 = vmatpush1.bf16.msra.mxu1 %v9833_v34  ;;  %7402 = vmatpush1.bf16.msra.mxu0 %v9836_v56  ;;  %v9914_v34 = vld [vmem:[#allocation11 + $0x100] ss:$24 sps:$4 sm:$0xff]   ;;  %v9919_v56 = vld [vmem:[#allocation11 + $0x134] ss:$24 sps:$4 sm:$0xff]  }
 0x67f   :  { %7321 = vmatprep.subr.bf16.mxu1 %v9841_v45  ;;  %7403 = vmatprep.subr.bf16.mxu0 %v9844_v54  ;;  %v9922_v45 = vld [vmem:[#allocation11 + $0x164] ss:$24 sps:$4 sm:$0xff]   ;;  %v9920_v54 = vld [vmem:[#allocation11 + $0x160] ss:$24 sps:$4 sm:$0xff]  }
 0x682   :  { %7322 = vmatpush1.bf16.msra.mxu1 %v9839_v24  ;;  %7404 = vmatpush1.bf16.msra.mxu0 %v9842_v59  ;;  %v9925_v24 = vld [vmem:[#allocation11 + $0x194] ss:$24 sps:$4 sm:$0xff]   ;;  %v9923_v59 = vld [vmem:[#allocation11 + $0x190] ss:$24 sps:$4 sm:$0xff]  }
 0x683   :  { %7323 = vmatprep.subr.bf16.mxu1 %v9847_v53  ;;  %7405 = vmatprep.subr.bf16.mxu0 %v9850_v50  ;;  %v9928_v53 = vld [vmem:[#allocation11 + $0x1c4] ss:$24 sps:$4 sm:$0xff]   ;;  %v9926_v50 = vld [vmem:[#allocation11 + $0x1c0] ss:$24 sps:$4 sm:$0xff]  }
 0x686   :  { %7324 = vmatpush1.bf16.msra.mxu1 %v9845_v23  ;;  %7406 = vmatpush1.bf16.msra.mxu0 %v9848_v26  ;;  %v9931_v23 = vld [vmem:[#allocation11 + $0x1f4] ss:$24 sps:$4 sm:$0xff]   ;;  %v9929_v26 = vld [vmem:[#allocation11 + $0x1f0] ss:$24 sps:$4 sm:$0xff]  }
 0x687   :  { %7325 = vmatprep.subr.bf16.mxu1 %v9853_v1  ;;  %7407 = vmatprep.subr.bf16.mxu0 %v9856_v38  ;;  %v9934_v1 = vld [vmem:[#allocation11 + $0x224] ss:$24 sps:$4 sm:$0xff]   ;;  %v9932_v38 = vld [vmem:[#allocation11 + $0x220] ss:$24 sps:$4 sm:$0xff]  }
 0x68a   :  { %7326 = vmatpush1.bf16.msra.mxu1 %v9851_v35  ;;  %7408 = vmatpush1.bf16.msra.mxu0 %v9854_v43  ;;  %v9937_v35 = vld [vmem:[#allocation11 + $0x254] ss:$24 sps:$4 sm:$0xff]   ;;  %v9935_v43 = vld [vmem:[#allocation11 + $0x250] ss:$24 sps:$4 sm:$0xff]  }
 0x68b   :  { %7327 = vmatprep.subr.bf16.mxu1 %v9859_v44  ;;  %7409 = vmatprep.subr.bf16.mxu0 %v9862_v11  ;;  %v9940_v44 = vld [vmem:[#allocation11 + $0x284] ss:$24 sps:$4 sm:$0xff]   ;;  %v9938_v11 = vld [vmem:[#allocation11 + $0x280] ss:$24 sps:$4 sm:$0xff]  }
 0x68e   :  { %7328 = vmatpush1.bf16.msra.mxu1 %v9857_v3  ;;  %7410 = vmatpush1.bf16.msra.mxu0 %v9860_v10  ;;  %v9943_v3 = vld [vmem:[#allocation11 + $0x2b4] ss:$24 sps:$4 sm:$0xff]   ;;  %v9941_v10 = vld [vmem:[#allocation11 + $0x2b0] ss:$24 sps:$4 sm:$0xff]  }
 0x68f   :  { %7329 = vmatprep.subr.bf16.mxu1 %v9865_v57  ;;  %7411 = vmatprep.subr.bf16.mxu0 %v9868_v14  ;;  %v9946_v57 = vld [vmem:[#allocation11 + $0x2e4] ss:$24 sps:$4 sm:$0xff]   ;;  %v9944_v14 = vld [vmem:[#allocation11 + $0x2e0] ss:$24 sps:$4 sm:$0xff]  }
 0x692   :  { %7330 = vmatpush1.bf16.msra.mxu1 %v9863_v41  ;;  %7412 = vmatpush1.bf16.msra.mxu0 %v9866_v42  ;;  %v9949_v41 = vld [vmem:[#allocation11 + $0x314] ss:$24 sps:$4 sm:$0xff]   ;;  %v9947_v42 = vld [vmem:[#allocation11 + $0x310] ss:$24 sps:$4 sm:$0xff]  }
 0x693   :  { %7331 = vmatprep.subr.bf16.mxu1 %v9871_v32  ;;  %7413 = vmatprep.subr.bf16.mxu0 %v9874_v15  ;;  %v9952_v32 = vld [vmem:[#allocation11 + $0x344] ss:$24 sps:$4 sm:$0xff]   ;;  %v9950_v15 = vld [vmem:[#allocation11 + $0x340] ss:$24 sps:$4 sm:$0xff]  }
 0x696   :  { %7332 = vmatpush1.bf16.msra.mxu1 %v9869_v39  ;;  %7414 = vmatpush1.bf16.msra.mxu0 %v9872_v22  ;;  %v9955_v39 = vld [vmem:[#allocation11 + $0x374] ss:$24 sps:$4 sm:$0xff]   ;;  %v9953_v22 = vld [vmem:[#allocation11 + $0x370] ss:$24 sps:$4 sm:$0xff]  }
 0x697   :  { %7333 = vmatprep.subr.bf16.mxu1 %v9877_v4  ;;  %7415 = vmatprep.subr.bf16.mxu0 %v9880_v27  ;;  %v9958_v4 = vld [vmem:[#allocation11 + $0x3a4] ss:$24 sps:$4 sm:$0xff]   ;;  %v9956_v27 = vld [vmem:[#allocation11 + $0x3a0] ss:$24 sps:$4 sm:$0xff]  }
 0x69a   :  { %7334 = vmatpush1.bf16.msra.mxu1 %v9875_v62  ;;  %7416 = vmatpush1.bf16.msra.mxu0 %v9878_v6  ;;  %v9961_v62 = vld [vmem:[#allocation11 + $0x3d4] ss:$24 sps:$4 sm:$0xff]   ;;  %v9959_v6 = vld [vmem:[#allocation11 + $0x3d0] ss:$24 sps:$4 sm:$0xff]  }
 0x69b   :  { %7335 = vmatprep.subr.bf16.mxu1 %v9883_v13  ;;  %7417 = vmatprep.subr.bf16.mxu0 %v9886_v33  ;;  %v9964_v13 = vld [vmem:[#allocation11 + $0x404] ss:$24 sps:$4 sm:$0xff]   ;;  %v9967_v33 = vld [vmem:[#allocation11 + $0x434] ss:$24 sps:$4 sm:$0xff]  }
 0x69e   :  { %7336 = vmatpush1.bf16.msra.mxu1 %v9881_v25  ;;  %7418 = vmatpush1.bf16.msra.mxu0 %v9884_v49  ;;  %v9970_v25 = vld [vmem:[#allocation11 + $0x464] ss:$24 sps:$4 sm:$0xff]   ;;  %v9968_v49 = vld [vmem:[#allocation11 + $0x460] ss:$24 sps:$4 sm:$0xff]  }
 0x69f   :  { %7337 = vmatprep.subr.bf16.mxu1 %v9889_v30  ;;  %7419 = vmatprep.subr.bf16.mxu0 %v9892_v40  ;;  %v9973_v30 = vld [vmem:[#allocation11 + $0x494] ss:$24 sps:$4 sm:$0xff]   ;;  %v9971_v40 = vld [vmem:[#allocation11 + $0x490] ss:$24 sps:$4 sm:$0xff]  }
 0x6a2   :  { %7338 = vmatpush1.bf16.msra.mxu1 %v9887_v37  ;;  %7420 = vmatpush1.bf16.msra.mxu0 %v9890_v51  ;;  %v9976_v37 = vld [vmem:[#allocation11 + $0x4c4] ss:$24 sps:$4 sm:$0xff]   ;;  %v9974_v51 = vld [vmem:[#allocation11 + $0x4c0] ss:$24 sps:$4 sm:$0xff]  }
 0x6a3   :  { %7339 = vmatprep.subr.bf16.mxu1 %v9895_v8  ;;  %7421 = vmatprep.subr.bf16.mxu0 %v9898_v58  ;;  %v9979_v8 = vld [vmem:[#allocation11 + $0x4f4] ss:$24 sps:$4 sm:$0xff]   ;;  %v9977_v58 = vld [vmem:[#allocation11 + $0x4f0] ss:$24 sps:$4 sm:$0xff]  }
 0x6a6   :  { %7340 = vmatpush1.bf16.msra.mxu1 %v9893_v2  ;;  %7422 = vmatpush1.bf16.msra.mxu0 %v9896_v20  ;;  %v9982_v2 = vld [vmem:[#allocation11 + $0x524] ss:$24 sps:$4 sm:$0xff]   ;;  %v9980_v20 = vld [vmem:[#allocation11 + $0x520] ss:$24 sps:$4 sm:$0xff]  }
 0x6a7   :  { %7432 = vmatprep.subr.bf16.mxu1 %v9901_v31  ;;  %v9985_v31 = vld [vmem:[#allocation11 + $0x554] ss:$24 sps:$4 sm:$0xff]  }
 0x6a9   :  { %7342 = vmatmul.mubr.bf16.vlgmr.msra.gmra.mrb[36].mxu1 %v11127_v36  ;;  %7424 = vmatmul.mubr.bf16.vlgmr.msra.gmra.mrb[40].mxu0 %v11127_v36 }
 0x6aa   :  { %7433 = vmatpush1.bf16.msra.mxu1 %v9899_v48  ;;  %7464 = vmatprep.mubr.bf16.mxu1 %v11303_v46  ;;  %v9917_v46 = vld [vmem:[#allocation11 + $0x130] ss:$24 sps:$4 sm:$0xff]  }
 0x6ab   :  { %7434 = vmatprep.subr.bf16.mxu1 %v9904_v60  ;;  %v9983_v48 = vld [vmem:[#allocation11 + $0x550] ss:$24 sps:$4 sm:$0xff]   ;;  %v9988_v60 = vld [vmem:[#allocation11 + $0x584] ss:$24 sps:$4 sm:$0xff]  }
 0x6ae   :  { %7435 = vmatpush1.bf16.msra.mxu1 %v9902_v9  ;;  %v9986_v9 = vld [vmem:[#allocation11 + $0x580] ss:$24 sps:$4 sm:$0xff]  }
 0x6af   :  { %7436 = vmatprep.subr.bf16.mxu1 %v9907_v61  ;;  %v9991_v61 = vld [vmem:[#allocation11 + $0x5b4] ss:$24 sps:$4 sm:$0xff]  }
 0x6b2   :  { %7437 = vmatpush1.bf16.msra.mxu1 %v9905_v29  ;;  %v9989_v29 = vld [vmem:[#allocation11 + $0x5b0] ss:$24 sps:$4 sm:$0xff]  }
 0x6b3   :  { %7438 = vmatprep.subr.bf16.mxu1 %v9910_v18  ;;  %v9994_v18 = vld [vmem:[#allocation11 + $0x5e4] ss:$24 sps:$4 sm:$0xff]  }
 0x6b6   :  { %7439 = vmatpush1.bf16.msra.mxu1 %v9908_v52  ;;  %v9992_v52 = vld [vmem:[#allocation11 + $0x5e0] ss:$24 sps:$4 sm:$0xff]  }
 0x6b7   :  { %7440 = vmatprep.subr.bf16.mxu1 %v9913_v63 }
 0x6ba   :  { %7441 = vmatpush1.bf16.msra.mxu1 %v9911_v0 }
 0x6bb   :  { %7442 = vmatprep.subr.bf16.mxu1 %v9916_v19 }
 0x6be   :  { %7443 = vmatpush1.bf16.msra.mxu1 %v9914_v34 }
 0x6bf   :  { %7444 = vmatprep.subr.bf16.mxu1 %v9919_v56  ;;  %v6276_v56 = vld [vmem:[%s11386_s19] sm:$0x3f]  ;;  %s10265_s19 = smov [#allocation12]  }
 0x6c0   :  { %s7545_s28 = sshll.u32 %s10265_s19, 4  ;;  %s7546_s28 = int_to_ptr.vmem [resolvable:$true] %s7545_s28 }
 0x6c1   :  { %s10175_s12 = scalar_lea.vmem %s7546_s28, 32  ;;  %p10180_p13 = scmp.lt.s32.totalorder %s7546_s28, %s7546_s28 }
 0x6c2   :  { %7445 = vmatpush1.bf16.msra.mxu1 %v9917_v46  ;;  %v6289_v46 = vrot.slane %v6276_v56, %v11028_v17  ;;  %p10176_p12 = scmp.ne.s32.totalorder %s7546_s28, %s10175_s12  ;;  %p10181_p0 = scmp.lt.s32.totalorder %s10175_s12, %s10175_s12 }
 0x6c3   :  { %7446 = vmatprep.subr.bf16.mxu1 %v9922_v45  ;;  %v6293_v45 = vrot.slane %v6276_v56, %v11031_v55 }
 0x6c4   :  { %p10182_p1 = por %p10181_p0, %p10180_p13 }
 0x6c6   :  { %7447 = vmatpush1.bf16.msra.mxu1 %v9920_v54  ;;  %p10183_p2 = pnand %p10182_p1, %p10176_p12 }
 0x6c7   :  { %7448 = vmatprep.subr.bf16.mxu1 %v9925_v24  ;;  %v6281_v24 = vrot.slane %v6276_v56, %v11041_v7 }
 0x6ca   :  { %7449 = vmatpush1.bf16.msra.mxu1 %v9923_v59 }
 0x6cb   :  { %7450 = vmatprep.subr.bf16.mxu1 %v9928_v53 }
 0x6ce   :  { %7451 = vmatpush1.bf16.msra.mxu1 %v9926_v50 }
 0x6cf   :  { %7452 = vmatprep.subr.bf16.mxu1 %v9931_v23 }
 0x6d2   :  { %7453 = vmatpush1.bf16.msra.mxu1 %v9929_v26 }
 0x6d3   :  { %7454 = vmatprep.subr.bf16.mxu1 %v9934_v1 }
 0x6d6   :  { %7455 = vmatpush1.bf16.msra.mxu1 %v9932_v38 }
 0x6d7   :  { %7456 = vmatprep.subr.bf16.mxu1 %v9937_v35 }
 0x6da   :  { %7457 = vmatpush1.bf16.msra.mxu1 %v9935_v43 }
 0x6db   :  { %7458 = vmatprep.subr.bf16.mxu1 %v9940_v44 }
 0x6de   :  { %7459 = vmatpush1.bf16.msra.mxu1 %v9938_v11 }
 0x6df   :  { %7460 = vmatprep.subr.bf16.mxu1 %v9943_v3 }
 0x6e2   :  { %7461 = vmatpush1.bf16.msra.mxu1 %v9941_v10 }
 0x6e3   :  { %7462 = vmatprep.subr.bf16.mxu1 %v9946_v57 }
 0x6e6   :  { %7463 = vmatpush1.bf16.msra.mxu1 %v9944_v14 }
 0x6e7   :  { %7473 = vmatprep.subr.bf16.mxu1 %v9949_v41 }
 0x6e9   :  { %7465 = vmatmul.mubr.bf16.vlgmr.msra.gmra.mrb[40].mxu1 %v10948_v5  ;;  %v9962_v5 = vld [vmem:[#allocation11 + $0x400] ss:$24 sps:$4 sm:$0xff]  }
 0x6ea   :  { %7474 = vmatpush1.bf16.msra.mxu1 %v9947_v42  ;;  %7505 = vmatprep.mubr.bf16.mxu1 %v11309_v47  ;;  %v9965_v47 = vld [vmem:[#allocation11 + $0x430] ss:$24 sps:$4 sm:$0xff]  }
 0x6eb   :  { %7475 = vmatprep.subr.bf16.mxu1 %v9952_v32 }
 0x6ee   :  { %7476 = vmatpush1.bf16.msra.mxu1 %v9950_v15 }
 0x6ef   :  { %7477 = vmatprep.subr.bf16.mxu1 %v9955_v39 }
 0x6f2   :  { %7478 = vmatpush1.bf16.msra.mxu1 %v9953_v22 }
 0x6f3   :  { %7479 = vmatprep.subr.bf16.mxu1 %v9958_v4 }
 0x6f6   :  { %7480 = vmatpush1.bf16.msra.mxu1 %v9956_v27 }
 0x6f7   :  { %7481 = vmatprep.subr.bf16.mxu1 %v9961_v62 }
 0x6fa   :  { %7482 = vmatpush1.bf16.msra.mxu1 %v9959_v6 }
 0x6fb   :  { %7483 = vmatprep.subr.bf16.mxu1 %v9964_v13 }
 0x6fe   :  { %7484 = vmatpush1.bf16.msra.mxu1 %v9962_v5 }
 0x6ff   :  { %7485 = vmatprep.subr.bf16.mxu1 %v9967_v33 }
 0x702   :  { %7486 = vmatpush1.bf16.msra.mxu1 %v9965_v47 }
 0x703   :  { %7487 = vmatprep.subr.bf16.mxu1 %v9970_v25 }
 0x706   :  { %7488 = vmatpush1.bf16.msra.mxu1 %v9968_v49 }
 0x707   :  { %7489 = vmatprep.subr.bf16.mxu1 %v9973_v30 }
 0x70a   :  { %7490 = vmatpush1.bf16.msra.mxu1 %v9971_v40 }
 0x70b   :  { %7491 = vmatprep.subr.bf16.mxu1 %v9976_v37 }
 0x70e   :  { %7492 = vmatpush1.bf16.msra.mxu1 %v9974_v51 }
 0x70f   :  { %7493 = vmatprep.subr.bf16.mxu1 %v9979_v8 }
 0x712   :  { %7494 = vmatpush1.bf16.msra.mxu1 %v9977_v58 }
 0x713   :  { %7495 = vmatprep.subr.bf16.mxu1 %v9982_v2 }
 0x716   :  { %7496 = vmatpush1.bf16.msra.mxu1 %v9980_v20 }
 0x717   :  { %7497 = vmatprep.subr.bf16.mxu1 %v9985_v31 }
 0x71a   :  { %7498 = vmatpush1.bf16.msra.mxu1 %v9983_v48 }
 0x71b   :  { %7499 = vmatprep.subr.bf16.mxu1 %v9988_v60 }
 0x71e   :  { %7500 = vmatpush1.bf16.msra.mxu1 %v9986_v9 }
 0x71f   :  { %7501 = vmatprep.subr.bf16.mxu1 %v9991_v61 }
 0x722   :  { %7502 = vmatpush1.bf16.msra.mxu1 %v9989_v29 }
 0x723   :  { %7503 = vmatprep.subr.bf16.mxu1 %v9994_v18 }
 0x726   :  { %7504 = vmatpush1.bf16.msra.mxu1 %v9992_v52 }
 0x729   :  { %7506 = vmatmul.mubr.bf16.vlgmr.msra.gmra.mrb[40].mxu1 %v11127_v36 }
 0x73c   :  { %v7384_v63 = vpop.f32.mrb[36].mxu0 }
 0x73d   :  { %v7386_v0 = vpop.f32.mrb[37].mxu0  ;;  %v7385_v54 = vadd.f32 %v7384_v63, %v6289_v46 }
 0x73e   :  { %v7388_v19 = vpop.f32.mrb[38].mxu0  ;;  %v7387_v59 = vadd.f32 %v7386_v0, %v6293_v45 }
 0x73f   :  { %v7389_v34 = vpop.f32.mrb[39].mxu0 }
 0x77c   :  { %v7343_v53 = vpop.f32.mrb[36].mxu1  ;;  %v7425_v50 = vpop.f32.mrb[40].mxu0 }
 0x77d   :  { %v8636_v23 = vadd.f32 %v7343_v53, %v6281_v24  ;;  %v7426_v36 = vadd.f32 %v7425_v50, %v7385_v54  ;;  %v7345_v26 = vpop.f32.mrb[37].mxu1  ;;  %v7427_v1 = vpop.f32.mrb[41].mxu0 }
 0x77e   :  { %v7428_v38 = vadd.f32 %v7427_v1, %v7387_v59  ;;  %v7347_v35 = vpop.f32.mrb[38].mxu1  ;;  %v7429_v43 = vpop.f32.mrb[42].mxu0 }
 0x77f   :  { %v7348_v44 = vpop.f32.mrb[39].mxu1  ;;  %v7430_v11 = vpop.f32.mrb[43].mxu0 }
 0x780   :  { %v7514_v3 = vadd.f32 %v8636_v23, %v7428_v38 }
 0x781   :  { %10186 = shalt.err (!%p10183_p2)
}
 0x782   :  { %s10187_s25 = scalar_lea.hbm %s11387_s20, 32 }
 0x783   :  { %p10188_p3 = scmp.ne.s32.totalorder %s11387_s20, %s10187_s25  ;;  %p10191_p4 = scmp.lt.u32.totalorder %s10187_s25, %s11387_s20 }
 0x785   :  { %p10193_p5 = pnand %p10191_p4, %p10188_p3 }
 0x787   :  { %10196 = shalt.err (!%p10193_p5)
}
 0x788   :  { %7548 = dma.vmem_to_hbm [thread:$0]  %s7546_s28, 32, %s11387_s20, [#allocation5]   ;;  %v8466_v17 = vmul.f32 -1.442695, %v7514_v3  ;;  %v6285_v10 = vrot.slane %v6276_v56, %v11073_v28  ;;  %v6297_v57 = vrot.slane %v6276_v56, %v11076_v12  ;;  %v6301_v14 = vrot.slane %v6276_v56, %v11079_v16 }
 0x789   :  { %s10266_s20 = smov [#allocation13]   ;;  %s10267_s29 = smov [#allocation15]  }
 0x78a   :  { %10049 = vpow2.f32 %v8466_v17  ;;  %v8637_v42 = vadd.f32 %v7345_v26, %v6285_v10  ;;  %s7559_s7 = sshll.u32 %s10266_s20, 4  ;;  %s7569_s10 = sshll.u32 %s10267_s29, 4  ;;  %s7560_s7 = int_to_ptr.vmem [resolvable:$true] %s7559_s7  ;;  %s7570_s10 = int_to_ptr.vmem [resolvable:$true] %s7569_s10 }
 0x78b   :  { %s10197_s5 = scalar_lea.vmem %s7560_s7, 32  ;;  %p10202_p7 = scmp.lt.s32.totalorder %s7560_s7, %s7560_s7 }
 0x78c   :  { %p10198_p6 = scmp.ne.s32.totalorder %s7560_s7, %s10197_s5  ;;  %p10203_p8 = scmp.lt.s32.totalorder %s10197_s5, %s10197_s5 }
 0x78e   :  { %p10204_p9 = por %p10203_p8, %p10202_p7 }
 0x790   :  { %p10205_p10 = pnand %p10204_p9, %p10198_p6 }
 0x794   :  { %v10050_v55 = vpop.eup %10049 }
 0x795   :  { %v7518_v7 = vadd.f32 1.0, %v10050_v55 }
 0x797   :  { %10051 = vrcp.f32 %v7518_v7 }
 0x7a1   :  { %v10052_v4 = vpop.eup %10051 }
 0x7fc   :  { %v7507_v41 = vpop.f32.mrb[40].mxu1 }
 0x7fd   :  { %v8638_v32 = vadd.f32 %v7507_v41, %v6297_v57  ;;  %v7509_v15 = vpop.f32.mrb[41].mxu1 }
 0x7fe   :  { %v8639_v39 = vadd.f32 %v7509_v15, %v6301_v14  ;;  %v7511_v22 = vpop.f32.mrb[42].mxu1 }
 0x7ff   :  { %v7521_v27 = vadd.f32 %v8638_v32, %v8637_v42  ;;  %v7512_v62 = vpop.f32.mrb[43].mxu1 }
 0x800   :  { %v7528_v6 = vmul.f32 %v10052_v4, %v8639_v39 }
 0x801   :  { %v8467_v13 = vmul.f32 -1.442695, %v7521_v27 }
 0x802   :  { %v7529_v5 = vadd.f32 %v7528_v6, %v7426_v36 }
 0x803   :  { %10053 = vpow2.f32 %v8467_v13 }
 0x80d   :  { %v10054_v33 = vpop.eup %10053 }
 0x80e   :  { %v7525_v47 = vadd.f32 1.0, %v10054_v33 }
 0x810   :  { %10055 = vrcp.f32 %v7525_v47 }
 0x811   :  { %10057 = vtanh.f32 %v7529_v5 }
 0x81a   :  { %v10056_v28 = vpop.eup %10055 }
 0x81b   :  { %v7531_v12 = vsub.f32 1.0, %v10056_v28  ;;  %v10058_v16 = vpop.eup %10057  ;;  %v7533_v49 = vmul.f32 %v10056_v28, %v11301_v21 }
 0x81d   :  { %v7532_v25 = vmul.f32 %v10058_v16, %v7531_v12 }
 0x81f   :  { %v7534_v30 = vadd.f32 %v7533_v49, %v7532_v25 }
 0x821   :  { %7538 = vst [vmem:[#allocation13] sm:$0x3] %v7534_v30 }
 0x822   :  { %10208 = shalt.err (!%p10205_p10)
}
 0x823   :  { %s10209_s3 = scalar_lea.hbm %s11390_s23, 32 }
 0x824   :  { %p10210_p11 = scmp.ne.s32.totalorder %s11390_s23, %s10209_s3  ;;  %p10213_p12 = scmp.lt.u32.totalorder %s10209_s3, %s11390_s23 }
 0x826   :  { %p10215_p13 = pnand %p10213_p12, %p10210_p11 }
 0x828   :  { %10218 = shalt.err (!%p10215_p13)
}
 0x829   :  { %7562 = dma.vmem_to_hbm [thread:$0]  %s7560_s7, 32, %s11390_s23, [#allocation14]  }
 0x82a   :  { %s10219_s4 = scalar_lea.vmem %s7570_s10, 32  ;;  %p10224_p1 = scmp.lt.s32.totalorder %s7570_s10, %s7570_s10 }
 0x82b   :  { %p10220_p0 = scmp.ne.s32.totalorder %s7570_s10, %s10219_s4  ;;  %p10225_p2 = scmp.lt.s32.totalorder %s10219_s4, %s10219_s4 }
 0x82d   :  { %p10226_p3 = por %p10225_p2, %p10224_p1 }
 0x82f   :  { %p10227_p4 = pnand %p10226_p3, %p10220_p0 }
 0x831   :  { %10230 = shalt.err (!%p10227_p4)
}
 0x832   :  { %s10231_s19 = scalar_lea.hbm %s11391_s24, 32 }
 0x833   :  { %p10232_p5 = scmp.ne.s32.totalorder %s11391_s24, %s10231_s19  ;;  %p10235_p6 = scmp.lt.u32.totalorder %s10231_s19, %s11391_s24 }
 0x835   :  { %p10237_p7 = pnand %p10235_p6, %p10232_p5 }
 0x837   :  { %10240 = shalt.err (!%p10237_p7)
}
 0x838   :  { %7572 = dma.vmem_to_hbm [thread:$0]  %s7570_s10, 32, %s11391_s24, [#allocation14]  }
 0x839   :  { %10247 = dma.done.wait [#allocation5], 32  }
 0x83a   :  { %10248 = vsyncadd [#allocation5], 4294967264 }
 0x83b   :  { %10249 = dma.done.wait [#allocation14], 64  }
 0x83c   :  { %10250 = vsyncadd [#allocation14], 4294967232 }
 0x83d   :  { %7586 = vsyncpa [#allocation4], 1 }
 0x83e   :  { %7587 = vsyncpa [#allocation7], 1 }
 0x83f   :  { %7588 = vsyncpa [#allocation10], 1 }
 0x840   :  { %7589 = vsyncpa [#allocation5], 1 }
 0x841   :  { %7590 = vsyncpa [#allocation14], 1 }

</bundles_post_ra>
